<compile_context>
chip_gen: v7x
topology: tpu7x:2x2x1
jax: 0.10.0
libtpu: 0.0.40
codegen_flags: <defaults>
</compile_context>

<pallas_src>
import sys
import numpy as np
import jax
import jax.numpy as jnp
from jax.experimental import pallas as pl
from jax.experimental.pallas import tpu as pltpu

_SQRT_HALF = 0.7071067811865476


def _gelu(x, exact):
    if exact:
        # Matches torch.nn.GELU() default (exact, erf-based).
        return 0.5 * x * (1.0 + jax.lax.erf(x * _SQRT_HALF))
    # tanh-approximate fallback (EUP transcendental), only if erf won't lower.
    return jax.nn.gelu(x, approximate=True)


def _make_kernel(H, W, F, exact_gelu):
    HW = H * W

    def kernel(x_ref, w1_ref, b1_ref, wdw_ref, bdw_ref, w2_ref, b2_ref,
               o_ref, pad_ref):
        # x_ref:   (1, H*W, Cin)   one batch element, spatial dims flattened
        # o_ref:   (1, H*W, Cout)
        # pad_ref: (H+2, W+2, F)   VMEM scratch; zero border = depthwise padding

        # ---- hoisted parameter loads (once per grid step) -------------------
        w1 = w1_ref[...]           # (Cin, F)
        b1 = b1_ref[...]           # (1, F)
        bdw = bdw_ref[...]         # (1, F)
        w2 = w2_ref[...]           # (F, Cout)
        b2 = b2_ref[...]           # (1, Cout)

        # ---- keep the scratch border at zero --------------------------------
        # Border-only zeroing (not the whole scratch) every grid step: cheap,
        # and safe under megacore "parallel" grid sharding where a given core
        # may never execute program_id == 0.
        zrow = jnp.zeros((W + 2, F), jnp.float32)
        pad_ref[0] = zrow
        pad_ref[H + 1] = zrow
        zcol = jnp.zeros((H, 1, F), jnp.float32)
        pad_ref[1:H + 1, 0:1, :] = zcol
        pad_ref[1:H + 1, W + 1:W + 2, :] = zcol

        # ---- conv1 (1x1): one (H*W, Cin) @ (Cin, F) MXU matmul + GELU -------
        h1 = jnp.dot(x_ref[0], w1, preferred_element_type=jnp.float32) + b1
        h1 = _gelu(h1, exact_gelu)
        # dropout1: identity (eval mode)
        # W is a multiple of 8 -> reshape is layout-preserving; single
        # vectorized interior store instead of H per-row stores.
        pad_ref[1:H + 1, 1:W + 1, :] = h1.reshape(H, W, F)

        # ---- depthwise 3x3: 9 shifted slabs, vectorized over all rows -------
        acc = pad_ref[0:H, 0:W, :] * wdw_ref[0, 0]
        for dy in range(3):
            for dx in range(3):
                if dy == 0 and dx == 0:
                    continue
                acc = acc + pad_ref[dy:dy + H, dx:dx + W, :] * wdw_ref[dy, dx]
        h2 = _gelu(acc + bdw, exact_gelu)
        # dropout2: identity (eval mode)

        # ---- conv2 (1x1): one (H*W, F) @ (F, Cout) matmul, one dense store --
        out = jnp.dot(h2.reshape(HW, F), w2,
                      preferred_element_type=jnp.float32) + b2
        o_ref[0] = out

    return kernel


def pwsep_forward(x_nchw, params, exact_gelu=True):
    """Forward pass matching the PyTorch module in eval mode (dropout = id)."""
    w1, b1, wdw, bdw, w2, b2 = params
    B, Cin, H, W = x_nchw.shape
    F = w1.shape[1]
    Cout = w2.shape[1]
    HW = H * W
    # NCHW -> NHWC -> (B, H*W, C): channels on lanes, spatial on sublanes.
    # TODO(synk): if the surrounding model kept NHWC these two wrapper
    # transposes (extra HBM passes) would disappear.
    x = jnp.transpose(x_nchw, (0, 2, 3, 1)).astype(jnp.float32)
    x = x.reshape(B, HW, Cin)

    out = pl.pallas_call(
        _make_kernel(H, W, F, exact_gelu),
        out_shape=jax.ShapeDtypeStruct((B, HW, Cout), jnp.float32),
        grid_spec=pltpu.PrefetchScalarGridSpec(
            num_scalar_prefetch=0,
            grid=(B,),
            in_specs=[
                pl.BlockSpec((1, HW, Cin), lambda b: (b, 0, 0)),   # x
                pl.BlockSpec((Cin, F), lambda b: (0, 0)),          # conv1 W
                pl.BlockSpec((1, F), lambda b: (0, 0)),            # conv1 b
                pl.BlockSpec((3, 3, F), lambda b: (0, 0, 0)),      # depthwise W
                pl.BlockSpec((1, F), lambda b: (0, 0)),            # depthwise b
                pl.BlockSpec((F, Cout), lambda b: (0, 0)),         # conv2 W
                pl.BlockSpec((1, Cout), lambda b: (0, 0)),         # conv2 b
            ],
            out_specs=pl.BlockSpec((1, HW, Cout), lambda b: (b, 0, 0)),
            scratch_shapes=[pltpu.VMEM((H + 2, W + 2, F), jnp.float32)],
        ),
        # Batch elements are independent -> allow megacore sharding (v7x).
        compiler_params=pltpu.CompilerParams(
            dimension_semantics=("parallel",)),
    )(x, w1, b1, wdw, bdw, w2, b2)
    out = out.reshape(B, H, W, Cout)
    return jnp.transpose(out, (0, 3, 1, 2))                          # NCHW


def init_params(key, d_model, dff):
    """Deterministic init with PyTorch Conv2d-style uniform bounds."""
    k1, k2, k3, k4, k5, k6 = jax.random.split(key, 6)
    s1 = 1.0 / np.sqrt(d_model)          # conv1 fan_in = d_model * 1 * 1
    s2 = 1.0 / np.sqrt(9.0)              # depthwise fan_in = 1 * 3 * 3
    s3 = 1.0 / np.sqrt(dff)              # conv2 fan_in = dff * 1 * 1
    w1 = jax.random.uniform(k1, (d_model, dff), jnp.float32, -s1, s1)
    b1 = jax.random.uniform(k2, (1, dff), jnp.float32, -s1, s1)
    wdw = jax.random.uniform(k3, (3, 3, dff), jnp.float32, -s2, s2)
    bdw = jax.random.uniform(k4, (1, dff), jnp.float32, -s2, s2)
    w2 = jax.random.uniform(k5, (dff, d_model), jnp.float32, -s3, s3)
    b2 = jax.random.uniform(k6, (1, d_model), jnp.float32, -s3, s3)
    return (w1, b1, wdw, bdw, w2, b2)


def ref_forward(x_nchw, params, exact_gelu=True):
    """Pure-JAX reference (same math, plain XLA ops) for the sanity check."""
    w1, b1, wdw, bdw, w2, b2 = params
    x = jnp.transpose(x_nchw, (0, 2, 3, 1)).astype(jnp.float32)
    B, H, W, _ = x.shape
    h1 = _gelu(jnp.einsum('bhwc,cf->bhwf', x, w1) + b1[0], exact_gelu)
    p = jnp.pad(h1, ((0, 0), (1, 1), (1, 1), (0, 0)))
    acc = jnp.zeros_like(h1)
    for dy in range(3):
        for dx in range(3):
            acc = acc + p[:, dy:dy + H, dx:dx + W, :] * wdw[dy, dx]
    h2 = _gelu(acc + bdw[0], exact_gelu)
    out = jnp.einsum('bhwf,fc->bhwc', h2, w2) + b2[0]
    return jnp.transpose(out, (0, 3, 1, 2))


if __name__ == "__main__":
    B, d_model, dff, H, W = 2, 8, 16, 16, 16
    key = jax.random.PRNGKey(0)
    kx, kp = jax.random.split(key)
    x = jax.random.normal(kx, (B, d_model, H, W), jnp.float32)  # NCHW (PyTorch)
    params = init_params(kp, d_model, dff)

    exact = True
    try:
        y = jax.block_until_ready(pwsep_forward(x, params, exact_gelu=True))
    except Exception as e:
        # TODO(synk): erf-based (exact) GELU failed to lower on this backend;
        # surfacing the fallback (tanh-approximate GELU) instead of hiding it.
        print("WARNING: exact erf GELU failed to lower (%r); using "
              "tanh-approximate GELU." % (e,), file=sys.stderr)
        exact = False
        y = jax.block_until_ready(pwsep_forward(x, params, exact_gelu=False))

    y_ref = ref_forward(x, params, exact_gelu=exact)
    np.testing.assert_allclose(np.asarray(y), np.asarray(y_ref),
                               rtol=1e-3, atol=1e-3)
    assert y.shape == (B, d_model, H, W)
    print("KERNEL_OK")
</pallas_src>

<mosaic_0001>
module attributes {stable_mosaic.version = 11 : i64} {
  func.func @kernel(%arg0: i32, %arg1: memref<1x256x8xf32, #tpu.memory_space<vmem>>, %arg2: memref<8x16xf32, #tpu.memory_space<vmem>>, %arg3: memref<1x16xf32, #tpu.memory_space<vmem>>, %arg4: memref<3x3x16xf32, #tpu.memory_space<vmem>>, %arg5: memref<1x16xf32, #tpu.memory_space<vmem>>, %arg6: memref<16x8xf32, #tpu.memory_space<vmem>>, %arg7: memref<1x8xf32, #tpu.memory_space<vmem>>, %arg8: memref<1x256x8xf32, #tpu.memory_space<vmem>>, %arg9: memref<18x18x16xf32, #tpu.memory_space<vmem>>) attributes {dimension_semantics = [#tpu.dimension_semantics<parallel>], iteration_bounds = array<i64: 2>, scalar_prefetch = 0 : i64, scratch_operands = 1 : i64, tpu.core_type = #tpu.core_type<tc>, window_params = [{transform_indices = @transform_0, window_bounds = array<i64: 1, 256, 8>}, {pipeline_mode = #tpu.pipeline_mode<synchronous>, transform_indices = @transform_1, window_bounds = array<i64: 8, 16>}, {pipeline_mode = #tpu.pipeline_mode<synchronous>, transform_indices = @transform_2, window_bounds = array<i64: 1, 16>}, {pipeline_mode = #tpu.pipeline_mode<synchronous>, transform_indices = @transform_3, window_bounds = array<i64: 3, 3, 16>}, {pipeline_mode = #tpu.pipeline_mode<synchronous>, transform_indices = @transform_4, window_bounds = array<i64: 1, 16>}, {pipeline_mode = #tpu.pipeline_mode<synchronous>, transform_indices = @transform_5, window_bounds = array<i64: 16, 8>}, {pipeline_mode = #tpu.pipeline_mode<synchronous>, transform_indices = @transform_6, window_bounds = array<i64: 1, 8>}, {transform_indices = @transform_7, window_bounds = array<i64: 1, 256, 8>}]} {
    %c0 = arith.constant 0 : index
    %c0_0 = arith.constant 0 : index
    %0 = vector.load %arg2[%c0, %c0_0] : memref<8x16xf32, #tpu.memory_space<vmem>>, vector<8x16xf32>
    %c0_1 = arith.constant 0 : index
    %c0_2 = arith.constant 0 : index
    %1 = vector.load %arg3[%c0_1, %c0_2] : memref<1x16xf32, #tpu.memory_space<vmem>>, vector<1x16xf32>
    %c0_3 = arith.constant 0 : index
    %c0_4 = arith.constant 0 : index
    %2 = vector.load %arg5[%c0_3, %c0_4] : memref<1x16xf32, #tpu.memory_space<vmem>>, vector<1x16xf32>
    %c0_5 = arith.constant 0 : index
    %c0_6 = arith.constant 0 : index
    %3 = vector.load %arg6[%c0_5, %c0_6] : memref<16x8xf32, #tpu.memory_space<vmem>>, vector<16x8xf32>
    %c0_7 = arith.constant 0 : index
    %c0_8 = arith.constant 0 : index
    %4 = vector.load %arg7[%c0_7, %c0_8] : memref<1x8xf32, #tpu.memory_space<vmem>>, vector<1x8xf32>
    %cst = arith.constant 0.000000e+00 : f32
    %5 = vector.broadcast %cst : f32 to vector<18x16xf32>
    %c0_9 = arith.constant 0 : index
    %c0_10 = arith.constant 0 : index
    %c0_11 = arith.constant 0 : index
    %6 = vector.load %arg9[%c0_9, %c0_10, %c0_11] : memref<18x18x16xf32, #tpu.memory_space<vmem>>, vector<1x18x16xf32>
    %7 = vector.shape_cast %6 : vector<1x18x16xf32> to vector<18x16xf32>
    %8 = vector.shape_cast %5 : vector<18x16xf32> to vector<1x18x16xf32>
    tpu.vector_store %arg9[%c0_9, %c0_10, %c0_11], %8 {strides = array<i32>} : memref<18x18x16xf32, #tpu.memory_space<vmem>>, vector<1x18x16xf32>,
    %c17 = arith.constant 17 : index
    %c0_12 = arith.constant 0 : index
    %c0_13 = arith.constant 0 : index
    %9 = vector.load %arg9[%c17, %c0_12, %c0_13] : memref<18x18x16xf32, #tpu.memory_space<vmem>>, vector<1x18x16xf32>
    %10 = vector.shape_cast %9 : vector<1x18x16xf32> to vector<18x16xf32>
    %11 = vector.shape_cast %5 : vector<18x16xf32> to vector<1x18x16xf32>
    tpu.vector_store %arg9[%c17, %c0_12, %c0_13], %11 {strides = array<i32>} : memref<18x18x16xf32, #tpu.memory_space<vmem>>, vector<1x18x16xf32>,
    %cst_14 = arith.constant 0.000000e+00 : f32
    %12 = vector.broadcast %cst_14 : f32 to vector<16x1x16xf32>
    %c1 = arith.constant 1 : index
    %c0_15 = arith.constant 0 : index
    %c0_16 = arith.constant 0 : index
    %13 = vector.load %arg9[%c1, %c0_15, %c0_16] : memref<18x18x16xf32, #tpu.memory_space<vmem>>, vector<16x1x16xf32>
    tpu.vector_store %arg9[%c1, %c0_15, %c0_16], %12 {strides = array<i32>} : memref<18x18x16xf32, #tpu.memory_space<vmem>>, vector<16x1x16xf32>,
    %c1_17 = arith.constant 1 : index
    %c17_18 = arith.constant 17 : index
    %c0_19 = arith.constant 0 : index
    %14 = vector.load %arg9[%c1_17, %c17_18, %c0_19] : memref<18x18x16xf32, #tpu.memory_space<vmem>>, vector<16x1x16xf32>
    tpu.vector_store %arg9[%c1_17, %c17_18, %c0_19], %12 {strides = array<i32>} : memref<18x18x16xf32, #tpu.memory_space<vmem>>, vector<16x1x16xf32>,
    %c0_20 = arith.constant 0 : index
    %c0_21 = arith.constant 0 : index
    %c0_22 = arith.constant 0 : index
    %15 = vector.load %arg1[%c0_20, %c0_21, %c0_22] : memref<1x256x8xf32, #tpu.memory_space<vmem>>, vector<1x256x8xf32>
    %16 = vector.shape_cast %15 : vector<1x256x8xf32> to vector<256x8xf32>
    %cst_23 = arith.constant dense<0.000000e+00> : vector<256x16xf32>
    %17 = tpu.matmul %16, %0, %cst_23 {dimension_numbers = #tpu.dot_dimension_numbers<[1], [0], [0], [1], [0, 0, 1, 1], [], []>} : vector<256x8xf32>, vector<8x16xf32>, vector<256x16xf32> -> vector<256x16xf32>
    %18 = vector.broadcast %1 : vector<1x16xf32> to vector<256x16xf32>
    %19 = arith.addf %17, %18 : vector<256x16xf32>
    %cst_24 = arith.constant 5.000000e-01 : f32
    %20 = vector.broadcast %cst_24 : f32 to vector<256x16xf32>
    %21 = arith.mulf %20, %19 : vector<256x16xf32>
    %cst_25 = arith.constant 0.707106769 : f32
    %22 = vector.broadcast %cst_25 : f32 to vector<256x16xf32>
    %23 = arith.mulf %19, %22 : vector<256x16xf32>
    %24 = math.erf %23 : vector<256x16xf32>
    %cst_26 = arith.constant 1.000000e+00 : f32
    %25 = vector.broadcast %cst_26 : f32 to vector<256x16xf32>
    %26 = arith.addf %25, %24 : vector<256x16xf32>
    %27 = arith.mulf %21, %26 : vector<256x16xf32>
    %28 = vector.shape_cast %27 : vector<256x16xf32> to vector<16x16x16xf32>
    %c1_27 = arith.constant 1 : index
    %c1_28 = arith.constant 1 : index
    %c0_29 = arith.constant 0 : index
    %29 = vector.load %arg9[%c1_27, %c1_28, %c0_29] : memref<18x18x16xf32, #tpu.memory_space<vmem>>, vector<16x16x16xf32>
    tpu.vector_store %arg9[%c1_27, %c1_28, %c0_29], %28 {strides = array<i32>} : memref<18x18x16xf32, #tpu.memory_space<vmem>>, vector<16x16x16xf32>,
    %c0_30 = arith.constant 0 : index
    %c0_31 = arith.constant 0 : index
    %c0_32 = arith.constant 0 : index
    %30 = vector.load %arg9[%c0_30, %c0_31, %c0_32] : memref<18x18x16xf32, #tpu.memory_space<vmem>>, vector<16x16x16xf32>
    %c0_33 = arith.constant 0 : index
    %c0_34 = arith.constant 0 : index
    %c0_35 = arith.constant 0 : index
    %31 = vector.load %arg4[%c0_33, %c0_34, %c0_35] : memref<3x3x16xf32, #tpu.memory_space<vmem>>, vector<1x1x16xf32>
    %32 = vector.shape_cast %31 : vector<1x1x16xf32> to vector<16xf32>
    %33 = vector.shape_cast %32 : vector<16xf32> to vector<1x1x16xf32>
    %34 = vector.broadcast %33 : vector<1x1x16xf32> to vector<16x16x16xf32>
    %35 = arith.mulf %30, %34 : vector<16x16x16xf32>
    %c0_36 = arith.constant 0 : index
    %c1_37 = arith.constant 1 : index
    %c0_38 = arith.constant 0 : index
    %36 = vector.load %arg9[%c0_36, %c1_37, %c0_38] : memref<18x18x16xf32, #tpu.memory_space<vmem>>, vector<16x16x16xf32>
    %c0_39 = arith.constant 0 : index
    %c1_40 = arith.constant 1 : index
    %c0_41 = arith.constant 0 : index
    %37 = vector.load %arg4[%c0_39, %c1_40, %c0_41] : memref<3x3x16xf32, #tpu.memory_space<vmem>>, vector<1x1x16xf32>
    %38 = vector.shape_cast %37 : vector<1x1x16xf32> to vector<16xf32>
    %39 = vector.shape_cast %38 : vector<16xf32> to vector<1x1x16xf32>
    %40 = vector.broadcast %39 : vector<1x1x16xf32> to vector<16x16x16xf32>
    %41 = arith.mulf %36, %40 : vector<16x16x16xf32>
    %42 = arith.addf %35, %41 : vector<16x16x16xf32>
    %c0_42 = arith.constant 0 : index
    %c2 = arith.constant 2 : index
    %c0_43 = arith.constant 0 : index
    %43 = vector.load %arg9[%c0_42, %c2, %c0_43] : memref<18x18x16xf32, #tpu.memory_space<vmem>>, vector<16x16x16xf32>
    %c0_44 = arith.constant 0 : index
    %c2_45 = arith.constant 2 : index
    %c0_46 = arith.constant 0 : index
    %44 = vector.load %arg4[%c0_44, %c2_45, %c0_46] : memref<3x3x16xf32, #tpu.memory_space<vmem>>, vector<1x1x16xf32>
    %45 = vector.shape_cast %44 : vector<1x1x16xf32> to vector<16xf32>
    %46 = vector.shape_cast %45 : vector<16xf32> to vector<1x1x16xf32>
    %47 = vector.broadcast %46 : vector<1x1x16xf32> to vector<16x16x16xf32>
    %48 = arith.mulf %43, %47 : vector<16x16x16xf32>
    %49 = arith.addf %42, %48 : vector<16x16x16xf32>
    %c1_47 = arith.constant 1 : index
    %c0_48 = arith.constant 0 : index
    %c0_49 = arith.constant 0 : index
    %50 = vector.load %arg9[%c1_47, %c0_48, %c0_49] : memref<18x18x16xf32, #tpu.memory_space<vmem>>, vector<16x16x16xf32>
    %c1_50 = arith.constant 1 : index
    %c0_51 = arith.constant 0 : index
    %c0_52 = arith.constant 0 : index
    %51 = vector.load %arg4[%c1_50, %c0_51, %c0_52] : memref<3x3x16xf32, #tpu.memory_space<vmem>>, vector<1x1x16xf32>
    %52 = vector.shape_cast %51 : vector<1x1x16xf32> to vector<16xf32>
    %53 = vector.shape_cast %52 : vector<16xf32> to vector<1x1x16xf32>
    %54 = vector.broadcast %53 : vector<1x1x16xf32> to vector<16x16x16xf32>
    %55 = arith.mulf %50, %54 : vector<16x16x16xf32>
    %56 = arith.addf %49, %55 : vector<16x16x16xf32>
    %c1_53 = arith.constant 1 : index
    %c1_54 = arith.constant 1 : index
    %c0_55 = arith.constant 0 : index
    %57 = vector.load %arg9[%c1_53, %c1_54, %c0_55] : memref<18x18x16xf32, #tpu.memory_space<vmem>>, vector<16x16x16xf32>
    %c1_56 = arith.constant 1 : index
    %c1_57 = arith.constant 1 : index
    %c0_58 = arith.constant 0 : index
    %58 = vector.load %arg4[%c1_56, %c1_57, %c0_58] : memref<3x3x16xf32, #tpu.memory_space<vmem>>, vector<1x1x16xf32>
    %59 = vector.shape_cast %58 : vector<1x1x16xf32> to vector<16xf32>
    %60 = vector.shape_cast %59 : vector<16xf32> to vector<1x1x16xf32>
    %61 = vector.broadcast %60 : vector<1x1x16xf32> to vector<16x16x16xf32>
    %62 = arith.mulf %57, %61 : vector<16x16x16xf32>
    %63 = arith.addf %56, %62 : vector<16x16x16xf32>
    %c1_59 = arith.constant 1 : index
    %c2_60 = arith.constant 2 : index
    %c0_61 = arith.constant 0 : index
    %64 = vector.load %arg9[%c1_59, %c2_60, %c0_61] : memref<18x18x16xf32, #tpu.memory_space<vmem>>, vector<16x16x16xf32>
    %c1_62 = arith.constant 1 : index
    %c2_63 = arith.constant 2 : index
    %c0_64 = arith.constant 0 : index
    %65 = vector.load %arg4[%c1_62, %c2_63, %c0_64] : memref<3x3x16xf32, #tpu.memory_space<vmem>>, vector<1x1x16xf32>
    %66 = vector.shape_cast %65 : vector<1x1x16xf32> to vector<16xf32>
    %67 = vector.shape_cast %66 : vector<16xf32> to vector<1x1x16xf32>
    %68 = vector.broadcast %67 : vector<1x1x16xf32> to vector<16x16x16xf32>
    %69 = arith.mulf %64, %68 : vector<16x16x16xf32>
    %70 = arith.addf %63, %69 : vector<16x16x16xf32>
    %c2_65 = arith.constant 2 : index
    %c0_66 = arith.constant 0 : index
    %c0_67 = arith.constant 0 : index
    %71 = vector.load %arg9[%c2_65, %c0_66, %c0_67] : memref<18x18x16xf32, #tpu.memory_space<vmem>>, vector<16x16x16xf32>
    %c2_68 = arith.constant 2 : index
    %c0_69 = arith.constant 0 : index
    %c0_70 = arith.constant 0 : index
    %72 = vector.load %arg4[%c2_68, %c0_69, %c0_70] : memref<3x3x16xf32, #tpu.memory_space<vmem>>, vector<1x1x16xf32>
    %73 = vector.shape_cast %72 : vector<1x1x16xf32> to vector<16xf32>
    %74 = vector.shape_cast %73 : vector<16xf32> to vector<1x1x16xf32>
    %75 = vector.broadcast %74 : vector<1x1x16xf32> to vector<16x16x16xf32>
    %76 = arith.mulf %71, %75 : vector<16x16x16xf32>
    %77 = arith.addf %70, %76 : vector<16x16x16xf32>
    %c2_71 = arith.constant 2 : index
    %c1_72 = arith.constant 1 : index
    %c0_73 = arith.constant 0 : index
    %78 = vector.load %arg9[%c2_71, %c1_72, %c0_73] : memref<18x18x16xf32, #tpu.memory_space<vmem>>, vector<16x16x16xf32>
    %c2_74 = arith.constant 2 : index
    %c1_75 = arith.constant 1 : index
    %c0_76 = arith.constant 0 : index
    %79 = vector.load %arg4[%c2_74, %c1_75, %c0_76] : memref<3x3x16xf32, #tpu.memory_space<vmem>>, vector<1x1x16xf32>
    %80 = vector.shape_cast %79 : vector<1x1x16xf32> to vector<16xf32>
    %81 = vector.shape_cast %80 : vector<16xf32> to vector<1x1x16xf32>
    %82 = vector.broadcast %81 : vector<1x1x16xf32> to vector<16x16x16xf32>
    %83 = arith.mulf %78, %82 : vector<16x16x16xf32>
    %84 = arith.addf %77, %83 : vector<16x16x16xf32>
    %c2_77 = arith.constant 2 : index
    %c2_78 = arith.constant 2 : index
    %c0_79 = arith.constant 0 : index
    %85 = vector.load %arg9[%c2_77, %c2_78, %c0_79] : memref<18x18x16xf32, #tpu.memory_space<vmem>>, vector<16x16x16xf32>
    %c2_80 = arith.constant 2 : index
    %c2_81 = arith.constant 2 : index
    %c0_82 = arith.constant 0 : index
    %86 = vector.load %arg4[%c2_80, %c2_81, %c0_82] : memref<3x3x16xf32, #tpu.memory_space<vmem>>, vector<1x1x16xf32>
    %87 = vector.shape_cast %86 : vector<1x1x16xf32> to vector<16xf32>
    %88 = vector.shape_cast %87 : vector<16xf32> to vector<1x1x16xf32>
    %89 = vector.broadcast %88 : vector<1x1x16xf32> to vector<16x16x16xf32>
    %90 = arith.mulf %85, %89 : vector<16x16x16xf32>
    %91 = arith.addf %84, %90 : vector<16x16x16xf32>
    %92 = vector.shape_cast %2 : vector<1x16xf32> to vector<1x1x16xf32>
    %93 = vector.broadcast %92 : vector<1x1x16xf32> to vector<16x16x16xf32>
    %94 = arith.addf %91, %93 : vector<16x16x16xf32>
    %cst_83 = arith.constant 5.000000e-01 : f32
    %95 = vector.broadcast %cst_83 : f32 to vector<16x16x16xf32>
    %96 = arith.mulf %95, %94 : vector<16x16x16xf32>
    %cst_84 = arith.constant 0.707106769 : f32
    %97 = vector.broadcast %cst_84 : f32 to vector<16x16x16xf32>
    %98 = arith.mulf %94, %97 : vector<16x16x16xf32>
    %99 = math.erf %98 : vector<16x16x16xf32>
    %cst_85 = arith.constant 1.000000e+00 : f32
    %100 = vector.broadcast %cst_85 : f32 to vector<16x16x16xf32>
    %101 = arith.addf %100, %99 : vector<16x16x16xf32>
    %102 = arith.mulf %96, %101 : vector<16x16x16xf32>
    %103 = vector.shape_cast %102 : vector<16x16x16xf32> to vector<256x16xf32>
    %cst_86 = arith.constant dense<0.000000e+00> : vector<256x8xf32>
    %104 = tpu.matmul %103, %3, %cst_86 {dimension_numbers = #tpu.dot_dimension_numbers<[1], [0], [0], [1], [0, 0, 1, 1], [], []>} : vector<256x16xf32>, vector<16x8xf32>, vector<256x8xf32> -> vector<256x8xf32>
    %105 = vector.broadcast %4 : vector<1x8xf32> to vector<256x8xf32>
    %106 = arith.addf %104, %105 : vector<256x8xf32>
    %c0_87 = arith.constant 0 : index
    %c0_88 = arith.constant 0 : index
    %c0_89 = arith.constant 0 : index
    %107 = vector.load %arg8[%c0_87, %c0_88, %c0_89] : memref<1x256x8xf32, #tpu.memory_space<vmem>>, vector<1x256x8xf32>
    %108 = vector.shape_cast %107 : vector<1x256x8xf32> to vector<256x8xf32>
    %109 = vector.shape_cast %106 : vector<256x8xf32> to vector<1x256x8xf32>
    tpu.vector_store %arg8[%c0_87, %c0_88, %c0_89], %109 {strides = array<i32>} : memref<1x256x8xf32, #tpu.memory_space<vmem>>, vector<1x256x8xf32>,
    return
  }
  func.func @transform_0(%arg0: i32) -> (i32, i32, i32) {
    %c0_i32 = arith.constant 0 : i32
    %c0_i32_0 = arith.constant 0 : i32
    %c0_i32_1 = arith.constant 0 : i32
    return %arg0, %c0_i32, %c0_i32_0 : i32, i32, i32
  }
  func.func @transform_1(%arg0: i32) -> (i32, i32) {
    %c0_i32 = arith.constant 0 : i32
    %c0_i32_0 = arith.constant 0 : i32
    %c0_i32_1 = arith.constant 0 : i32
    return %c0_i32, %c0_i32_0 : i32, i32
  }
  func.func @transform_2(%arg0: i32) -> (i32, i32) {
    %c0_i32 = arith.constant 0 : i32
    %c0_i32_0 = arith.constant 0 : i32
    %c0_i32_1 = arith.constant 0 : i32
    return %c0_i32, %c0_i32_0 : i32, i32
  }
  func.func @transform_3(%arg0: i32) -> (i32, i32, i32) {
    %c0_i32 = arith.constant 0 : i32
    %c0_i32_0 = arith.constant 0 : i32
    %c0_i32_1 = arith.constant 0 : i32
    %c0_i32_2 = arith.constant 0 : i32
    return %c0_i32, %c0_i32_0, %c0_i32_1 : i32, i32, i32
  }
  func.func @transform_4(%arg0: i32) -> (i32, i32) {
    %c0_i32 = arith.constant 0 : i32
    %c0_i32_0 = arith.constant 0 : i32
    %c0_i32_1 = arith.constant 0 : i32
    return %c0_i32, %c0_i32_0 : i32, i32
  }
  func.func @transform_5(%arg0: i32) -> (i32, i32) {
    %c0_i32 = arith.constant 0 : i32
    %c0_i32_0 = arith.constant 0 : i32
    %c0_i32_1 = arith.constant 0 : i32
    return %c0_i32, %c0_i32_0 : i32, i32
  }
  func.func @transform_6(%arg0: i32) -> (i32, i32) {
    %c0_i32 = arith.constant 0 : i32
    %c0_i32_0 = arith.constant 0 : i32
    %c0_i32_1 = arith.constant 0 : i32
    return %c0_i32, %c0_i32_0 : i32, i32
  }
  func.func @transform_7(%arg0: i32) -> (i32, i32, i32) {
    %c0_i32 = arith.constant 0 : i32
    %c0_i32_0 = arith.constant 0 : i32
    %c0_i32_1 = arith.constant 0 : i32
    return %arg0, %c0_i32, %c0_i32_0 : i32, i32, i32
  }
}

module attributes {stable_mosaic.version = 11 : i64} {
  func.func @kernel(%arg0: i32, %arg1: memref<1x256x8xf32, #tpu.memory_space<vmem>>, %arg2: memref<8x16xf32, #tpu.memory_space<vmem>>, %arg3: memref<1x16xf32, #tpu.memory_space<vmem>>, %arg4: memref<3x3x16xf32, #tpu.memory_space<vmem>>, %arg5: memref<1x16xf32, #tpu.memory_space<vmem>>, %arg6: memref<16x8xf32, #tpu.memory_space<vmem>>, %arg7: memref<1x8xf32, #tpu.memory_space<vmem>>, %arg8: memref<1x256x8xf32, #tpu.memory_space<vmem>>, %arg9: memref<18x18x16xf32, #tpu.memory_space<vmem>>) attributes {dimension_semantics = [#tpu.dimension_semantics<parallel>], iteration_bounds = array<i64: 2>, scalar_prefetch = 0 : i64, scratch_operands = 1 : i64, tpu.core_type = #tpu.core_type<tc>, window_params = [{transform_indices = @transform_0, window_bounds = array<i64: 1, 256, 8>}, {pipeline_mode = #tpu.pipeline_mode<synchronous>, transform_indices = @transform_1, window_bounds = array<i64: 8, 16>}, {pipeline_mode = #tpu.pipeline_mode<synchronous>, transform_indices = @transform_2, window_bounds = array<i64: 1, 16>}, {pipeline_mode = #tpu.pipeline_mode<synchronous>, transform_indices = @transform_3, window_bounds = array<i64: 3, 3, 16>}, {pipeline_mode = #tpu.pipeline_mode<synchronous>, transform_indices = @transform_4, window_bounds = array<i64: 1, 16>}, {pipeline_mode = #tpu.pipeline_mode<synchronous>, transform_indices = @transform_5, window_bounds = array<i64: 16, 8>}, {pipeline_mode = #tpu.pipeline_mode<synchronous>, transform_indices = @transform_6, window_bounds = array<i64: 1, 8>}, {transform_indices = @transform_7, window_bounds = array<i64: 1, 256, 8>}]} {
    %c0 = arith.constant 0 : index
    %c0_0 = arith.constant 0 : index
    %0 = vector.load %arg2[%c0, %c0_0] : memref<8x16xf32, #tpu.memory_space<vmem>>, vector<8x16xf32>
    %c0_1 = arith.constant 0 : index
    %c0_2 = arith.constant 0 : index
    %1 = vector.load %arg3[%c0_1, %c0_2] : memref<1x16xf32, #tpu.memory_space<vmem>>, vector<1x16xf32>
    %c0_3 = arith.constant 0 : index
    %c0_4 = arith.constant 0 : index
    %2 = vector.load %arg5[%c0_3, %c0_4] : memref<1x16xf32, #tpu.memory_space<vmem>>, vector<1x16xf32>
    %c0_5 = arith.constant 0 : index
    %c0_6 = arith.constant 0 : index
    %3 = vector.load %arg6[%c0_5, %c0_6] : memref<16x8xf32, #tpu.memory_space<vmem>>, vector<16x8xf32>
    %c0_7 = arith.constant 0 : index
    %c0_8 = arith.constant 0 : index
    %4 = vector.load %arg7[%c0_7, %c0_8] : memref<1x8xf32, #tpu.memory_space<vmem>>, vector<1x8xf32>
    %cst = arith.constant 0.000000e+00 : f32
    %5 = vector.broadcast %cst : f32 to vector<18x16xf32>
    %c0_9 = arith.constant 0 : index
    %c0_10 = arith.constant 0 : index
    %c0_11 = arith.constant 0 : index
    %6 = vector.load %arg9[%c0_9, %c0_10, %c0_11] : memref<18x18x16xf32, #tpu.memory_space<vmem>>, vector<1x18x16xf32>
    %7 = vector.shape_cast %6 : vector<1x18x16xf32> to vector<18x16xf32>
    %8 = vector.shape_cast %5 : vector<18x16xf32> to vector<1x18x16xf32>
    tpu.vector_store %arg9[%c0_9, %c0_10, %c0_11], %8 {strides = array<i32>} : memref<18x18x16xf32, #tpu.memory_space<vmem>>, vector<1x18x16xf32>,
    %c17 = arith.constant 17 : index
    %c0_12 = arith.constant 0 : index
    %c0_13 = arith.constant 0 : index
    %9 = vector.load %arg9[%c17, %c0_12, %c0_13] : memref<18x18x16xf32, #tpu.memory_space<vmem>>, vector<1x18x16xf32>
    %10 = vector.shape_cast %9 : vector<1x18x16xf32> to vector<18x16xf32>
    %11 = vector.shape_cast %5 : vector<18x16xf32> to vector<1x18x16xf32>
    tpu.vector_store %arg9[%c17, %c0_12, %c0_13], %11 {strides = array<i32>} : memref<18x18x16xf32, #tpu.memory_space<vmem>>, vector<1x18x16xf32>,
    %cst_14 = arith.constant 0.000000e+00 : f32
    %12 = vector.broadcast %cst_14 : f32 to vector<16x1x16xf32>
    %c1 = arith.constant 1 : index
    %c0_15 = arith.constant 0 : index
    %c0_16 = arith.constant 0 : index
    %13 = vector.load %arg9[%c1, %c0_15, %c0_16] : memref<18x18x16xf32, #tpu.memory_space<vmem>>, vector<16x1x16xf32>
    tpu.vector_store %arg9[%c1, %c0_15, %c0_16], %12 {strides = array<i32>} : memref<18x18x16xf32, #tpu.memory_space<vmem>>, vector<16x1x16xf32>,
    %c1_17 = arith.constant 1 : index
    %c17_18 = arith.constant 17 : index
    %c0_19 = arith.constant 0 : index
    %14 = vector.load %arg9[%c1_17, %c17_18, %c0_19] : memref<18x18x16xf32, #tpu.memory_space<vmem>>, vector<16x1x16xf32>
    tpu.vector_store %arg9[%c1_17, %c17_18, %c0_19], %12 {strides = array<i32>} : memref<18x18x16xf32, #tpu.memory_space<vmem>>, vector<16x1x16xf32>,
    %c0_20 = arith.constant 0 : index
    %c0_21 = arith.constant 0 : index
    %c0_22 = arith.constant 0 : index
    %15 = vector.load %arg1[%c0_20, %c0_21, %c0_22] : memref<1x256x8xf32, #tpu.memory_space<vmem>>, vector<1x256x8xf32>
    %16 = vector.shape_cast %15 : vector<1x256x8xf32> to vector<256x8xf32>
    %cst_23 = arith.constant dense<0.000000e+00> : vector<256x16xf32>
    %17 = tpu.matmul %16, %0, %cst_23 {dimension_numbers = #tpu.dot_dimension_numbers<[1], [0], [0], [1], [0, 0, 1, 1], [], []>} : vector<256x8xf32>, vector<8x16xf32>, vector<256x16xf32> -> vector<256x16xf32>
    %18 = vector.broadcast %1 : vector<1x16xf32> to vector<256x16xf32>
    %19 = arith.addf %17, %18 : vector<256x16xf32>
    %20 = arith.mulf %19, %19 : vector<256x16xf32>
    %21 = arith.mulf %19, %20 : vector<256x16xf32>
    %cst_24 = arith.constant 4.471500e-02 : f32
    %22 = vector.broadcast %cst_24 : f32 to vector<256x16xf32>
    %23 = arith.mulf %22, %21 : vector<256x16xf32>
    %24 = arith.addf %19, %23 : vector<256x16xf32>
    %cst_25 = arith.constant 0.797884583 : f32
    %25 = vector.broadcast %cst_25 : f32 to vector<256x16xf32>
    %26 = arith.mulf %25, %24 : vector<256x16xf32>
    %27 = math.tanh %26 : vector<256x16xf32>
    %cst_26 = arith.constant 1.000000e+00 : f32
    %28 = vector.broadcast %cst_26 : f32 to vector<256x16xf32>
    %29 = arith.addf %28, %27 : vector<256x16xf32>
    %cst_27 = arith.constant 5.000000e-01 : f32
    %30 = vector.broadcast %cst_27 : f32 to vector<256x16xf32>
    %31 = arith.mulf %30, %29 : vector<256x16xf32>
    %32 = arith.mulf %19, %31 : vector<256x16xf32>
    %33 = vector.shape_cast %32 : vector<256x16xf32> to vector<16x16x16xf32>
    %c1_28 = arith.constant 1 : index
    %c1_29 = arith.constant 1 : index
    %c0_30 = arith.constant 0 : index
    %34 = vector.load %arg9[%c1_28, %c1_29, %c0_30] : memref<18x18x16xf32, #tpu.memory_space<vmem>>, vector<16x16x16xf32>
    tpu.vector_store %arg9[%c1_28, %c1_29, %c0_30], %33 {strides = array<i32>} : memref<18x18x16xf32, #tpu.memory_space<vmem>>, vector<16x16x16xf32>,
    %c0_31 = arith.constant 0 : index
    %c0_32 = arith.constant 0 : index
    %c0_33 = arith.constant 0 : index
    %35 = vector.load %arg9[%c0_31, %c0_32, %c0_33] : memref<18x18x16xf32, #tpu.memory_space<vmem>>, vector<16x16x16xf32>
    %c0_34 = arith.constant 0 : index
    %c0_35 = arith.constant 0 : index
    %c0_36 = arith.constant 0 : index
    %36 = vector.load %arg4[%c0_34, %c0_35, %c0_36] : memref<3x3x16xf32, #tpu.memory_space<vmem>>, vector<1x1x16xf32>
    %37 = vector.shape_cast %36 : vector<1x1x16xf32> to vector<16xf32>
    %38 = vector.shape_cast %37 : vector<16xf32> to vector<1x1x16xf32>
    %39 = vector.broadcast %38 : vector<1x1x16xf32> to vector<16x16x16xf32>
    %40 = arith.mulf %35, %39 : vector<16x16x16xf32>
    %c0_37 = arith.constant 0 : index
    %c1_38 = arith.constant 1 : index
    %c0_39 = arith.constant 0 : index
    %41 = vector.load %arg9[%c0_37, %c1_38, %c0_39] : memref<18x18x16xf32, #tpu.memory_space<vmem>>, vector<16x16x16xf32>
    %c0_40 = arith.constant 0 : index
    %c1_41 = arith.constant 1 : index
    %c0_42 = arith.constant 0 : index
    %42 = vector.load %arg4[%c0_40, %c1_41, %c0_42] : memref<3x3x16xf32, #tpu.memory_space<vmem>>, vector<1x1x16xf32>
    %43 = vector.shape_cast %42 : vector<1x1x16xf32> to vector<16xf32>
    %44 = vector.shape_cast %43 : vector<16xf32> to vector<1x1x16xf32>
    %45 = vector.broadcast %44 : vector<1x1x16xf32> to vector<16x16x16xf32>
    %46 = arith.mulf %41, %45 : vector<16x16x16xf32>
    %47 = arith.addf %40, %46 : vector<16x16x16xf32>
    %c0_43 = arith.constant 0 : index
    %c2 = arith.constant 2 : index
    %c0_44 = arith.constant 0 : index
    %48 = vector.load %arg9[%c0_43, %c2, %c0_44] : memref<18x18x16xf32, #tpu.memory_space<vmem>>, vector<16x16x16xf32>
    %c0_45 = arith.constant 0 : index
    %c2_46 = arith.constant 2 : index
    %c0_47 = arith.constant 0 : index
    %49 = vector.load %arg4[%c0_45, %c2_46, %c0_47] : memref<3x3x16xf32, #tpu.memory_space<vmem>>, vector<1x1x16xf32>
    %50 = vector.shape_cast %49 : vector<1x1x16xf32> to vector<16xf32>
    %51 = vector.shape_cast %50 : vector<16xf32> to vector<1x1x16xf32>
    %52 = vector.broadcast %51 : vector<1x1x16xf32> to vector<16x16x16xf32>
    %53 = arith.mulf %48, %52 : vector<16x16x16xf32>
    %54 = arith.addf %47, %53 : vector<16x16x16xf32>
    %c1_48 = arith.constant 1 : index
    %c0_49 = arith.constant 0 : index
    %c0_50 = arith.constant 0 : index
    %55 = vector.load %arg9[%c1_48, %c0_49, %c0_50] : memref<18x18x16xf32, #tpu.memory_space<vmem>>, vector<16x16x16xf32>
    %c1_51 = arith.constant 1 : index
    %c0_52 = arith.constant 0 : index
    %c0_53 = arith.constant 0 : index
    %56 = vector.load %arg4[%c1_51, %c0_52, %c0_53] : memref<3x3x16xf32, #tpu.memory_space<vmem>>, vector<1x1x16xf32>
    %57 = vector.shape_cast %56 : vector<1x1x16xf32> to vector<16xf32>
    %58 = vector.shape_cast %57 : vector<16xf32> to vector<1x1x16xf32>
    %59 = vector.broadcast %58 : vector<1x1x16xf32> to vector<16x16x16xf32>
    %60 = arith.mulf %55, %59 : vector<16x16x16xf32>
    %61 = arith.addf %54, %60 : vector<16x16x16xf32>
    %c1_54 = arith.constant 1 : index
    %c1_55 = arith.constant 1 : index
    %c0_56 = arith.constant 0 : index
    %62 = vector.load %arg9[%c1_54, %c1_55, %c0_56] : memref<18x18x16xf32, #tpu.memory_space<vmem>>, vector<16x16x16xf32>
    %c1_57 = arith.constant 1 : index
    %c1_58 = arith.constant 1 : index
    %c0_59 = arith.constant 0 : index
    %63 = vector.load %arg4[%c1_57, %c1_58, %c0_59] : memref<3x3x16xf32, #tpu.memory_space<vmem>>, vector<1x1x16xf32>
    %64 = vector.shape_cast %63 : vector<1x1x16xf32> to vector<16xf32>
    %65 = vector.shape_cast %64 : vector<16xf32> to vector<1x1x16xf32>
    %66 = vector.broadcast %65 : vector<1x1x16xf32> to vector<16x16x16xf32>
    %67 = arith.mulf %62, %66 : vector<16x16x16xf32>
    %68 = arith.addf %61, %67 : vector<16x16x16xf32>
    %c1_60 = arith.constant 1 : index
    %c2_61 = arith.constant 2 : index
    %c0_62 = arith.constant 0 : index
    %69 = vector.load %arg9[%c1_60, %c2_61, %c0_62] : memref<18x18x16xf32, #tpu.memory_space<vmem>>, vector<16x16x16xf32>
    %c1_63 = arith.constant 1 : index
    %c2_64 = arith.constant 2 : index
    %c0_65 = arith.constant 0 : index
    %70 = vector.load %arg4[%c1_63, %c2_64, %c0_65] : memref<3x3x16xf32, #tpu.memory_space<vmem>>, vector<1x1x16xf32>
    %71 = vector.shape_cast %70 : vector<1x1x16xf32> to vector<16xf32>
    %72 = vector.shape_cast %71 : vector<16xf32> to vector<1x1x16xf32>
    %73 = vector.broadcast %72 : vector<1x1x16xf32> to vector<16x16x16xf32>
    %74 = arith.mulf %69, %73 : vector<16x16x16xf32>
    %75 = arith.addf %68, %74 : vector<16x16x16xf32>
    %c2_66 = arith.constant 2 : index
    %c0_67 = arith.constant 0 : index
    %c0_68 = arith.constant 0 : index
    %76 = vector.load %arg9[%c2_66, %c0_67, %c0_68] : memref<18x18x16xf32, #tpu.memory_space<vmem>>, vector<16x16x16xf32>
    %c2_69 = arith.constant 2 : index
    %c0_70 = arith.constant 0 : index
    %c0_71 = arith.constant 0 : index
    %77 = vector.load %arg4[%c2_69, %c0_70, %c0_71] : memref<3x3x16xf32, #tpu.memory_space<vmem>>, vector<1x1x16xf32>
    %78 = vector.shape_cast %77 : vector<1x1x16xf32> to vector<16xf32>
    %79 = vector.shape_cast %78 : vector<16xf32> to vector<1x1x16xf32>
    %80 = vector.broadcast %79 : vector<1x1x16xf32> to vector<16x16x16xf32>
    %81 = arith.mulf %76, %80 : vector<16x16x16xf32>
    %82 = arith.addf %75, %81 : vector<16x16x16xf32>
    %c2_72 = arith.constant 2 : index
    %c1_73 = arith.constant 1 : index
    %c0_74 = arith.constant 0 : index
    %83 = vector.load %arg9[%c2_72, %c1_73, %c0_74] : memref<18x18x16xf32, #tpu.memory_space<vmem>>, vector<16x16x16xf32>
    %c2_75 = arith.constant 2 : index
    %c1_76 = arith.constant 1 : index
    %c0_77 = arith.constant 0 : index
    %84 = vector.load %arg4[%c2_75, %c1_76, %c0_77] : memref<3x3x16xf32, #tpu.memory_space<vmem>>, vector<1x1x16xf32>
    %85 = vector.shape_cast %84 : vector<1x1x16xf32> to vector<16xf32>
    %86 = vector.shape_cast %85 : vector<16xf32> to vector<1x1x16xf32>
    %87 = vector.broadcast %86 : vector<1x1x16xf32> to vector<16x16x16xf32>
    %88 = arith.mulf %83, %87 : vector<16x16x16xf32>
    %89 = arith.addf %82, %88 : vector<16x16x16xf32>
    %c2_78 = arith.constant 2 : index
    %c2_79 = arith.constant 2 : index
    %c0_80 = arith.constant 0 : index
    %90 = vector.load %arg9[%c2_78, %c2_79, %c0_80] : memref<18x18x16xf32, #tpu.memory_space<vmem>>, vector<16x16x16xf32>
    %c2_81 = arith.constant 2 : index
    %c2_82 = arith.constant 2 : index
    %c0_83 = arith.constant 0 : index
    %91 = vector.load %arg4[%c2_81, %c2_82, %c0_83] : memref<3x3x16xf32, #tpu.memory_space<vmem>>, vector<1x1x16xf32>
    %92 = vector.shape_cast %91 : vector<1x1x16xf32> to vector<16xf32>
    %93 = vector.shape_cast %92 : vector<16xf32> to vector<1x1x16xf32>
    %94 = vector.broadcast %93 : vector<1x1x16xf32> to vector<16x16x16xf32>
    %95 = arith.mulf %90, %94 : vector<16x16x16xf32>
    %96 = arith.addf %89, %95 : vector<16x16x16xf32>
    %97 = vector.shape_cast %2 : vector<1x16xf32> to vector<1x1x16xf32>
    %98 = vector.broadcast %97 : vector<1x1x16xf32> to vector<16x16x16xf32>
    %99 = arith.addf %96, %98 : vector<16x16x16xf32>
    %100 = arith.mulf %99, %99 : vector<16x16x16xf32>
    %101 = arith.mulf %99, %100 : vector<16x16x16xf32>
    %cst_84 = arith.constant 4.471500e-02 : f32
    %102 = vector.broadcast %cst_84 : f32 to vector<16x16x16xf32>
    %103 = arith.mulf %102, %101 : vector<16x16x16xf32>
    %104 = arith.addf %99, %103 : vector<16x16x16xf32>
    %cst_85 = arith.constant 0.797884583 : f32
    %105 = vector.broadcast %cst_85 : f32 to vector<16x16x16xf32>
    %106 = arith.mulf %105, %104 : vector<16x16x16xf32>
    %107 = math.tanh %106 : vector<16x16x16xf32>
    %cst_86 = arith.constant 1.000000e+00 : f32
    %108 = vector.broadcast %cst_86 : f32 to vector<16x16x16xf32>
    %109 = arith.addf %108, %107 : vector<16x16x16xf32>
    %cst_87 = arith.constant 5.000000e-01 : f32
    %110 = vector.broadcast %cst_87 : f32 to vector<16x16x16xf32>
    %111 = arith.mulf %110, %109 : vector<16x16x16xf32>
    %112 = arith.mulf %99, %111 : vector<16x16x16xf32>
    %113 = vector.shape_cast %112 : vector<16x16x16xf32> to vector<256x16xf32>
    %cst_88 = arith.constant dense<0.000000e+00> : vector<256x8xf32>
    %114 = tpu.matmul %113, %3, %cst_88 {dimension_numbers = #tpu.dot_dimension_numbers<[1], [0], [0], [1], [0, 0, 1, 1], [], []>} : vector<256x16xf32>, vector<16x8xf32>, vector<256x8xf32> -> vector<256x8xf32>
    %115 = vector.broadcast %4 : vector<1x8xf32> to vector<256x8xf32>
    %116 = arith.addf %114, %115 : vector<256x8xf32>
    %c0_89 = arith.constant 0 : index
    %c0_90 = arith.constant 0 : index
    %c0_91 = arith.constant 0 : index
    %117 = vector.load %arg8[%c0_89, %c0_90, %c0_91] : memref<1x256x8xf32, #tpu.memory_space<vmem>>, vector<1x256x8xf32>
    %118 = vector.shape_cast %117 : vector<1x256x8xf32> to vector<256x8xf32>
    %119 = vector.shape_cast %116 : vector<256x8xf32> to vector<1x256x8xf32>
    tpu.vector_store %arg8[%c0_89, %c0_90, %c0_91], %119 {strides = array<i32>} : memref<1x256x8xf32, #tpu.memory_space<vmem>>, vector<1x256x8xf32>,
    return
  }
  func.func @transform_0(%arg0: i32) -> (i32, i32, i32) {
    %c0_i32 = arith.constant 0 : i32
    %c0_i32_0 = arith.constant 0 : i32
    %c0_i32_1 = arith.constant 0 : i32
    return %arg0, %c0_i32, %c0_i32_0 : i32, i32, i32
  }
  func.func @transform_1(%arg0: i32) -> (i32, i32) {
    %c0_i32 = arith.constant 0 : i32
    %c0_i32_0 = arith.constant 0 : i32
    %c0_i32_1 = arith.constant 0 : i32
    return %c0_i32, %c0_i32_0 : i32, i32
  }
  func.func @transform_2(%arg0: i32) -> (i32, i32) {
    %c0_i32 = arith.constant 0 : i32
    %c0_i32_0 = arith.constant 0 : i32
    %c0_i32_1 = arith.constant 0 : i32
    return %c0_i32, %c0_i32_0 : i32, i32
  }
  func.func @transform_3(%arg0: i32) -> (i32, i32, i32) {
    %c0_i32 = arith.constant 0 : i32
    %c0_i32_0 = arith.constant 0 : i32
    %c0_i32_1 = arith.constant 0 : i32
    %c0_i32_2 = arith.constant 0 : i32
    return %c0_i32, %c0_i32_0, %c0_i32_1 : i32, i32, i32
  }
  func.func @transform_4(%arg0: i32) -> (i32, i32) {
    %c0_i32 = arith.constant 0 : i32
    %c0_i32_0 = arith.constant 0 : i32
    %c0_i32_1 = arith.constant 0 : i32
    return %c0_i32, %c0_i32_0 : i32, i32
  }
  func.func @transform_5(%arg0: i32) -> (i32, i32) {
    %c0_i32 = arith.constant 0 : i32
    %c0_i32_0 = arith.constant 0 : i32
    %c0_i32_1 = arith.constant 0 : i32
    return %c0_i32, %c0_i32_0 : i32, i32
  }
  func.func @transform_6(%arg0: i32) -> (i32, i32) {
    %c0_i32 = arith.constant 0 : i32
    %c0_i32_0 = arith.constant 0 : i32
    %c0_i32_1 = arith.constant 0 : i32
    return %c0_i32, %c0_i32_0 : i32, i32
  }
  func.func @transform_7(%arg0: i32) -> (i32, i32, i32) {
    %c0_i32 = arith.constant 0 : i32
    %c0_i32_0 = arith.constant 0 : i32
    %c0_i32_1 = arith.constant 0 : i32
    return %arg0, %c0_i32, %c0_i32_0 : i32, i32, i32
  }
}

</mosaic_0001>

<bundles_post_ra>
// kernel: tpu_custom_call.1
= control target key start
LH: loop header
LB: loop body
LE: loop exit
PB: predicated region body
PF: predicated region fallthrough
CT: control target
= control target key end

     0   :  { %s2843_s24 = smov 0   ;;  %s4109_s0 = inlined_call_operand.vmem [shape: f32[2,256,8], index: 0, kind: input, shape index: {}]   ;;  %s4110_s1 = inlined_call_operand.vmem [shape: f32[8,16], index: 1, kind: input, shape index: {}]   ;;  %s4111_s2 = inlined_call_operand.vmem [shape: f32[1,16], index: 2, kind: input, shape index: {}]   ;;  %s4112_s3 = inlined_call_operand.vmem [shape: f32[3,3,16], index: 3, kind: input, shape index: {}]   ;;  %s4113_s4 = inlined_call_operand.vmem [shape: f32[1,16], index: 4, kind: input, shape index: {}]   ;;  %s4114_s5 = inlined_call_operand.vmem [shape: f32[16,8], index: 5, kind: input, shape index: {}]   ;;  %s4115_s6 = inlined_call_operand.vmem [shape: f32[1,8], index: 6, kind: input, shape index: {}]   ;;  %s4116_s7 = inlined_call_operand.vmem [shape: f32[2,256,8], index: 7, kind: output, shape index: {}]  }
   0x1 LB: > { %s2372_s25 = sadd.s32 4294967295, %s2800_s24   ;;  %p2376_p0 = scmp.ge.s32.totalorder %s2800_s24, 1  ;;  %s2800_s24 = sphi %s2843_s24, %s17_s24  }
   0x2   : > { %p237_p1 = scmp.lt.s32.totalorder %s2800_s24, 3 }
   0x4   : > { %p238_p2 = pnand %p2376_p0, %p237_p1 }
   0x5   : > { %v279_v0 = vld [vmem:[%s4110_s1] sm:$0xff] (!%p238_p2)  ;;  %p269_p3 = scmp.lt.s32.totalorder (!%p238_p2), %s2372_s25, 1  ;;  %vm366_vm0 = vcmask (!%p238_p2), 64512   ;;  %vm285_vm1 = vcmask (!%p238_p2), 130048   ;;  %v2802_v33 = vmov (!%p238_p2), 0.0   ;;  %vm295_vm2 = vcmask (!%p238_p2), 122880  }
   0x6   : > { %241 = sbr.rel (%p238_p2) target bundleno = 709 (0x2c5), region = 48  ;;  %2534 = vmatprep.subr.mxu0 (!%p238_p2), %v279_v0  ;;  %286 = vst.msk [vmem:[#allocation2] sm:$0xff] (!%p238_p2), %vm285_vm1, %v2802_v33  ;;  %287 = vst.msk [vmem:[#allocation2 + $0x8] sm:$0xff] (!%p238_p2), %vm285_vm1, %v2802_v33  ;;  %vm288_vm3 = vcmask (!%p238_p2), 123904   ;;  %v282_v34 = vld [vmem:[%s4114_s5] sm:$0xff] (!%p238_p2)  ;;  %v283_v35 = vld [vmem:[%s4114_s5 + $0x8] sm:$0xff] (!%p238_p2) }
   0x7   : > { %2535 = vmatpush3.msra.mxu0 (!%p238_p2), %v279_v0  ;;  %291 = vst.msk [vmem:[#allocation2 + $0x198] sm:$0xff] (!%p238_p2), %vm285_vm1, %v2802_v33  ;;  %292 = vst.msk [vmem:[#allocation2 + $0x1a0] sm:$0xff] (!%p238_p2), %vm285_vm1, %v2802_v33  ;;  %v2636_v36 = vpack.c.bf16 (!%p238_p2), %v283_v35, %v282_v34  ;;  %v2973_v37 = vld [vmem:[%s4111_s2] ss:$0 sm:$0xff] (!%p238_p2)  ;;  %v2994_v58 = vld [vmem:[%s4112_s3 + $0x1] ss:$0 sm:$0xff] (!%p238_p2) }
   0x8   : > { %296 = vst.msk [vmem:[#allocation2 + $0x18] sm:$0x1] (!%p238_p2), %vm295_vm2, %v2802_v33  ;;  %297 = vst.msk [vmem:[#allocation2 + $0x30] sm:$0x1] (!%p238_p2), %vm295_vm2, %v2802_v33  ;;  %v2988_v54 = vld [vmem:[%s4112_s3] ss:$0 sm:$0xff] (!%p238_p2) }
   0x9   : > { %298 = vst.msk [vmem:[#allocation2 + $0x48] sm:$0x1] (!%p238_p2), %vm295_vm2, %v2802_v33  ;;  %299 = vst.msk [vmem:[#allocation2 + $0x60] sm:$0x1] (!%p238_p2), %vm295_vm2, %v2802_v33  ;;  %2637 = vmatprep.subr.bf16.mxu1 (!%p238_p2), %v2636_v36  ;;  %v3003_v0 = vld [vmem:[%s4112_s3 + $0x2] ss:$0 sm:$0xff] (!%p238_p2) }
   0xa   : > { %300 = vst.msk [vmem:[#allocation2 + $0x78] sm:$0x1] (!%p238_p2), %vm295_vm2, %v2802_v33  ;;  %301 = vst.msk [vmem:[#allocation2 + $0x90] sm:$0x1] (!%p238_p2), %vm295_vm2, %v2802_v33  ;;  %2639 = vmatpush3.bf16.msra.mxu1 (!%p238_p2), %v2636_v36 }
   0xb   : > { %302 = vst.msk [vmem:[#allocation2 + $0xa8] sm:$0x1] (!%p238_p2), %vm295_vm2, %v2802_v33  ;;  %303 = vst.msk [vmem:[#allocation2 + $0xc0] sm:$0x1] (!%p238_p2), %vm295_vm2, %v2802_v33 }
   0xc   : > { %304 = vst.msk [vmem:[#allocation2 + $0xd8] sm:$0x1] (!%p238_p2), %vm295_vm2, %v2802_v33  ;;  %305 = vst.msk [vmem:[#allocation2 + $0xf0] sm:$0x1] (!%p238_p2), %vm295_vm2, %v2802_v33 }
   0xd   : > { %s4118_s25 = smov (!%p269_p3, %s2372_s25), 1  ;;  %306 = vst.msk [vmem:[#allocation2 + $0x108] sm:$0x1] %vm295_vm2, %v2802_v33  ;;  %307 = vst.msk [vmem:[#allocation2 + $0x120] sm:$0x1] %vm295_vm2, %v2802_v33  ;;  %v880_v56 = vld [vmem:[#allocation2] sm:$0xff] }
   0xe   : > { %s2465_s28 = sshll.u32 %s4118_s25, 8  ;;  %308 = vst.msk [vmem:[#allocation2 + $0x138] sm:$0x1] %vm295_vm2, %v2802_v33  ;;  %309 = vst.msk [vmem:[#allocation2 + $0x150] sm:$0x1] %vm295_vm2, %v2802_v33  ;;  %v949_v57 = vld [vmem:[#allocation2 + $0x1] sm:$0xff] }
   0xf   : > { %s2862_s8 = scalar_lea.vmem %s4109_s0, %s2465_s28  ;;  %310 = vst.msk [vmem:[#allocation2 + $0x168] sm:$0x1] %vm295_vm2, %v2802_v33  ;;  %311 = vst.msk [vmem:[#allocation2 + $0x180] sm:$0x1] %vm295_vm2, %v2802_v33  ;;  %v1050_v63 = vld [vmem:[#allocation2 + $0x2] sm:$0xff]  ;;  %s4008_s13 = scalar_lea.vmem %s4116_s7, %s2465_s28 }
  0x10   : > { %v328_v1 = vld [vmem:[%s2862_s8] sm:$0xff]  ;;  %v329_v2 = vld [vmem:[%s2862_s8 + $0x8] sm:$0xff]  ;;  %v330_v3 = vld [vmem:[%s2862_s8 + $0x10] sm:$0xff]  ;;  %312 = vst.msk [vmem:[#allocation2 + $0x29] sm:$0x1] %vm295_vm2, %v2802_v33 }
  0x11   : > { %2536 = vmatprep.mubr.msk.f32.mxu0 %vm366_vm0, %v328_v1  ;;  %v331_v4 = vld [vmem:[%s2862_s8 + $0x18] sm:$0xff]  ;;  %v332_v5 = vld [vmem:[%s2862_s8 + $0x20] sm:$0xff]  ;;  %v333_v6 = vld [vmem:[%s2862_s8 + $0x28] sm:$0xff]  ;;  %313 = vst.msk [vmem:[#allocation2 + $0x41] sm:$0x1] %vm295_vm2, %v2802_v33 }
  0x12   : > { %2537 = vmatmul.mubr.msk.f32.vlgmr.msra.gmra.mrb[0].mxu0 %vm366_vm0, %v329_v2  ;;  %v334_v7 = vld [vmem:[%s2862_s8 + $0x30] sm:$0xff]  ;;  %v335_v8 = vld [vmem:[%s2862_s8 + $0x38] sm:$0xff]  ;;  %v336_v9 = vld [vmem:[%s2862_s8 + $0x40] sm:$0xff]  ;;  %314 = vst.msk [vmem:[#allocation2 + $0x59] sm:$0x1] %vm295_vm2, %v2802_v33  ;;  %v917_v2 = vmul.f32 %v2988_v54, %v880_v56 }
  0x13   : > { %2539 = vmatprep.mubr.msk.f32.mxu0 %vm366_vm0, %v330_v3  ;;  %v337_v10 = vld [vmem:[%s2862_s8 + $0x48] sm:$0xff]  ;;  %v338_v11 = vld [vmem:[%s2862_s8 + $0x50] sm:$0xff]  ;;  %v339_v12 = vld [vmem:[%s2862_s8 + $0x58] sm:$0xff]  ;;  %315 = vst.msk [vmem:[#allocation2 + $0x71] sm:$0x1] %vm295_vm2, %v2802_v33  ;;  %v986_v3 = vmul.f32 %v2994_v58, %v949_v57 }
  0x14   : > { %v340_v13 = vld [vmem:[%s2862_s8 + $0x60] sm:$0xff]  ;;  %v341_v14 = vld [vmem:[%s2862_s8 + $0x68] sm:$0xff]  ;;  %v342_v15 = vld [vmem:[%s2862_s8 + $0x70] sm:$0xff]  ;;  %316 = vst.msk [vmem:[#allocation2 + $0x89] sm:$0x1] %vm295_vm2, %v2802_v33 }
  0x15   : > { %v343_v16 = vld [vmem:[%s2862_s8 + $0x78] sm:$0xff]  ;;  %v344_v17 = vld [vmem:[%s2862_s8 + $0x80] sm:$0xff]  ;;  %v345_v18 = vld [vmem:[%s2862_s8 + $0x88] sm:$0xff]  ;;  %317 = vst.msk [vmem:[#allocation2 + $0xa1] sm:$0x1] %vm295_vm2, %v2802_v33 }
  0x16   : > { %2540 = vmatmul.mubr.msk.f32.gmra.mrb[2].mxu0 %vm366_vm0, %v331_v4  ;;  %v346_v19 = vld [vmem:[%s2862_s8 + $0x90] sm:$0xff]  ;;  %v347_v20 = vld [vmem:[%s2862_s8 + $0x98] sm:$0xff]  ;;  %v348_v21 = vld [vmem:[%s2862_s8 + $0xa0] sm:$0xff]  ;;  %318 = vst.msk [vmem:[#allocation2 + $0xb9] sm:$0x1] %vm295_vm2, %v2802_v33 }
  0x17   : > { %2542 = vmatprep.mubr.msk.f32.mxu0 %vm366_vm0, %v332_v5  ;;  %v349_v22 = vld [vmem:[%s2862_s8 + $0xa8] sm:$0xff]  ;;  %v350_v23 = vld [vmem:[%s2862_s8 + $0xb0] sm:$0xff]  ;;  %v351_v24 = vld [vmem:[%s2862_s8 + $0xb8] sm:$0xff]  ;;  %319 = vst.msk [vmem:[#allocation2 + $0xd1] sm:$0x1] %vm295_vm2, %v2802_v33 }
  0x18   : > { %v352_v25 = vld [vmem:[%s2862_s8 + $0xc0] sm:$0xff]  ;;  %v353_v26 = vld [vmem:[%s2862_s8 + $0xc8] sm:$0xff]  ;;  %v354_v27 = vld [vmem:[%s2862_s8 + $0xd0] sm:$0xff]  ;;  %320 = vst.msk [vmem:[#allocation2 + $0xe9] sm:$0x1] %vm295_vm2, %v2802_v33 }
  0x19   : > { %v355_v28 = vld [vmem:[%s2862_s8 + $0xd8] sm:$0xff]  ;;  %v356_v29 = vld [vmem:[%s2862_s8 + $0xe0] sm:$0xff]  ;;  %v357_v30 = vld [vmem:[%s2862_s8 + $0xe8] sm:$0xff]  ;;  %321 = vst.msk [vmem:[#allocation2 + $0x101] sm:$0x1] %vm295_vm2, %v2802_v33 }
  0x1a   : > { %2543 = vmatmul.mubr.msk.f32.gmra.mrb[4].mxu0 %vm366_vm0, %v333_v6  ;;  %v358_v31 = vld [vmem:[%s2862_s8 + $0xf0] sm:$0xff]  ;;  %v359_v32 = vld [vmem:[%s2862_s8 + $0xf8] sm:$0xff]  ;;  %322 = vst.msk [vmem:[#allocation2 + $0x119] sm:$0x1] %vm295_vm2, %v2802_v33  ;;  %323 = vst.msk [vmem:[#allocation2 + $0x131] sm:$0x1] %vm295_vm2, %v2802_v33 }
  0x1b   : > { %2545 = vmatprep.mubr.msk.f32.mxu0 %vm366_vm0, %v334_v7  ;;  %324 = vst.msk [vmem:[#allocation2 + $0x149] sm:$0x1] %vm295_vm2, %v2802_v33  ;;  %325 = vst.msk [vmem:[#allocation2 + $0x161] sm:$0x1] %vm295_vm2, %v2802_v33  ;;  %v881_v6 = vld [vmem:[#allocation2 + $0x8] sm:$0xff] }
  0x1c   : > { %326 = vst.msk [vmem:[#allocation2 + $0x179] sm:$0x1] %vm295_vm2, %v2802_v33  ;;  %327 = vst.msk [vmem:[#allocation2 + $0x191] sm:$0x1] %vm295_vm2, %v2802_v33 }
  0x1d   : > { %289 = vst.msk [vmem:[#allocation2 + $0x10] sm:$0x3] %vm288_vm3, %v2802_v33  ;;  %293 = vst.msk [vmem:[#allocation2 + $0x1a8] sm:$0x3] %vm288_vm3, %v2802_v33 }
  0x1e   : > { %2546 = vmatmul.mubr.msk.f32.gmra.mrb[6].mxu0 %vm366_vm0, %v335_v8 }
  0x1f   : > { %2548 = vmatprep.mubr.msk.f32.mxu0 %vm366_vm0, %v336_v9 }
  0x22   : > { %2549 = vmatmul.mubr.msk.f32.gmra.mrb[8].mxu0 %vm366_vm0, %v337_v10 }
  0x23   : > { %2551 = vmatprep.mubr.msk.f32.mxu0 %vm366_vm0, %v338_v11 }
  0x24   : > { %v1051_v35 = vld [vmem:[#allocation2 + $0xa] sm:$0xff] }
  0x26   : > { %2552 = vmatmul.mubr.msk.f32.gmra.mrb[10].mxu0 %vm366_vm0, %v339_v12  ;;  %v1087_v12 = vmul.f32 %v3003_v0, %v1050_v63 }
  0x27   : > { %2554 = vmatprep.mubr.msk.f32.mxu0 %vm366_vm0, %v340_v13  ;;  %v950_v13 = vld [vmem:[#allocation2 + $0x9] sm:$0xff] }
  0x2a   : > { %2555 = vmatmul.mubr.msk.f32.gmra.mrb[12].mxu0 %vm366_vm0, %v341_v14 }
  0x2b   : > { %2557 = vmatprep.mubr.msk.f32.mxu0 %vm366_vm0, %v342_v15 }
  0x2e   : > { %2558 = vmatmul.mubr.msk.f32.gmra.mrb[14].mxu0 %vm366_vm0, %v343_v16 }
  0x2f   : > { %2560 = vmatprep.mubr.msk.f32.mxu0 %vm366_vm0, %v344_v17 }
  0x32   : > { %2561 = vmatmul.mubr.msk.f32.gmra.mrb[16].mxu0 %vm366_vm0, %v345_v18 }
  0x33   : > { %2563 = vmatprep.mubr.msk.f32.mxu0 %vm366_vm0, %v346_v19 }
  0x36   : > { %2564 = vmatmul.mubr.msk.f32.gmra.mrb[18].mxu0 %vm366_vm0, %v347_v20  ;;  %v1018_v20 = vadd.f32 %v986_v3, %v917_v2 }
  0x37   : > { %2566 = vmatprep.mubr.msk.f32.mxu0 %vm366_vm0, %v348_v21 }
  0x3a   : > { %2567 = vmatmul.mubr.msk.f32.gmra.mrb[20].mxu0 %vm366_vm0, %v349_v22 }
  0x3b   : > { %2569 = vmatprep.mubr.msk.f32.mxu0 %vm366_vm0, %v350_v23 }
  0x3e   : > { %2570 = vmatmul.mubr.msk.f32.gmra.mrb[22].mxu0 %vm366_vm0, %v351_v24  ;;  %v918_v24 = vmul.f32 %v2988_v54, %v881_v6 }
  0x3f   : > { %2572 = vmatprep.mubr.msk.f32.mxu0 %vm366_vm0, %v352_v25  ;;  %v987_v25 = vmul.f32 %v2994_v58, %v950_v13 }
  0x42   : > { %2573 = vmatmul.mubr.msk.f32.gmra.mrb[24].mxu0 %vm366_vm0, %v353_v26 }
  0x43   : > { %2575 = vmatprep.mubr.msk.f32.mxu0 %vm366_vm0, %v354_v27 }
  0x46   : > { %2576 = vmatmul.mubr.msk.f32.gmra.mrb[26].mxu0 %vm366_vm0, %v355_v28 }
  0x47   : > { %2578 = vmatprep.mubr.msk.f32.mxu0 %vm366_vm0, %v356_v29 }
  0x4a   : > { %2579 = vmatmul.mubr.msk.f32.gmra.mrb[28].mxu0 %vm366_vm0, %v357_v30 }
  0x4b   : > { %2581 = vmatprep.mubr.msk.f32.mxu0 %vm366_vm0, %v358_v31 }
  0x4e   : > { %2582 = vmatmul.mubr.msk.f32.gmra.mrb[30].mxu0 %vm366_vm0, %v359_v32 }
  0xe5   : > { %v2538_v38 = vpop.f32.mrb[0].mxu0 }
  0xe6   : > { %v535_v39 = vadd.f32 %v2538_v38, %v2973_v37  ;;  %v529_v40 = vpop.f32.mrb[1].mxu0 }
  0xe7   : > { %v530_v41 = vadd.f32 %v2973_v37, %v529_v40 }
  0xe8   : > { %v721_v42 = vmul.f32 0.70710677, %v535_v39  ;;  %v689_v8 = vmul.f32 0.5, %v535_v39 }
  0xe9   : > { %v720_v43 = vmul.f32 0.70710677, %v530_v41  ;;  %v2541_v44 = vpop.f32.mrb[2].mxu0  ;;  %v688_v14 = vmul.f32 0.5, %v530_v41 }
  0xea   : > { %2649 = verf.f32 %v721_v42  ;;  %v545_v45 = vadd.f32 %v2541_v44, %v2973_v37  ;;  %v539_v46 = vpop.f32.mrb[3].mxu0  ;;  %v1119_v42 = vadd.f32 %v1087_v12, %v1018_v20 }
  0xeb   : > { %2651 = verf.f32 %v720_v43  ;;  %v540_v47 = vadd.f32 %v2973_v37, %v539_v46  ;;  %v1019_v43 = vadd.f32 %v987_v25, %v918_v24  ;;  %v3072_v25 = vld [vmem:[%s4112_s3 + $0x8] ss:$0 sm:$0xff] }
  0xec   : > { %v723_v48 = vmul.f32 0.70710677, %v545_v45  ;;  %v691_v27 = vmul.f32 0.5, %v545_v45 }
  0xed   : > { %v722_v49 = vmul.f32 0.70710677, %v540_v47  ;;  %v2544_v50 = vpop.f32.mrb[4].mxu0  ;;  %v690_v31 = vmul.f32 0.5, %v540_v47 }
  0xee   : > { %2653 = verf.f32 %v723_v48  ;;  %v2980_v51 = vadd.f32 %v2544_v50, %v2973_v37  ;;  %v549_v52 = vpop.f32.mrb[5].mxu0 }
  0xef   : > { %2655 = verf.f32 %v722_v49  ;;  %v2983_v53 = vadd.f32 %v2973_v37, %v549_v52  ;;  %v1088_v49 = vmul.f32 %v3003_v0, %v1051_v35 }
  0xf0   : > { %v725_v55 = vmul.f32 0.70710677, %v2980_v51  ;;  %v693_v45 = vmul.f32 0.5, %v2980_v51 }
  0xf1   : > { %v724_v59 = vmul.f32 0.70710677, %v2983_v53  ;;  %v2547_v60 = vpop.f32.mrb[6].mxu0  ;;  %v692_v50 = vmul.f32 0.5, %v2983_v53 }
  0xf2   : > { %2657 = verf.f32 %v725_v55  ;;  %v2998_v61 = vadd.f32 %v2547_v60, %v2973_v37  ;;  %v559_v62 = vpop.f32.mrb[7].mxu0  ;;  %v3034_v60 = vld [vmem:[%s4112_s3 + $0x4] ss:$0 sm:$0xff] }
  0xf3   : > { %2659 = verf.f32 %v724_v59  ;;  %v3006_v1 = vadd.f32 %v2973_v37, %v559_v62 }
  0xf4   : > { %v2650_v4 = vpop.eup %2649  ;;  %v727_v5 = vmul.f32 0.70710677, %v2998_v61  ;;  %v695_v59 = vmul.f32 0.5, %v2998_v61 }
  0xf5   : > { %v2652_v7 = vpop.eup %2651  ;;  %v785_v9 = vadd.f32 1.0, %v2650_v4  ;;  %v726_v10 = vmul.f32 0.70710677, %v3006_v1  ;;  %v2550_v11 = vpop.f32.mrb[8].mxu0  ;;  %v694_v53 = vmul.f32 0.5, %v3006_v1 }
  0xf6   : > { %v784_v15 = vadd.f32 1.0, %v2652_v7  ;;  %2661 = verf.f32 %v727_v5  ;;  %v575_v16 = vadd.f32 %v2550_v11, %v2973_v37  ;;  %v569_v17 = vpop.f32.mrb[9].mxu0  ;;  %v3040_v4 = vld [vmem:[%s4112_s3 + $0x5] ss:$0 sm:$0xff] }
  0xf7   : > { %v817_v18 = vmul.f32 %v785_v9, %v689_v8  ;;  %2663 = verf.f32 %v726_v10  ;;  %v570_v19 = vadd.f32 %v2973_v37, %v569_v17  ;;  %v3046_v10 = vadd.f32 %v1088_v49, %v1019_v43 }
  0xf8   : > { %v2654_v21 = vpop.eup %2653  ;;  %v816_v22 = vmul.f32 %v784_v15, %v688_v14  ;;  %v729_v23 = vmul.f32 0.70710677, %v575_v16  ;;  %v697_v2 = vmul.f32 0.5, %v575_v16  ;;  %v3061_v16 = vld [vmem:[%s4112_s3 + $0x6] ss:$0 sm:$0xff] }
  0xf9   : > { %v2656_v26 = vpop.eup %2655  ;;  %849 = vst.msk [vmem:[#allocation2 + $0x21] sm:$0xff] %vm285_vm1, %v817_v18  ;;  %v787_v28 = vadd.f32 1.0, %v2654_v21  ;;  %v728_v29 = vmul.f32 0.70710677, %v570_v19  ;;  %v2553_v30 = vpop.f32.mrb[10].mxu0  ;;  %v696_v6 = vmul.f32 0.5, %v570_v19 }
  0xfa   : > { %848 = vst.msk [vmem:[#allocation2 + $0x19] sm:$0xff] %vm285_vm1, %v816_v22  ;;  %v786_v32 = vadd.f32 1.0, %v2656_v26  ;;  %2665 = verf.f32 %v729_v23  ;;  %v585_v33 = vadd.f32 %v2553_v30, %v2973_v37  ;;  %v579_v34 = vpop.f32.mrb[11].mxu0 }
  0xfb   : > { %v819_v36 = vmul.f32 %v787_v28, %v691_v27  ;;  %2667 = verf.f32 %v728_v29  ;;  %v580_v38 = vadd.f32 %v2973_v37, %v579_v34 }
  0xfc   : > { %v2658_v39 = vpop.eup %2657  ;;  %v818_v40 = vmul.f32 %v786_v32, %v690_v31  ;;  %v731_v41 = vmul.f32 0.70710677, %v585_v33  ;;  %v699_v18 = vmul.f32 0.5, %v585_v33 }
  0xfd   : > { %v2660_v44 = vpop.eup %2659  ;;  %851 = vst.msk [vmem:[#allocation2 + $0x39] sm:$0xff] %vm285_vm1, %v819_v36  ;;  %v789_v46 = vadd.f32 1.0, %v2658_v39  ;;  %v730_v47 = vmul.f32 0.70710677, %v580_v38  ;;  %v2556_v48 = vpop.f32.mrb[12].mxu0  ;;  %v698_v28 = vmul.f32 0.5, %v580_v38 }
  0xfe   : > { %850 = vst.msk [vmem:[#allocation2 + $0x31] sm:$0xff] %vm285_vm1, %v818_v40  ;;  %v788_v52 = vadd.f32 1.0, %v2660_v44  ;;  %2669 = verf.f32 %v731_v41  ;;  %v595_v55 = vadd.f32 %v2556_v48, %v2973_v37  ;;  %v589_v56 = vpop.f32.mrb[13].mxu0  ;;  %v3089_v38 = vld [vmem:[%s4112_s3 + $0x9] ss:$0 sm:$0xff] }
  0xff   : > { %v821_v57 = vmul.f32 %v789_v46, %v693_v45  ;;  %2671 = verf.f32 %v730_v47  ;;  %v3029_v51 = vadd.f32 %v2973_v37, %v589_v56  ;;  %v3098_v48 = vld [vmem:[%s4112_s3 + $0xa] ss:$0 sm:$0xff] }
 0x100   : > { %v2662_v62 = vpop.eup %2661  ;;  %v820_v63 = vmul.f32 %v788_v52, %v692_v50  ;;  %v733_v3 = vmul.f32 0.70710677, %v595_v55  ;;  %v701_v41 = vmul.f32 0.5, %v595_v55  ;;  %v3100_v49 = vld [vmem:[#allocation2 + $0x21] sm:$0xff] }
 0x101   : > { %v2664_v61 = vpop.eup %2663  ;;  %853 = vst.msk [vmem:[#allocation2 + $0x51] sm:$0xff] %vm285_vm1, %v821_v57  ;;  %v791_v5 = vadd.f32 1.0, %v2662_v62  ;;  %v732_v7 = vmul.f32 0.70710677, %v3029_v51  ;;  %v2559_v8 = vpop.f32.mrb[14].mxu0  ;;  %v3044_v9 = vld [vmem:[#allocation2 + $0x18] sm:$0xff] }
 0x102   : > { %852 = vst.msk [vmem:[#allocation2 + $0x49] sm:$0xff] %vm285_vm1, %v820_v63  ;;  %v790_v1 = vadd.f32 1.0, %v2664_v61  ;;  %2673 = verf.f32 %v733_v3  ;;  %v3050_v11 = vadd.f32 %v2559_v8, %v2973_v37  ;;  %v599_v12 = vpop.f32.mrb[15].mxu0  ;;  %v1189_v13 = vmul.f32 %v3034_v60, %v3044_v9  ;;  %v3054_v14 = vld [vmem:[#allocation2 + $0x19] sm:$0xff] }
 0x103   : > { %v3056_v15 = vld [vmem:[#allocation2 + $0x1a] sm:$0xff]  ;;  %v823_v17 = vmul.f32 %v791_v5, %v695_v59  ;;  %2675 = verf.f32 %v732_v7  ;;  %v3064_v19 = vadd.f32 %v2973_v37, %v599_v12  ;;  %v1290_v24 = vmul.f32 %v3040_v4, %v3054_v14 }
 0x104   : > { %v2666_v20 = vpop.eup %2665  ;;  %v822_v21 = vmul.f32 %v790_v1, %v694_v53  ;;  %v735_v22 = vmul.f32 0.70710677, %v3050_v11  ;;  %v1221_v23 = vadd.f32 %v1189_v13, %v1119_v42  ;;  %v1391_v31 = vmul.f32 %v3061_v16, %v3056_v15  ;;  %v3110_v61 = vld [vmem:[#allocation2 + $0x20] sm:$0xff] }
 0x105   : > { %v2668_v26 = vpop.eup %2667  ;;  %855 = vst.msk [vmem:[#allocation2 + $0x69] sm:$0xff] %vm285_vm1, %v823_v17  ;;  %v793_v27 = vadd.f32 1.0, %v2666_v20  ;;  %v734_v29 = vmul.f32 0.70710677, %v3064_v19  ;;  %v2562_v30 = vpop.f32.mrb[16].mxu0  ;;  %v3078_v32 = vld [vmem:[#allocation2 + $0x30] sm:$0xff] }
 0x106   : > { %854 = vst.msk [vmem:[#allocation2 + $0x61] sm:$0xff] %vm285_vm1, %v822_v21  ;;  %v792_v33 = vadd.f32 1.0, %v2668_v26  ;;  %2677 = verf.f32 %v735_v22  ;;  %v3082_v34 = vadd.f32 %v2562_v30, %v2973_v37  ;;  %v609_v35 = vpop.f32.mrb[17].mxu0  ;;  %v1322_v36 = vadd.f32 %v1290_v24, %v1221_v23  ;;  %v3084_v39 = vld [vmem:[#allocation2 + $0x31] sm:$0xff]  ;;  %v3118_v12 = vld [vmem:[%s4113_s4] ss:$0 sm:$0xff] }
 0x107   : > { %v825_v40 = vmul.f32 %v793_v27, %v697_v2  ;;  %2679 = verf.f32 %v734_v29  ;;  %v610_v42 = vadd.f32 %v2973_v37, %v609_v35  ;;  %v1494_v47 = vmul.f32 %v3072_v25, %v3078_v32  ;;  %v3106_v62 = vld [vmem:[#allocation2 + $0x32] sm:$0xff] }
 0x108   : > { %v2670_v43 = vpop.eup %2669  ;;  %v824_v44 = vmul.f32 %v792_v33, %v696_v6  ;;  %v737_v45 = vmul.f32 0.70710677, %v3082_v34  ;;  %v1423_v46 = vadd.f32 %v1391_v31, %v1322_v36  ;;  %v700_v55 = vmul.f32 0.5, %v3029_v51 }
 0x109   : > { %v2672_v50 = vpop.eup %2671  ;;  %857 = vst.msk [vmem:[#allocation2 + $0x81] sm:$0xff] %vm285_vm1, %v825_v40  ;;  %v795_v52 = vadd.f32 1.0, %v2670_v43  ;;  %v736_v56 = vmul.f32 0.70710677, %v610_v42  ;;  %v2565_v57 = vpop.f32.mrb[18].mxu0  ;;  %v1595_v59 = vmul.f32 %v3089_v38, %v3084_v39  ;;  %v1291_v6 = vmul.f32 %v3040_v4, %v3100_v49 }
 0x10a   : > { %856 = vst.msk [vmem:[#allocation2 + $0x79] sm:$0xff] %vm285_vm1, %v824_v44  ;;  %v794_v63 = vadd.f32 1.0, %v2672_v50  ;;  %2681 = verf.f32 %v737_v45  ;;  %v625_v53 = vadd.f32 %v2565_v57, %v2973_v37  ;;  %v619_v2 = vpop.f32.mrb[19].mxu0  ;;  %v1526_v3 = vadd.f32 %v1494_v47, %v1423_v46  ;;  %v3134_v44 = vld [vmem:[#allocation2 + $0x22] sm:$0xff] }
 0x10b   : > { %v827_v5 = vmul.f32 %v795_v52, %v699_v18  ;;  %2683 = verf.f32 %v736_v56  ;;  %v620_v51 = vadd.f32 %v2973_v37, %v619_v2  ;;  %v1696_v17 = vmul.f32 %v3098_v48, %v3106_v62 }
 0x10c   : > { %v2674_v7 = vpop.eup %2673  ;;  %v826_v8 = vmul.f32 %v794_v63, %v698_v28  ;;  %v739_v1 = vmul.f32 0.70710677, %v625_v53  ;;  %v1627_v13 = vadd.f32 %v1595_v59, %v1526_v3  ;;  %v703_v21 = vmul.f32 0.5, %v3050_v11 }
 0x10d   : > { %v2676_v20 = vpop.eup %2675  ;;  %859 = vst.msk [vmem:[#allocation2 + $0x99] sm:$0xff] %vm285_vm1, %v827_v5  ;;  %v797_v18 = vadd.f32 1.0, %v2674_v7  ;;  %v738_v22 = vmul.f32 0.70710677, %v620_v51  ;;  %v2568_v23 = vpop.f32.mrb[20].mxu0  ;;  %v1190_v24 = vmul.f32 %v3034_v60, %v3110_v61  ;;  %v702_v36 = vmul.f32 0.5, %v3064_v19 }
 0x10e   : > { %858 = vst.msk [vmem:[#allocation2 + $0x91] sm:$0xff] %vm285_vm1, %v826_v8  ;;  %v796_v26 = vadd.f32 1.0, %v2676_v20  ;;  %2685 = verf.f32 %v739_v1  ;;  %v635_v27 = vadd.f32 %v2568_v23, %v2973_v37  ;;  %v629_v28 = vpop.f32.mrb[21].mxu0  ;;  %v1728_v29 = vadd.f32 %v1696_v17, %v1627_v13  ;;  %v3144_v7 = vld [vmem:[#allocation2 + $0x38] sm:$0xff] }
 0x10f   : > { %v829_v30 = vmul.f32 %v797_v18, %v701_v41  ;;  %2687 = verf.f32 %v738_v22  ;;  %v630_v31 = vadd.f32 %v2973_v37, %v629_v28  ;;  %v1222_v33 = vadd.f32 %v1190_v24, %v3046_v10  ;;  %v3149_v22 = vld [vmem:[#allocation2 + $0x39] sm:$0xff] }
 0x110   : > { %v2678_v11 = vpop.eup %2677  ;;  %v828_v35 = vmul.f32 %v796_v26, %v700_v55  ;;  %v741_v40 = vmul.f32 0.70710677, %v635_v27  ;;  %v3132_v43 = vadd.f32 %v3118_v12, %v1728_v29  ;;  %v705_v41 = vmul.f32 0.5, %v3082_v34  ;;  %v3154_v26 = vld [vmem:[#allocation2 + $0x3a] sm:$0xff] }
 0x111   : > { %v2680_v45 = vpop.eup %2679  ;;  %861 = vst.msk [vmem:[#allocation2 + $0xb1] sm:$0xff] %vm285_vm1, %v829_v30  ;;  %v799_v46 = vadd.f32 1.0, %v2678_v11  ;;  %v704_v47 = vmul.f32 0.5, %v610_v42  ;;  %v740_v50 = vmul.f32 0.70710677, %v630_v31  ;;  %v2571_v52 = vpop.f32.mrb[22].mxu0  ;;  %v1323_v56 = vadd.f32 %v1291_v6, %v1222_v33 }
 0x112   : > { %860 = vst.msk [vmem:[#allocation2 + $0xa9] sm:$0xff] %vm285_vm1, %v828_v35  ;;  %v798_v10 = vadd.f32 1.0, %v2680_v45  ;;  %2689 = verf.f32 %v741_v40  ;;  %v645_v19 = vadd.f32 %v2571_v52, %v2973_v37  ;;  %v639_v55 = vpop.f32.mrb[23].mxu0  ;;  %v1830_v63 = vmul.f32 0.70710677, %v3132_v43 }
 0x113   : > { %v831_v57 = vmul.f32 %v799_v46, %v703_v21  ;;  %2691 = verf.f32 %v740_v50  ;;  %v640_v59 = vadd.f32 %v2973_v37, %v639_v55  ;;  %v707_v34 = vmul.f32 0.5, %v625_v53 }
 0x114   : > { %v2682_v2 = vpop.eup %2681  ;;  %v830_v3 = vmul.f32 %v798_v10, %v702_v36  ;;  %v743_v42 = vmul.f32 0.70710677, %v645_v19  ;;  %v1392_v5 = vmul.f32 %v3061_v16, %v3134_v44  ;;  %v706_v6 = vmul.f32 0.5, %v620_v51 }
 0x115   : > { %v2684_v8 = vpop.eup %2683  ;;  %863 = vst.msk [vmem:[#allocation2 + $0xc9] sm:$0xff] %vm285_vm1, %v831_v57  ;;  %v801_v1 = vadd.f32 1.0, %v2682_v2  ;;  %v742_v13 = vmul.f32 0.70710677, %v640_v59  ;;  %v2574_v17 = vpop.f32.mrb[24].mxu0  ;;  %2693 = verf.f32 %v1830_v63  ;;  %v1495_v51 = vmul.f32 %v3072_v25, %v3144_v7 }
 0x116   : > { %862 = vst.msk [vmem:[#allocation2 + $0xc1] sm:$0xff] %vm285_vm1, %v830_v3  ;;  %v800_v20 = vadd.f32 1.0, %v2684_v8  ;;  %2695 = verf.f32 %v743_v42  ;;  %v655_v53 = vadd.f32 %v2574_v17, %v2973_v37  ;;  %v649_v18 = vpop.f32.mrb[25].mxu0  ;;  %v1424_v21 = vadd.f32 %v1392_v5, %v1323_v56 }
 0x117   : > { %v833_v23 = vmul.f32 %v801_v1, %v705_v41  ;;  %2697 = verf.f32 %v742_v13  ;;  %v650_v24 = vadd.f32 %v2973_v37, %v649_v18  ;;  %v709_v30 = vmul.f32 0.5, %v635_v27 }
 0x118   : > { %v2686_v28 = vpop.eup %2685  ;;  %v832_v29 = vmul.f32 %v800_v20, %v704_v47  ;;  %v708_v33 = vmul.f32 0.5, %v630_v31  ;;  %v745_v11 = vmul.f32 0.70710677, %v655_v53  ;;  %v1527_v46 = vadd.f32 %v1495_v51, %v1424_v21 }
 0x119   : > { %v2688_v35 = vpop.eup %2687  ;;  %865 = vst.msk [vmem:[#allocation2 + $0xe1] sm:$0xff] %vm285_vm1, %v833_v23  ;;  %v803_v36 = vadd.f32 1.0, %v2686_v28  ;;  %v744_v40 = vmul.f32 0.70710677, %v650_v24  ;;  %v2577_v45 = vpop.f32.mrb[26].mxu0  ;;  %v1596_v41 = vmul.f32 %v3089_v38, %v3149_v22  ;;  %v1697_v27 = vmul.f32 %v3098_v48, %v3154_v26 }
 0x11a   : > { %864 = vst.msk [vmem:[#allocation2 + $0xd9] sm:$0xff] %vm285_vm1, %v832_v29  ;;  %v802_v50 = vadd.f32 1.0, %v2688_v35  ;;  %2699 = verf.f32 %v745_v11  ;;  %v665_v52 = vadd.f32 %v2577_v45, %v2973_v37  ;;  %v659_v47 = vpop.f32.mrb[27].mxu0  ;;  %v711_v63 = vmul.f32 0.5, %v645_v19 }
 0x11b   : > { %v835_v31 = vmul.f32 %v803_v36, %v707_v34  ;;  %2701 = verf.f32 %v744_v40  ;;  %v660_v10 = vadd.f32 %v2973_v37, %v659_v47  ;;  %v1628_v55 = vadd.f32 %v1596_v41, %v1527_v46 }
 0x11c   : > { %v2690_v56 = vpop.eup %2689  ;;  %v834_v57 = vmul.f32 %v802_v50, %v706_v6  ;;  %v747_v2 = vmul.f32 0.70710677, %v665_v52  ;;  %v1798_v3 = vmul.f32 0.5, %v3132_v43  ;;  %v710_v8 = vmul.f32 0.5, %v640_v59 }
 0x11d   : > { %v2692_v42 = vpop.eup %2691  ;;  %867 = vst.msk [vmem:[#allocation2 + $0xf9] sm:$0xff] %vm285_vm1, %v835_v31  ;;  %v805_v5 = vadd.f32 1.0, %v2690_v56  ;;  %v746_v1 = vmul.f32 0.70710677, %v660_v10  ;;  %v2580_v13 = vpop.f32.mrb[28].mxu0  ;;  %v1729_v17 = vadd.f32 %v1697_v27, %v1628_v55  ;;  %v919_v19 = vmul.f32 %v2988_v54, %v3044_v9 }
 0x11e   : > { %866 = vst.msk [vmem:[#allocation2 + $0xf1] sm:$0xff] %vm285_vm1, %v834_v57  ;;  %v804_v34 = vadd.f32 1.0, %v2692_v42  ;;  %2703 = verf.f32 %v747_v2  ;;  %v675_v20 = vadd.f32 %v2580_v13, %v2973_v37  ;;  %v669_v18 = vpop.f32.mrb[29].mxu0  ;;  %v988_v11 = vmul.f32 %v2994_v58, %v3054_v14 }
 0x11f   : > { %v2694_v6 = vpop.eup %2693  ;;  %v837_v43 = vmul.f32 %v805_v5, %v709_v30  ;;  %2705 = verf.f32 %v746_v1  ;;  %v670_v21 = vadd.f32 %v2973_v37, %v669_v18  ;;  %v1767_v59 = vadd.f32 %v3118_v12, %v1729_v17 }
 0x120   : > { %v2696_v23 = vpop.eup %2695  ;;  %v836_v51 = vmul.f32 %v804_v34, %v708_v33  ;;  %v749_v28 = vmul.f32 0.70710677, %v675_v20  ;;  %v1894_v29 = vadd.f32 1.0, %v2694_v6  ;;  %v713_v40 = vmul.f32 0.5, %v655_v53 }
 0x121   : > { %v2698_v35 = vpop.eup %2697  ;;  %869 = vst.msk [vmem:[#allocation2 + $0x111] sm:$0xff] %vm285_vm1, %v837_v43  ;;  %v807_v36 = vadd.f32 1.0, %v2696_v23  ;;  %v712_v9 = vmul.f32 0.5, %v650_v24  ;;  %v748_v45 = vmul.f32 0.70710677, %v670_v21  ;;  %v2583_v30 = vpop.f32.mrb[30].mxu0  ;;  %v1020_v24 = vadd.f32 %v988_v11, %v919_v19 }
 0x122   : > { %868 = vst.msk [vmem:[#allocation2 + $0x109] sm:$0xff] %vm285_vm1, %v836_v51  ;;  %v806_v46 = vadd.f32 1.0, %v2698_v35  ;;  %2707 = verf.f32 %v749_v28  ;;  %v685_v41 = vadd.f32 %v2583_v30, %v2973_v37  ;;  %v679_v33 = vpop.f32.mrb[31].mxu0  ;;  %v1926_v50 = vmul.f32 %v1894_v29, %v1798_v3  ;;  %v3186_v23 = vld [vmem:[#allocation2 + $0x48] sm:$0xff] }
 0x123   : > { %v839_v47 = vmul.f32 %v807_v36, %v711_v63  ;;  %2709 = verf.f32 %v748_v45  ;;  %v680_v14 = vadd.f32 %v2973_v37, %v679_v33  ;;  %v1831_v27 = vmul.f32 0.70710677, %v1767_v59  ;;  %v3199_v11 = vld [vmem:[#allocation2 + $0x4a] sm:$0xff] }
 0x124   : > { %v2700_v31 = vpop.eup %2699  ;;  %v838_v55 = vmul.f32 %v806_v46, %v710_v8  ;;  %v715_v56 = vmul.f32 0.5, %v665_v52  ;;  %v751_v53 = vmul.f32 0.70710677, %v685_v41  ;;  %2588 = vmatprep.mubr.msk.f32.mxu1 %vm285_vm1, %v1926_v50  ;;  %v714_v42 = vmul.f32 0.5, %v660_v10 }
 0x125   : > { %v2702_v57 = vpop.eup %2701  ;;  %871 = vst.msk [vmem:[#allocation2 + $0x129] sm:$0xff] %vm285_vm1, %v839_v47  ;;  %v809_v2 = vadd.f32 1.0, %v2700_v31  ;;  %v750_v5 = vmul.f32 0.70710677, %v680_v14  ;;  %2711 = verf.f32 %v1831_v27  ;;  %v1089_v37 = vmul.f32 %v3003_v0, %v3056_v15  ;;  %v3188_v15 = vld [vmem:[#allocation2 + $0x49] sm:$0xff] }
 0x126   : > { %870 = vst.msk [vmem:[#allocation2 + $0x121] sm:$0xff] %vm285_vm1, %v838_v55  ;;  %v808_v63 = vadd.f32 1.0, %v2702_v57  ;;  %2713 = verf.f32 %v751_v53  ;;  %v1191_v52 = vmul.f32 %v3034_v60, %v3078_v32  ;;  %v717_v8 = vmul.f32 0.5, %v675_v20  ;;  %v3217_v55 = vld [vmem:[#allocation2 + $0x50] sm:$0xff] }
 0x127   : > { %v841_v3 = vmul.f32 %v809_v2, %v713_v40  ;;  %v716_v1 = vmul.f32 0.5, %v670_v21  ;;  %2715 = verf.f32 %v750_v5  ;;  %v719_v34 = vmul.f32 0.5, %v685_v41 }
 0x128   : > { %v2704_v13 = vpop.eup %2703  ;;  %v840_v17 = vmul.f32 %v808_v63, %v712_v9  ;;  %v1799_v10 = vmul.f32 0.5, %v1767_v59  ;;  %v1121_v18 = vadd.f32 %v1089_v37, %v1020_v24  ;;  %v718_v43 = vmul.f32 0.5, %v680_v14 }
 0x129   : > { %v2706_v19 = vpop.eup %2705  ;;  %873 = vst.msk [vmem:[#allocation2 + $0x141] sm:$0xff] %vm285_vm1, %v841_v3  ;;  %v811_v6 = vadd.f32 1.0, %v2704_v13  ;;  %v920_v51 = vmul.f32 %v2988_v54, %v3110_v61  ;;  %v989_v20 = vmul.f32 %v2994_v58, %v3100_v49  ;;  %v1292_v28 = vmul.f32 %v3040_v4, %v3084_v39 }
 0x12a   : > { %872 = vst.msk [vmem:[#allocation2 + $0x139] sm:$0xff] %vm285_vm1, %v840_v17  ;;  %v810_v21 = vadd.f32 1.0, %v2706_v19  ;;  %v1223_v59 = vadd.f32 %v1191_v52, %v1121_v18  ;;  %v1393_v29 = vmul.f32 %v3061_v16, %v3106_v62  ;;  %v1090_v61 = vmul.f32 %v3003_v0, %v3134_v44  ;;  %v3225_v52 = vld [vmem:[#allocation2 + $0x51] sm:$0xff] }
 0x12b   : > { %v843_v35 = vmul.f32 %v811_v6, %v715_v56  ;;  %v1021_v36 = vadd.f32 %v989_v20, %v920_v51  ;;  %v1192_v49 = vmul.f32 %v3034_v60, %v3144_v7  ;;  %v1496_v30 = vmul.f32 %v3072_v25, %v3186_v23  ;;  %v3233_v6 = vld [vmem:[#allocation2 + $0x52] sm:$0xff] }
 0x12c   : > { %v2708_v40 = vpop.eup %2707  ;;  %v842_v9 = vmul.f32 %v810_v21, %v714_v42  ;;  %v1324_v45 = vadd.f32 %v1292_v28, %v1223_v59  ;;  %v1597_v46 = vmul.f32 %v3089_v38, %v3188_v15  ;;  %v1698_v50 = vmul.f32 %v3098_v48, %v3199_v11 }
 0x12d   : > { %v2710_v41 = vpop.eup %2709  ;;  %875 = vst.msk [vmem:[#allocation2 + $0x159] sm:$0xff] %vm285_vm1, %v843_v35  ;;  %v813_v33 = vadd.f32 1.0, %v2708_v40  ;;  %v1122_v44 = vadd.f32 %v1090_v61, %v1021_v36  ;;  %v921_v47 = vmul.f32 %v2988_v54, %v3078_v32  ;;  %v1293_v31 = vmul.f32 %v3040_v4, %v3149_v22  ;;  %v3241_v35 = vld [vmem:[#allocation2 + $0x61] sm:$0xff] }
 0x12e   : > { %874 = vst.msk [vmem:[#allocation2 + $0x151] sm:$0xff] %vm285_vm1, %v842_v9  ;;  %v812_v14 = vadd.f32 1.0, %v2710_v41  ;;  %v1425_v27 = vadd.f32 %v1393_v29, %v1324_v45  ;;  %v990_v56 = vmul.f32 %v2994_v58, %v3084_v39  ;;  %v1091_v2 = vmul.f32 %v3003_v0, %v3106_v62  ;;  %v3239_v29 = vld [vmem:[#allocation2 + $0x60] sm:$0xff] }
 0x12f   : > { %v2712_v53 = vpop.eup %2711  ;;  %v845_v24 = vmul.f32 %v813_v33, %v717_v8  ;;  %v1224_v57 = vadd.f32 %v1192_v49, %v1122_v44  ;;  %v1193_v32 = vmul.f32 %v3034_v60, %v3186_v23  ;;  %v1394_v8 = vmul.f32 %v3061_v16, %v3154_v26  ;;  %v3251_v45 = vld [vmem:[#allocation2 + $0x62] sm:$0xff] }
 0x130   : > { %v2714_v42 = vpop.eup %2713  ;;  %v844_v5 = vmul.f32 %v812_v14, %v716_v1  ;;  %v1895_v63 = vadd.f32 1.0, %v2712_v53  ;;  %v1528_v37 = vadd.f32 %v1496_v30, %v1425_v27  ;;  %v1022_v3 = vadd.f32 %v990_v56, %v921_v47 }
 0x131   : > { %v2716_v13 = vpop.eup %2715  ;;  %877 = vst.msk [vmem:[#allocation2 + $0x171] sm:$0xff] %vm285_vm1, %v845_v24  ;;  %v815_v39 = vadd.f32 1.0, %v2714_v42  ;;  %v1325_v17 = vadd.f32 %v1293_v31, %v1224_v57  ;;  %v1497_v62 = vmul.f32 %v3072_v25, %v3217_v55  ;;  %v1598_v59 = vmul.f32 %v3089_v38, %v3225_v52  ;;  %v3269_v24 = vld [vmem:[#allocation2 + $0x68] sm:$0xff] }
 0x132   : > { %876 = vst.msk [vmem:[#allocation2 + $0x169] sm:$0xff] %vm285_vm1, %v844_v5  ;;  %v814_v18 = vadd.f32 1.0, %v2716_v13  ;;  %v1927_v1 = vmul.f32 %v1895_v63, %v1799_v10  ;;  %v1629_v19 = vadd.f32 %v1597_v46, %v1528_v37  ;;  %v1123_v51 = vadd.f32 %v1091_v2, %v1022_v3  ;;  %v3271_v57 = vld [vmem:[#allocation2 + $0x69] sm:$0xff] }
 0x133   : > { %v847_v20 = vmul.f32 %v815_v39, %v719_v34  ;;  %v1426_v21 = vadd.f32 %v1394_v8, %v1325_v17  ;;  %v1294_v28 = vmul.f32 %v3040_v4, %v3188_v15  ;;  %v922_v49 = vmul.f32 %v2988_v54, %v3144_v7  ;;  %v3279_v5 = vld [vmem:[#allocation2 + $0x6a] sm:$0xff] }
 0x134   : > { %v846_v36 = vmul.f32 %v814_v18, %v718_v43  ;;  %2589 = vmatmul.mubr.msk.f32.vlgmr.msra.gmra.mrb[0].mxu1 %vm285_vm1, %v1927_v1  ;;  %v1730_v10 = vadd.f32 %v1698_v50, %v1629_v19  ;;  %v1225_v61 = vadd.f32 %v1193_v32, %v1123_v51  ;;  %v1699_v40 = vmul.f32 %v3098_v48, %v3233_v6 }
 0x135   : > { %879 = vst.msk [vmem:[#allocation2 + $0x189] sm:$0xff] %vm285_vm1, %v847_v20  ;;  %v1529_v34 = vadd.f32 %v1497_v62, %v1426_v21  ;;  %v1395_v9 = vmul.f32 %v3061_v16, %v3199_v11  ;;  %v991_v43 = vmul.f32 %v2994_v58, %v3149_v22  ;;  %v1498_v7 = vmul.f32 %v3072_v25, %v3239_v29  ;;  %v3294_v20 = vld [vmem:[#allocation2 + $0x78] sm:$0xff] }
 0x136   : > { %878 = vst.msk [vmem:[#allocation2 + $0x181] sm:$0xff] %vm285_vm1, %v846_v36  ;;  %v1768_v30 = vadd.f32 %v3118_v12, %v1730_v10  ;;  %v1326_v46 = vadd.f32 %v1294_v28, %v1225_v61  ;;  %v1599_v41 = vmul.f32 %v3089_v38, %v3241_v35  ;;  %v1092_v44 = vmul.f32 %v3003_v0, %v3154_v26  ;;  %v3296_v21 = vld [vmem:[#allocation2 + $0x79] sm:$0xff] }
 0x137   : > { %v1630_v33 = vadd.f32 %v1598_v59, %v1529_v34  ;;  %v1023_v50 = vadd.f32 %v991_v43, %v922_v49  ;;  %v1194_v47 = vmul.f32 %v3034_v60, %v3217_v55  ;;  %v1700_v27 = vmul.f32 %v3098_v48, %v3251_v45  ;;  %v3304_v49 = vld [vmem:[#allocation2 + $0x7a] sm:$0xff] }
 0x138   : > { %v1832_v22 = vmul.f32 0.70710677, %v1768_v30  ;;  %v1427_v14 = vadd.f32 %v1395_v9, %v1326_v46  ;;  %v1295_v31 = vmul.f32 %v3040_v4, %v3225_v52  ;;  %v923_v26 = vmul.f32 %v2988_v54, %v3186_v23 }
 0x139   : > { %v1731_v56 = vadd.f32 %v1699_v40, %v1630_v33  ;;  %v1124_v53 = vadd.f32 %v1092_v44, %v1023_v50  ;;  %v992_v2 = vmul.f32 %v2994_v58, %v3188_v15  ;;  %v1396_v42 = vmul.f32 %v3061_v16, %v3233_v6  ;;  %v3317_v44 = vld [vmem:[#allocation2 + $0x80] sm:$0xff] }
 0x13a   : > { %2717 = verf.f32 %v1832_v22  ;;  %v1530_v32 = vadd.f32 %v1498_v7, %v1427_v14  ;;  %v1093_v63 = vmul.f32 %v3003_v0, %v3199_v11  ;;  %v1195_v23 = vmul.f32 %v3034_v60, %v3239_v29 }
 0x13b   : > { %v1769_v37 = vadd.f32 %v3118_v12, %v1731_v56  ;;  %v1226_v3 = vadd.f32 %v1194_v47, %v1124_v53  ;;  %v1024_v13 = vadd.f32 %v992_v2, %v923_v26  ;;  %v1800_v39 = vmul.f32 0.5, %v1768_v30  ;;  %v3325_v53 = vld [vmem:[#allocation2 + $0x81] sm:$0xff] }
 0x13c   : > { %v1631_v17 = vadd.f32 %v1599_v41, %v1530_v32  ;;  %v1499_v15 = vmul.f32 %v3072_v25, %v3269_v24  ;;  %v1600_v8 = vmul.f32 %v3089_v38, %v3271_v57  ;;  %v1701_v11 = vmul.f32 %v3098_v48, %v3279_v5 }
 0x13d   : > { %v1833_v62 = vmul.f32 0.70710677, %v1769_v37  ;;  %v1327_v18 = vadd.f32 %v1295_v31, %v1226_v3  ;;  %v1125_v1 = vadd.f32 %v1093_v63, %v1024_v13  ;;  %v1296_v51 = vmul.f32 %v3040_v4, %v3241_v35 }
 0x13e   : > { %v1732_v19 = vadd.f32 %v1700_v27, %v1631_v17  ;;  %v924_v59 = vmul.f32 %v2988_v54, %v3217_v55  ;;  %v993_v28 = vmul.f32 %v2994_v58, %v3225_v52  ;;  %v1397_v61 = vmul.f32 %v3061_v16, %v3251_v45 }
 0x13f   : > { %2719 = verf.f32 %v1833_v62  ;;  %v1428_v36 = vadd.f32 %v1396_v42, %v1327_v18  ;;  %v1227_v10 = vadd.f32 %v1195_v23, %v1125_v1  ;;  %v1094_v9 = vmul.f32 %v3003_v0, %v3233_v6 }
 0x140   : > { %v1770_v34 = vadd.f32 %v3118_v12, %v1732_v19  ;;  %v1025_v40 = vadd.f32 %v993_v28, %v924_v59  ;;  %v1196_v55 = vmul.f32 %v3034_v60, %v3269_v24  ;;  %v1500_v52 = vmul.f32 %v3072_v25, %v3294_v20 }
 0x141   : > { %v1531_v43 = vadd.f32 %v1499_v15, %v1428_v36  ;;  %v1328_v30 = vadd.f32 %v1296_v51, %v1227_v10  ;;  %v1601_v46 = vmul.f32 %v3089_v38, %v3296_v21  ;;  %v1801_v7 = vmul.f32 0.5, %v1769_v37  ;;  %v3331_v37 = vld [vmem:[#allocation2 + $0x82] sm:$0xff] }
 0x142   : > { %v1834_v41 = vmul.f32 0.70710677, %v1770_v34  ;;  %v1702_v33 = vmul.f32 %v3098_v48, %v3304_v49  ;;  %v1126_v50 = vadd.f32 %v1094_v9, %v1025_v40  ;;  %v1297_v22 = vmul.f32 %v3040_v4, %v3271_v57  ;;  %v3352_v9 = vld [vmem:[#allocation2 + $0x90] sm:$0xff] }
 0x143   : > { %v1632_v6 = vadd.f32 %v1600_v8, %v1531_v43  ;;  %v1429_v47 = vadd.f32 %v1397_v61, %v1328_v30  ;;  %v925_v14 = vmul.f32 %v2988_v54, %v3239_v29  ;;  %v1398_v56 = vmul.f32 %v3061_v16, %v3279_v5 }
 0x144   : > { %v2718_v27 = vpop.eup %2717  ;;  %2721 = verf.f32 %v1834_v41  ;;  %v1228_v31 = vadd.f32 %v1196_v55, %v1126_v50  ;;  %v994_v26 = vmul.f32 %v2994_v58, %v3241_v35  ;;  %v1501_v63 = vmul.f32 %v3072_v25, %v3317_v44 }
 0x145   : > { %v1896_v2 = vadd.f32 1.0, %v2718_v27  ;;  %v1733_v32 = vadd.f32 %v1701_v11, %v1632_v6  ;;  %v1532_v42 = vadd.f32 %v1500_v52, %v1429_v47  ;;  %v1095_v13 = vmul.f32 %v3003_v0, %v3251_v45 }
 0x146   : > { %v1329_v29 = vadd.f32 %v1297_v22, %v1228_v31  ;;  %v1026_v3 = vadd.f32 %v994_v26, %v925_v14  ;;  %v1197_v23 = vmul.f32 %v3034_v60, %v3294_v20  ;;  %v1602_v8 = vmul.f32 %v3089_v38, %v3325_v53  ;;  %v3373_v31 = vld [vmem:[%s4112_s3] ss:$0 sm:$0xff] }
 0x147   : > { %v1928_v17 = vmul.f32 %v1896_v2, %v1800_v39  ;;  %v1771_v15 = vadd.f32 %v3118_v12, %v1733_v32  ;;  %v1633_v35 = vadd.f32 %v1601_v46, %v1532_v42  ;;  %v1703_v18 = vmul.f32 %v3098_v48, %v3331_v37  ;;  %v3379_v42 = vld [vmem:[#allocation2 + $0x98] sm:$0xff] }
 0x148   : > { %v1430_v62 = vadd.f32 %v1398_v56, %v1329_v29  ;;  %v1127_v11 = vadd.f32 %v1095_v13, %v1026_v3  ;;  %v1298_v1 = vmul.f32 %v3040_v4, %v3296_v21  ;;  %v1399_v39 = vmul.f32 %v3061_v16, %v3304_v49 }
 0x149   : > { %v2720_v19 = vpop.eup %2719  ;;  %2591 = vmatprep.mubr.msk.f32.mxu1 %vm285_vm1, %v1928_v17  ;;  %v1835_v45 = vmul.f32 0.70710677, %v1771_v15  ;;  %v1734_v51 = vadd.f32 %v1702_v33, %v1633_v35  ;;  %v926_v59 = vmul.f32 %v2988_v54, %v3269_v24  ;;  %v995_v61 = vmul.f32 %v2994_v58, %v3271_v57  ;;  %v3358_v24 = vld [vmem:[#allocation2 + $0x91] sm:$0xff]  ;;  %v3390_v17 = vld [vmem:[#allocation2 + $0x99] sm:$0xff] }
 0x14a   : > { %v1897_v28 = vadd.f32 1.0, %v2720_v19  ;;  %v1533_v36 = vadd.f32 %v1501_v63, %v1430_v62  ;;  %v1229_v10 = vadd.f32 %v1197_v23, %v1127_v11  ;;  %v1096_v55 = vmul.f32 %v3003_v0, %v3279_v5  ;;  %v3363_v0 = vld [vmem:[#allocation2 + $0x92] sm:$0xff]  ;;  %v3384_v63 = vld [vmem:[%s4112_s3 + $0x1] ss:$0 sm:$0xff] }
 0x14b   : > { %2723 = verf.f32 %v1835_v45  ;;  %v1772_v40 = vadd.f32 %v3118_v12, %v1734_v51  ;;  %v1198_v43 = vmul.f32 %v3034_v60, %v3317_v44  ;;  %v1027_v46 = vadd.f32 %v995_v61, %v926_v59  ;;  %v3406_v51 = vld [vmem:[#allocation2 + $0x9a] sm:$0xff] }
 0x14c   : > { %v1929_v30 = vmul.f32 %v1897_v28, %v1801_v7  ;;  %v1634_v52 = vadd.f32 %v1602_v8, %v1533_v36  ;;  %v1330_v54 = vadd.f32 %v1298_v1, %v1229_v10  ;;  %v1802_v41 = vmul.f32 0.5, %v1770_v34  ;;  %v3396_v8 = vld [vmem:[%s4112_s3 + $0x2] ss:$0 sm:$0xff] }
 0x14d   : > { %v1836_v33 = vmul.f32 0.70710677, %v1772_v40  ;;  %v1502_v6 = vmul.f32 %v3072_v25, %v3352_v9  ;;  %v1128_v5 = vadd.f32 %v1096_v55, %v1027_v46  ;;  %v1603_v7 = vmul.f32 %v3089_v38, %v3358_v24  ;;  %v3415_v55 = vld [vmem:[#allocation2 + $0xa8] sm:$0xff] }
 0x14e   : > { %v2722_v58 = vpop.eup %2721  ;;  %2592 = vmatmul.mubr.msk.f32.gmra.mrb[2].mxu1 %vm285_vm1, %v1929_v30  ;;  %v1735_v57 = vadd.f32 %v1703_v18, %v1634_v52  ;;  %v1431_v50 = vadd.f32 %v1399_v39, %v1330_v54  ;;  %v1299_v34 = vmul.f32 %v3040_v4, %v3325_v53  ;;  %v927_v56 = vmul.f32 %v3373_v31, %v3294_v20 }
 0x14f   : > { %v1898_v47 = vadd.f32 1.0, %v2722_v58  ;;  %2725 = verf.f32 %v1836_v33  ;;  %v1230_v27 = vadd.f32 %v1198_v43, %v1128_v5  ;;  %v1803_v2 = vmul.f32 0.5, %v1771_v15 }
 0x150   : > { %v1773_v22 = vadd.f32 %v3118_v12, %v1735_v57  ;;  %v1534_v14 = vadd.f32 %v1502_v6, %v1431_v50  ;;  %v1704_v32 = vmul.f32 %v3098_v48, %v3363_v0  ;;  %v996_v29 = vmul.f32 %v3384_v63, %v3296_v21  ;;  %v3425_v50 = vld [vmem:[#allocation2 + $0xa9] sm:$0xff] }
 0x151   : > { %v1930_v26 = vmul.f32 %v1898_v47, %v1802_v41  ;;  %v1331_v23 = vadd.f32 %v1299_v34, %v1230_v27  ;;  %v1400_v20 = vmul.f32 %v3061_v16, %v3331_v37  ;;  %v1804_v15 = vmul.f32 0.5, %v1772_v40  ;;  %v3430_v47 = vld [vmem:[#allocation2 + $0xaa] sm:$0xff] }
 0x152   : > { %v1837_v3 = vmul.f32 0.70710677, %v1773_v22  ;;  %v1635_v13 = vadd.f32 %v1603_v7, %v1534_v14  ;;  %v1028_v35 = vadd.f32 %v996_v29, %v927_v56  ;;  %v1097_v21 = vmul.f32 %v3396_v8, %v3304_v49 }
 0x153   : > { %2594 = vmatprep.mubr.msk.f32.mxu1 %vm285_vm1, %v1930_v26  ;;  %v1199_v62 = vmul.f32 %v3034_v60, %v3352_v9  ;;  %v1432_v11 = vadd.f32 %v1400_v20, %v1331_v23  ;;  %v1503_v1 = vmul.f32 %v3072_v25, %v3379_v42  ;;  %v1604_v45 = vmul.f32 %v3089_v38, %v3390_v17 }
 0x154   : > { %2727 = verf.f32 %v1837_v3  ;;  %v1736_v18 = vadd.f32 %v1704_v32, %v1635_v13  ;;  %v1129_v39 = vadd.f32 %v1097_v21, %v1028_v35  ;;  %v928_v59 = vmul.f32 %v3373_v31, %v3317_v44 }
 0x155   : > { %v2724_v19 = vpop.eup %2723  ;;  %v997_v49 = vmul.f32 %v3384_v63, %v3325_v53  ;;  %v1535_v10 = vadd.f32 %v1503_v1, %v1432_v11  ;;  %v1300_v61 = vmul.f32 %v3040_v4, %v3358_v24  ;;  %v1098_v30 = vmul.f32 %v3396_v8, %v3331_v37  ;;  %v3461_v1 = vld [vmem:[#allocation2 + $0xb2] sm:$0xff] }
 0x156   : > { %v1899_v28 = vadd.f32 1.0, %v2724_v19  ;;  %v1774_v36 = vadd.f32 %v3118_v12, %v1736_v18  ;;  %v1231_v40 = vadd.f32 %v1199_v62, %v1129_v39  ;;  %v1200_v44 = vmul.f32 %v3034_v60, %v3379_v42 }
 0x157   : > { %v1029_v43 = vadd.f32 %v997_v49, %v928_v59  ;;  %v1636_v53 = vadd.f32 %v1604_v45, %v1535_v10  ;;  %v1705_v46 = vmul.f32 %v3098_v48, %v3406_v51  ;;  %v1805_v33 = vmul.f32 0.5, %v1773_v22 }
 0x158   : > { %v1931_v52 = vmul.f32 %v1899_v28, %v1803_v2  ;;  %v1838_v54 = vmul.f32 0.70710677, %v1774_v36  ;;  %v1332_v58 = vadd.f32 %v1300_v61, %v1231_v40  ;;  %v1401_v57 = vmul.f32 %v3061_v16, %v3363_v0  ;;  %v3439_v2 = vld [vmem:[#allocation2 + $0xb0] sm:$0xff]  ;;  %v3476_v40 = vld [vmem:[#allocation2 + $0xc0] sm:$0xff] }
 0x159   : > { %v2726_v41 = vpop.eup %2725  ;;  %v1130_v6 = vadd.f32 %v1098_v30, %v1029_v43  ;;  %v1737_v60 = vadd.f32 %v1705_v46, %v1636_v53  ;;  %v1504_v5 = vmul.f32 %v3072_v25, %v3415_v55  ;;  %v1301_v22 = vmul.f32 %v3040_v4, %v3390_v17  ;;  %v3489_v53 = vld [vmem:[#allocation2 + $0xc1] sm:$0xff] }
 0x15a   : > { %2595 = vmatmul.mubr.msk.f32.gmra.mrb[4].mxu1 %vm285_vm1, %v1931_v52  ;;  %v1900_v37 = vadd.f32 1.0, %v2726_v41  ;;  %2729 = verf.f32 %v1838_v54  ;;  %v1433_v7 = vadd.f32 %v1401_v57, %v1332_v58  ;;  %v929_v14 = vmul.f32 %v3373_v31, %v3352_v9  ;;  %v3447_v9 = vld [vmem:[#allocation2 + $0xb1] sm:$0xff]  ;;  %v3485_v52 = vld [vmem:[%s4112_s3 + $0x6] ss:$0 sm:$0xff] }
 0x15b   : > { %v1232_v34 = vadd.f32 %v1200_v44, %v1130_v6  ;;  %v1775_v56 = vadd.f32 %v3118_v12, %v1737_v60  ;;  %v1605_v26 = vmul.f32 %v3089_v38, %v3425_v50  ;;  %v998_v32 = vmul.f32 %v3384_v63, %v3358_v24  ;;  %v3455_v24 = vld [vmem:[%s4112_s3 + $0x4] ss:$0 sm:$0xff]  ;;  %v3498_v60 = vld [vmem:[%s4112_s3 + $0x8] ss:$0 sm:$0xff] }
 0x15c   : > { %v1932_v27 = vmul.f32 %v1900_v37, %v1804_v15  ;;  %v1536_v29 = vadd.f32 %v1504_v5, %v1433_v7  ;;  %v1706_v3 = vmul.f32 %v3098_v48, %v3430_v47  ;;  %v1402_v4 = vmul.f32 %v3061_v16, %v3406_v51  ;;  %v3502_v7 = vld [vmem:[#allocation2 + $0xc2] sm:$0xff] }
 0x15d   : > { %v1333_v13 = vadd.f32 %v1301_v22, %v1232_v34  ;;  %v1839_v20 = vmul.f32 0.70710677, %v1775_v56  ;;  %v1030_v15 = vadd.f32 %v998_v32, %v929_v14  ;;  %v1099_v35 = vmul.f32 %v3396_v8, %v3363_v0 }
 0x15e   : > { %v2728_v23 = vpop.eup %2727  ;;  %2597 = vmatprep.mubr.msk.f32.mxu1 %vm285_vm1, %v1932_v27  ;;  %v1201_v21 = vmul.f32 %v3455_v24, %v3415_v55  ;;  %v1637_v16 = vadd.f32 %v1605_v26, %v1536_v29  ;;  %v1505_v11 = vmul.f32 %v3072_v25, %v3439_v2  ;;  %v1806_v19 = vmul.f32 0.5, %v1774_v36  ;;  %v3472_v25 = vld [vmem:[%s4112_s3 + $0x5] ss:$0 sm:$0xff]  ;;  %v3509_v26 = vld [vmem:[#allocation2 + $0xc8] sm:$0xff] }
 0x15f   : > { %v1901_v62 = vadd.f32 1.0, %v2728_v23  ;;  %v1434_v18 = vadd.f32 %v1402_v4, %v1333_v13  ;;  %2731 = verf.f32 %v1839_v20  ;;  %v1606_v0 = vmul.f32 %v3089_v38, %v3447_v9  ;;  %v3517_v4 = vld [vmem:[#allocation2 + $0xc9] sm:$0xff] }
 0x160   : > { %v1131_v45 = vadd.f32 %v1099_v35, %v1030_v15  ;;  %v1738_v59 = vadd.f32 %v1706_v3, %v1637_v16  ;;  %v930_v28 = vmul.f32 %v3373_v31, %v3379_v42  ;;  %v1707_v10 = vmul.f32 %v3098_v48, %v3461_v1 }
 0x161   : > { %v1933_v39 = vmul.f32 %v1901_v62, %v1805_v33  ;;  %v1537_v49 = vadd.f32 %v1505_v11, %v1434_v18  ;;  %v1302_v36 = vmul.f32 %v3472_v25, %v3425_v50  ;;  %v999_v43 = vmul.f32 %v3384_v63, %v3390_v17  ;;  %v3531_v18 = vld [vmem:[%s4112_s3 + $0x9] ss:$0 sm:$0xff]  ;;  %v3535_v11 = vld [vmem:[#allocation2 + $0xca] sm:$0xff] }
 0x162   : > { %v1233_v61 = vadd.f32 %v1201_v21, %v1131_v45  ;;  %v1807_v42 = vmul.f32 0.5, %v1775_v56  ;;  %v1776_v30 = vadd.f32 %v3118_v12, %v1738_v59  ;;  %v1403_v54 = vmul.f32 %v3485_v52, %v3430_v47 }
 0x163   : > { %2598 = vmatmul.mubr.msk.f32.gmra.mrb[6].mxu1 %vm285_vm1, %v1933_v39  ;;  %v1638_v44 = vadd.f32 %v1606_v0, %v1537_v49  ;;  %v1031_v33 = vadd.f32 %v999_v43, %v930_v28  ;;  %v1100_v17 = vmul.f32 %v3396_v8, %v3406_v51  ;;  %v1202_v58 = vmul.f32 %v3455_v24, %v3439_v2 }
 0x164   : > { %v2730_v46 = vpop.eup %2729  ;;  %v1334_v41 = vadd.f32 %v1302_v36, %v1233_v61  ;;  %v1840_v6 = vmul.f32 0.70710677, %v1776_v30  ;;  %v1506_v5 = vmul.f32 %v3498_v60, %v3476_v40  ;;  %v1607_v51 = vmul.f32 %v3089_v38, %v3489_v53  ;;  %v3541_v61 = vld [vmem:[#allocation2 + $0xd8] sm:$0xff] }
 0x165   : > { %v1902_v57 = vadd.f32 1.0, %v2730_v46  ;;  %v1739_v37 = vadd.f32 %v1707_v10, %v1638_v44  ;;  %v1132_v22 = vadd.f32 %v1100_v17, %v1031_v33  ;;  %v931_v14 = vmul.f32 %v3373_v31, %v3415_v55 }
 0x166   : > { %v1435_v34 = vadd.f32 %v1403_v54, %v1334_v41  ;;  %2733 = verf.f32 %v1840_v6  ;;  %v1000_v32 = vmul.f32 %v3384_v63, %v3425_v50  ;;  %v1708_v3 = vmul.f32 %v3098_v48, %v3502_v7  ;;  %v3555_v54 = vld [vmem:[#allocation2 + $0xd9] sm:$0xff] }
 0x167   : > { %v1934_v27 = vmul.f32 %v1902_v57, %v1806_v19  ;;  %v1777_v56 = vadd.f32 %v3118_v12, %v1739_v37  ;;  %v1234_v13 = vadd.f32 %v1202_v58, %v1132_v22  ;;  %v1303_v38 = vmul.f32 %v3472_v25, %v3447_v9 }
 0x168   : > { %v1538_v29 = vadd.f32 %v1506_v5, %v1435_v34  ;;  %v1032_v23 = vadd.f32 %v1000_v32, %v931_v14  ;;  %v1101_v20 = vmul.f32 %v3396_v8, %v3430_v47  ;;  %v1203_v50 = vmul.f32 %v3455_v24, %v3476_v40  ;;  %v3568_v14 = vld [vmem:[#allocation2 + $0xda] sm:$0xff] }
 0x169   : > { %2600 = vmatprep.mubr.msk.f32.mxu1 %vm285_vm1, %v1934_v27  ;;  %v1841_v55 = vmul.f32 0.70710677, %v1777_v56  ;;  %v2732_v15 = vpop.eup %2731  ;;  %v1335_v21 = vadd.f32 %v1303_v38, %v1234_v13  ;;  %v1404_v48 = vmul.f32 %v3485_v52, %v3461_v1  ;;  %v1507_v62 = vmul.f32 %v3498_v60, %v3509_v26 }
 0x16a   : > { %v1639_v35 = vadd.f32 %v1607_v51, %v1538_v29  ;;  %v1903_v16 = vadd.f32 1.0, %v2732_v15  ;;  %v1608_v47 = vmul.f32 %v3531_v18, %v3517_v4  ;;  %v1133_v19 = vadd.f32 %v1101_v20, %v1032_v23 }
 0x16b   : > { %2735 = verf.f32 %v1841_v55  ;;  %v1808_v0 = vmul.f32 0.5, %v1776_v30  ;;  %v1436_v39 = vadd.f32 %v1404_v48, %v1335_v21  ;;  %v932_v59 = vmul.f32 %v3373_v31, %v3439_v2  ;;  %v3549_v30 = vld [vmem:[%s4112_s3 + $0xa] ss:$0 sm:$0xff] }
 0x16c   : > { %v1740_v45 = vadd.f32 %v1708_v3, %v1639_v35  ;;  %v1935_v49 = vmul.f32 %v1903_v16, %v1807_v42  ;;  %v1235_v28 = vadd.f32 %v1203_v50, %v1133_v19  ;;  %v1304_v10 = vmul.f32 %v3472_v25, %v3489_v53  ;;  %v3574_v3 = vld [vmem:[#allocation2 + $0xe0] sm:$0xff] }
 0x16d   : > { %v1001_v36 = vmul.f32 %v3384_v63, %v3447_v9  ;;  %v1539_v44 = vadd.f32 %v1507_v62, %v1436_v39  ;;  %v1709_v2 = vmul.f32 %v3549_v30, %v3535_v11  ;;  %v1405_v42 = vmul.f32 %v3485_v52, %v3502_v7  ;;  %v3593_v16 = vld [vmem:[#allocation2 + $0xe1] sm:$0xff] }
 0x16e   : > { %v1778_v43 = vadd.f32 %v3118_v12, %v1740_v45  ;;  %2601 = vmatmul.mubr.msk.f32.gmra.mrb[8].mxu1 %vm285_vm1, %v1935_v49  ;;  %v1336_v46 = vadd.f32 %v1304_v10, %v1235_v28  ;;  %v1102_v12 = vmul.f32 %v3396_v8, %v3461_v1  ;;  %v1204_v41 = vmul.f32 %v3455_v24, %v3509_v26  ;;  %v3595_v39 = vld [vmem:[#allocation2 + $0xe2] sm:$0xff] }
 0x16f   : > { %v1033_v9 = vadd.f32 %v1001_v36, %v932_v59  ;;  %v1809_v33 = vmul.f32 0.5, %v1777_v56  ;;  %v1640_v58 = vadd.f32 %v1608_v47, %v1539_v44  ;;  %v1508_v57 = vmul.f32 %v3498_v60, %v3541_v61 }
 0x170   : > { %v1842_v17 = vmul.f32 0.70710677, %v1778_v43  ;;  %v2734_v6 = vpop.eup %2733  ;;  %v1437_v37 = vadd.f32 %v1405_v42, %v1336_v46  ;;  %v1609_v5 = vmul.f32 %v3531_v18, %v3555_v54  ;;  %v933_v51 = vmul.f32 %v3373_v31, %v3476_v40  ;;  %v3581_v40 = vld [vmem:[%s4113_s4] ss:$0 sm:$0xff]  ;;  %v3606_v42 = vld [vmem:[#allocation2 + $0xf1] sm:$0xff] }
 0x171   : > { %v1134_v34 = vadd.f32 %v1102_v12, %v1033_v9  ;;  %v1904_v22 = vadd.f32 1.0, %v2734_v6  ;;  %v1741_v1 = vadd.f32 %v1709_v2, %v1640_v58  ;;  %v1002_v27 = vmul.f32 %v3384_v63, %v3489_v53  ;;  %v3617_v58 = vld [vmem:[#allocation2 + $0xf2] sm:$0xff] }
 0x172   : > { %2737 = verf.f32 %v1842_v17  ;;  %v1540_v56 = vadd.f32 %v1508_v57, %v1437_v37  ;;  %v1305_v29 = vmul.f32 %v3472_v25, %v3517_v4  ;;  %v1103_v13 = vmul.f32 %v3396_v8, %v3502_v7 }
 0x173   : > { %v1236_v32 = vadd.f32 %v1204_v41, %v1134_v34  ;;  %v1936_v38 = vmul.f32 %v1904_v22, %v1808_v0  ;;  %v1779_v55 = vadd.f32 %v3581_v40, %v1741_v1  ;;  %v1034_v23 = vadd.f32 %v1002_v27, %v933_v51 }
 0x174   : > { %v1205_v53 = vmul.f32 %v3455_v24, %v3541_v61  ;;  %v1641_v50 = vadd.f32 %v1609_v5, %v1540_v56  ;;  %v1710_v15 = vmul.f32 %v3549_v30, %v3568_v14  ;;  %v1406_v7 = vmul.f32 %v3485_v52, %v3535_v11 }
 0x175   : > { %v2736_v20 = vpop.eup %2735  ;;  %v1337_v35 = vadd.f32 %v1305_v29, %v1236_v32  ;;  %2603 = vmatprep.mubr.msk.f32.mxu1 %vm285_vm1, %v1936_v38  ;;  %v1843_v48 = vmul.f32 0.70710677, %v1779_v55  ;;  %v1509_v62 = vmul.f32 %v3498_v60, %v3574_v3  ;;  %v1135_v47 = vadd.f32 %v1103_v13, %v1034_v23 }
 0x176   : > { %v1905_v21 = vadd.f32 1.0, %v2736_v20  ;;  %v1810_v19 = vmul.f32 0.5, %v1778_v43  ;;  %v1742_v0 = vadd.f32 %v1710_v15, %v1641_v50  ;;  %v1306_v59 = vmul.f32 %v3472_v25, %v3555_v54  ;;  %v3604_v43 = vld [vmem:[#allocation2 + $0xf0] sm:$0xff]  ;;  %v3636_v20 = vld [vmem:[#allocation2 + $0xf9] sm:$0xff] }
 0x177   : > { %v1438_v45 = vadd.f32 %v1406_v7, %v1337_v35  ;;  %2739 = verf.f32 %v1843_v48  ;;  %v1237_v28 = vadd.f32 %v1205_v53, %v1135_v47  ;;  %v934_v10 = vmul.f32 %v3373_v31, %v3509_v26  ;;  %v3634_v53 = vld [vmem:[#allocation2 + $0xf8] sm:$0xff] }
 0x178   : > { %v1937_v49 = vmul.f32 %v1905_v21, %v1809_v33  ;;  %v1780_v36 = vadd.f32 %v3581_v40, %v1742_v0  ;;  %v1610_v2 = vmul.f32 %v3531_v18, %v3593_v16  ;;  %v1003_v46 = vmul.f32 %v3384_v63, %v3517_v4 }
 0x179   : > { %v1541_v44 = vadd.f32 %v1509_v62, %v1438_v45  ;;  %v1711_v9 = vmul.f32 %v3549_v30, %v3595_v39  ;;  %v1338_v12 = vadd.f32 %v1306_v59, %v1237_v28  ;;  %v1407_v26 = vmul.f32 %v3485_v52, %v3568_v14 }
 0x17a   : > { %2604 = vmatmul.mubr.msk.f32.gmra.mrb[10].mxu1 %vm285_vm1, %v1937_v49  ;;  %v1104_v41 = vmul.f32 %v3396_v8, %v3535_v11  ;;  %v1844_v33 = vmul.f32 0.70710677, %v1780_v36  ;;  %v1035_v57 = vadd.f32 %v1003_v46, %v934_v10  ;;  %v1206_v4 = vmul.f32 %v3455_v24, %v3574_v3  ;;  %v3654_v10 = vld [vmem:[#allocation2 + $0xfa] sm:$0xff] }
 0x17b   : > { %v1642_v17 = vadd.f32 %v1610_v2, %v1541_v44  ;;  %v1811_v37 = vmul.f32 0.5, %v1779_v55  ;;  %v1439_v5 = vadd.f32 %v1407_v26, %v1338_v12  ;;  %v1510_v34 = vmul.f32 %v3498_v60, %v3604_v43  ;;  %v3658_v2 = vld [vmem:[#allocation2 + $0x108] sm:$0xff] }
 0x17c   : > { %v2738_v6 = vpop.eup %2737  ;;  %v1611_v51 = vmul.f32 %v3531_v18, %v3606_v42  ;;  %2741 = verf.f32 %v1844_v33  ;;  %v1136_v1 = vadd.f32 %v1104_v41, %v1035_v57  ;;  %v1712_v56 = vmul.f32 %v3549_v30, %v3617_v58 }
 0x17d   : > { %v1906_v22 = vadd.f32 1.0, %v2738_v6  ;;  %v1743_v11 = vadd.f32 %v1711_v9, %v1642_v17  ;;  %v1542_v27 = vadd.f32 %v1510_v34, %v1439_v5  ;;  %v935_v32 = vmul.f32 %v3373_v31, %v3541_v61  ;;  %v3667_v17 = vld [vmem:[#allocation2 + $0x109] sm:$0xff] }
 0x17e   : > { %v1004_v29 = vmul.f32 %v3384_v63, %v3555_v54  ;;  %v1238_v55 = vadd.f32 %v1206_v4, %v1136_v1  ;;  %v1307_v23 = vmul.f32 %v3472_v25, %v3593_v16  ;;  %v1105_v35 = vmul.f32 %v3396_v8, %v3568_v14 }
 0x17f   : > { %v1938_v13 = vmul.f32 %v1906_v22, %v1810_v19  ;;  %v1781_v38 = vadd.f32 %v3581_v40, %v1743_v11  ;;  %v1643_v50 = vadd.f32 %v1611_v51, %v1542_v27  ;;  %v1207_v61 = vmul.f32 %v3455_v24, %v3604_v43  ;;  %v3678_v27 = vld [vmem:[#allocation2 + $0x10a] sm:$0xff] }
 0x180   : > { %v1036_v15 = vadd.f32 %v1004_v29, %v935_v32  ;;  %v1812_v54 = vmul.f32 0.5, %v1780_v36  ;;  %v1339_v21 = vadd.f32 %v1307_v23, %v1238_v55  ;;  %v1408_v48 = vmul.f32 %v3485_v52, %v3595_v39  ;;  %v3686_v23 = vld [vmem:[#allocation2 + $0x110] sm:$0xff] }
 0x181   : > { %2606 = vmatprep.mubr.msk.f32.mxu1 %vm285_vm1, %v1938_v13  ;;  %v1845_v7 = vmul.f32 0.70710677, %v1781_v38  ;;  %v2740_v62 = vpop.eup %2739  ;;  %v1744_v47 = vadd.f32 %v1712_v56, %v1643_v50  ;;  %v1511_v19 = vmul.f32 %v3498_v60, %v3634_v53  ;;  %v1612_v0 = vmul.f32 %v3531_v18, %v3636_v20  ;;  %v3688_v50 = vld [vmem:[#allocation2 + $0x111] sm:$0xff] }
 0x182   : > { %v1137_v14 = vadd.f32 %v1105_v35, %v1036_v15  ;;  %v1907_v45 = vadd.f32 1.0, %v2740_v62  ;;  %v1440_v59 = vadd.f32 %v1408_v48, %v1339_v21  ;;  %v936_v49 = vmul.f32 %v3373_v31, %v3574_v3 }
 0x183   : > { %2743 = verf.f32 %v1845_v7  ;;  %v3652_v28 = vadd.f32 %v3581_v40, %v1744_v47  ;;  %v1308_v44 = vmul.f32 %v3472_v25, %v3606_v42  ;;  %v1005_v46 = vmul.f32 %v3384_v63, %v3593_v16 }
 0x184   : > { %v1239_v36 = vadd.f32 %v1207_v61, %v1137_v14  ;;  %v1939_v9 = vmul.f32 %v1907_v45, %v1811_v37  ;;  %v1543_v12 = vadd.f32 %v1511_v19, %v1440_v59  ;;  %v1409_v26 = vmul.f32 %v3485_v52, %v3617_v58 }
 0x185   : > { %v1106_v3 = vmul.f32 %v3396_v8, %v3595_v39  ;;  %v1846_v41 = vmul.f32 0.70710677, %v3652_v28  ;;  %v1037_v57 = vadd.f32 %v1005_v46, %v936_v49  ;;  %v1208_v4 = vmul.f32 %v3455_v24, %v3634_v53  ;;  %v3706_v49 = vld [vmem:[#allocation2 + $0x112] sm:$0xff] }
 0x186   : > { %v1340_v33 = vadd.f32 %v1308_v44, %v1239_v36  ;;  %v2742_v6 = vpop.eup %2741  ;;  %2607 = vmatmul.mubr.msk.f32.gmra.mrb[12].mxu1 %vm285_vm1, %v1939_v9  ;;  %v1813_v16 = vmul.f32 0.5, %v1781_v38  ;;  %v1644_v37 = vadd.f32 %v1612_v0, %v1543_v12  ;;  %v1713_v5 = vmul.f32 %v3549_v30, %v3654_v10 }
 0x187   : > { %v1512_v39 = vmul.f32 %v3498_v60, %v3658_v2  ;;  %v1908_v34 = vadd.f32 1.0, %v2742_v6  ;;  %2745 = verf.f32 %v1846_v41  ;;  %v1138_v22 = vadd.f32 %v1106_v3, %v1037_v57  ;;  %v3715_v41 = vld [vmem:[#allocation2 + $0x120] sm:$0xff] }
 0x188   : > { %v1441_v51 = vadd.f32 %v1409_v26, %v1340_v33  ;;  %v1745_v11 = vadd.f32 %v1713_v5, %v1644_v37  ;;  %v1613_v1 = vmul.f32 %v3531_v18, %v3667_v17  ;;  %v937_v56 = vmul.f32 %v3373_v31, %v3604_v43  ;;  %v3717_v57 = vld [vmem:[#allocation2 + $0x121] sm:$0xff] }
 0x189   : > { %v1006_v32 = vmul.f32 %v3384_v63, %v3606_v42  ;;  %v1940_v29 = vmul.f32 %v1908_v34, %v1812_v54  ;;  %v1240_v38 = vadd.f32 %v1208_v4, %v1138_v22  ;;  %v1309_v55 = vmul.f32 %v3472_v25, %v3636_v20 }
 0x18a   : > { %v1544_v13 = vadd.f32 %v1512_v39, %v1441_v51  ;;  %v1783_v15 = vadd.f32 %v3581_v40, %v1745_v11  ;;  %v1107_v61 = vmul.f32 %v3396_v8, %v3617_v58  ;;  %v1209_v43 = vmul.f32 %v3455_v24, %v3658_v2  ;;  %v3729_v11 = vld [vmem:[#allocation2 + $0x122] sm:$0xff] }
 0x18b   : > { %v1038_v35 = vadd.f32 %v1006_v32, %v937_v56  ;;  %2609 = vmatprep.mubr.msk.f32.mxu1 %vm285_vm1, %v1940_v29  ;;  %v1714_v54 = vmul.f32 %v3549_v30, %v3678_v27  ;;  %v1341_v7 = vadd.f32 %v1309_v55, %v1240_v38  ;;  %v1410_v21 = vmul.f32 %v3485_v52, %v3654_v10 }
 0x18c   : > { %v1645_v42 = vadd.f32 %v1613_v1, %v1544_v13  ;;  %v1847_v62 = vmul.f32 0.70710677, %v1783_v15  ;;  %v1513_v47 = vmul.f32 %v3498_v60, %v3686_v23  ;;  %v1614_v58 = vmul.f32 %v3531_v18, %v3688_v50 }
 0x18d   : > { %v2744_v48 = vpop.eup %2743  ;;  %v1139_v19 = vadd.f32 %v1107_v61, %v1038_v35  ;;  %v1442_v45 = vadd.f32 %v1410_v21, %v1341_v7  ;;  %v1310_v59 = vmul.f32 %v3472_v25, %v3667_v17  ;;  %v938_v44 = vmul.f32 %v3373_v31, %v3634_v53 }
 0x18e   : > { %v1909_v0 = vadd.f32 1.0, %v2744_v48  ;;  %v1746_v14 = vadd.f32 %v1714_v54, %v1645_v42  ;;  %2747 = verf.f32 %v1847_v62  ;;  %v1007_v46 = vmul.f32 %v3384_v63, %v3636_v20  ;;  %v3742_v42 = vld [vmem:[#allocation2 + $0x129] sm:$0xff] }
 0x18f   : > { %v1241_v36 = vadd.f32 %v1209_v43, %v1139_v19  ;;  %v1545_v26 = vadd.f32 %v1513_v47, %v1442_v45  ;;  %v1411_v3 = vmul.f32 %v3485_v52, %v3678_v27  ;;  %v1108_v6 = vmul.f32 %v3396_v8, %v3654_v10  ;;  %v3740_v43 = vld [vmem:[#allocation2 + $0x128] sm:$0xff] }
 0x190   : > { %v1941_v9 = vmul.f32 %v1909_v0, %v1813_v16  ;;  %v1784_v12 = vadd.f32 %v3581_v40, %v1746_v14  ;;  %v1039_v4 = vadd.f32 %v1007_v46, %v938_v44  ;;  %v1210_v53 = vmul.f32 %v3455_v24, %v3686_v23  ;;  %v3749_v62 = vld [vmem:[#allocation2 + $0x12a] sm:$0xff] }
 0x191   : > { %v1342_v33 = vadd.f32 %v1310_v59, %v1241_v36  ;;  %v2746_v20 = vpop.eup %2745  ;;  %v1814_v16 = vmul.f32 0.5, %v3652_v28  ;;  %v1646_v5 = vadd.f32 %v1614_v58, %v1545_v26  ;;  %v1715_v39 = vmul.f32 %v3549_v30, %v3706_v49  ;;  %v3764_v26 = vld [vmem:[#allocation2 + $0x138] sm:$0xff] }
 0x192   : > { %2610 = vmatmul.mubr.msk.f32.gmra.mrb[14].mxu1 %vm285_vm1, %v1941_v9  ;;  %v1848_v37 = vmul.f32 0.70710677, %v1784_v12  ;;  %v1910_v34 = vadd.f32 1.0, %v2746_v20  ;;  %v1514_v22 = vmul.f32 %v3498_v60, %v3715_v41  ;;  %v1140_v10 = vadd.f32 %v1108_v6, %v1039_v4 }
 0x193   : > { %v1443_v51 = vadd.f32 %v1411_v3, %v1342_v33  ;;  %v1747_v1 = vadd.f32 %v1715_v39, %v1646_v5  ;;  %v1615_v56 = vmul.f32 %v3531_v18, %v3717_v57  ;;  %v1311_v28 = vmul.f32 %v3472_v25, %v3688_v50 }
 0x194   : > { %2749 = verf.f32 %v1848_v37  ;;  %v1942_v32 = vmul.f32 %v1910_v34, %v1814_v16  ;;  %v1242_v13 = vadd.f32 %v1210_v53, %v1140_v10  ;;  %v939_v38 = vmul.f32 %v3373_v31, %v3658_v2  ;;  %v3772_v16 = vld [vmem:[#allocation2 + $0x139] sm:$0xff] }
 0x195   : > { %v1546_v29 = vadd.f32 %v1514_v22, %v1443_v51  ;;  %v1815_v55 = vmul.f32 0.5, %v1783_v15  ;;  %v1785_v35 = vadd.f32 %v3581_v40, %v1747_v1  ;;  %v1716_v61 = vmul.f32 %v3549_v30, %v3729_v11 }
 0x196   : > { %v1008_v54 = vmul.f32 %v3384_v63, %v3667_v17  ;;  %2612 = vmatprep.mubr.msk.f32.mxu1 %vm285_vm1, %v1942_v32  ;;  %v1816_v7 = vmul.f32 0.5, %v1784_v12  ;;  %v1343_v48 = vadd.f32 %v1311_v28, %v1242_v13  ;;  %v1412_v2 = vmul.f32 %v3485_v52, %v3706_v49  ;;  %v3783_v32 = vld [vmem:[#allocation2 + $0x13a] sm:$0xff] }
 0x197   : > { %v1647_v21 = vadd.f32 %v1615_v56, %v1546_v29  ;;  %v1849_v15 = vmul.f32 0.70710677, %v1785_v35  ;;  %v1109_v58 = vmul.f32 %v3396_v8, %v3678_v27  ;;  %v1211_v19 = vmul.f32 %v3455_v24, %v3715_v41 }
 0x198   : > { %v1040_v47 = vadd.f32 %v1008_v54, %v939_v38  ;;  %v2748_v0 = vpop.eup %2747  ;;  %v1444_v14 = vadd.f32 %v1412_v2, %v1343_v48  ;;  %v1515_v45 = vmul.f32 %v3498_v60, %v3740_v43  ;;  %v1616_v59 = vmul.f32 %v3531_v18, %v3742_v42  ;;  %v3792_v54 = vld [vmem:[#allocation2 + $0x140] sm:$0xff] }
 0x199   : > { %v1748_v17 = vadd.f32 %v1716_v61, %v1647_v21  ;;  %v1911_v36 = vadd.f32 1.0, %v2748_v0  ;;  %2751 = verf.f32 %v1849_v15  ;;  %v940_v46 = vmul.f32 %v3373_v31, %v3686_v23 }
 0x19a   : > { %v1141_v44 = vadd.f32 %v1109_v58, %v1040_v47  ;;  %v1547_v9 = vadd.f32 %v1515_v45, %v1444_v14  ;;  %v1717_v12 = vmul.f32 %v3549_v30, %v3749_v62  ;;  %v1009_v3 = vmul.f32 %v3384_v63, %v3688_v50  ;;  %v3807_v14 = vld [vmem:[#allocation2 + $0x142] sm:$0xff] }
 0x19b   : > { %v1786_v27 = vadd.f32 %v3581_v40, %v1748_v17  ;;  %v1943_v33 = vmul.f32 %v1911_v36, %v1815_v55  ;;  %v1312_v6 = vmul.f32 %v3472_v25, %v3717_v57  ;;  %v1110_v53 = vmul.f32 %v3396_v8, %v3706_v49 }
 0x19c   : > { %v1243_v4 = vadd.f32 %v1211_v19, %v1141_v44  ;;  %v1648_v20 = vadd.f32 %v1616_v59, %v1547_v9  ;;  %v1041_v37 = vadd.f32 %v1009_v3, %v940_v46  ;;  %v1212_v5 = vmul.f32 %v3455_v24, %v3740_v43 }
 0x19d   : > { %v1850_v23 = vmul.f32 0.70710677, %v1786_v27  ;;  %2613 = vmatmul.mubr.msk.f32.gmra.mrb[16].mxu1 %vm285_vm1, %v1943_v33  ;;  %v1817_v50 = vmul.f32 0.5, %v1785_v35  ;;  %v1413_v51 = vmul.f32 %v3485_v52, %v3729_v11  ;;  %v1516_v22 = vmul.f32 %v3498_v60, %v3764_v26 }
 0x19e   : > { %v2750_v39 = vpop.eup %2749  ;;  %v1344_v34 = vadd.f32 %v1312_v6, %v1243_v4  ;;  %v1749_v10 = vadd.f32 %v1717_v12, %v1648_v20  ;;  %v1142_v1 = vadd.f32 %v1110_v53, %v1041_v37  ;;  %v1617_v28 = vmul.f32 %v3531_v18, %v3772_v16  ;;  %v3819_v53 = vld [vmem:[#allocation2 + $0x150] sm:$0xff] }
 0x19f   : > { %v1912_v49 = vadd.f32 1.0, %v2750_v39  ;;  %2753 = verf.f32 %v1850_v23  ;;  %v941_v29 = vmul.f32 %v3373_v31, %v3715_v41  ;;  %v1010_v13 = vmul.f32 %v3384_v63, %v3717_v57 }
 0x1a0   : > { %v1445_v56 = vadd.f32 %v1413_v51, %v1344_v34  ;;  %v1787_v55 = vadd.f32 %v3581_v40, %v1749_v10  ;;  %v1244_v35 = vadd.f32 %v1212_v5, %v1142_v1  ;;  %v1313_v61 = vmul.f32 %v3472_v25, %v3742_v42 }
 0x1a1   : > { %v1944_v38 = vmul.f32 %v1912_v49, %v1816_v7  ;;  %v1042_v48 = vadd.f32 %v1010_v13, %v941_v29  ;;  %v1111_v2 = vmul.f32 %v3396_v8, %v3729_v11  ;;  %v1213_v41 = vmul.f32 %v3455_v24, %v3764_v26  ;;  %v3805_v11 = vld [vmem:[#allocation2 + $0x141] sm:$0xff] }
 0x1a2   : > { %v1548_v21 = vadd.f32 %v1516_v22, %v1445_v56  ;;  %v1851_v57 = vmul.f32 0.70710677, %v1787_v55  ;;  %v1718_v7 = vmul.f32 %v3549_v30, %v3783_v32  ;;  %v1345_v15 = vadd.f32 %v1313_v61, %v1244_v35  ;;  %v3833_v56 = vld [vmem:[#allocation2 + $0x152] sm:$0xff] }
 0x1a3   : > { %2615 = vmatprep.mubr.msk.f32.mxu1 %vm285_vm1, %v1944_v38  ;;  %v1414_v47 = vmul.f32 %v3485_v52, %v3749_v62  ;;  %v2752_v58 = vpop.eup %2751  ;;  %v1818_v19 = vmul.f32 0.5, %v1786_v27  ;;  %v1517_v17 = vmul.f32 %v3498_v60, %v3792_v54  ;;  %v1143_v45 = vadd.f32 %v1111_v2, %v1042_v48  ;;  %v3839_v35 = vld [vmem:[#allocation2 + $0x158] sm:$0xff] }
 0x1a4   : > { %v1649_v0 = vadd.f32 %v1617_v28, %v1548_v21  ;;  %v1913_v59 = vadd.f32 1.0, %v2752_v58  ;;  %2755 = verf.f32 %v1851_v57  ;;  %v1314_v44 = vmul.f32 %v3472_v25, %v3772_v16  ;;  %v3848_v57 = vld [vmem:[#allocation2 + $0x159] sm:$0xff] }
 0x1a5   : > { %v1446_v36 = vadd.f32 %v1414_v47, %v1345_v15  ;;  %v1245_v9 = vadd.f32 %v1213_v41, %v1143_v45  ;;  %v942_v27 = vmul.f32 %v3373_v31, %v3740_v43  ;;  %v1011_v12 = vmul.f32 %v3384_v63, %v3742_v42  ;;  %v3824_v43 = vld [vmem:[#allocation2 + $0x151] sm:$0xff] }
 0x1a6   : > { %v1750_v46 = vadd.f32 %v1718_v7, %v1649_v0  ;;  %v1945_v3 = vmul.f32 %v1913_v59, %v1817_v50  ;;  %v1618_v4 = vmul.f32 %v3531_v18, %v3805_v11  ;;  %v1719_v6 = vmul.f32 %v3549_v30, %v3807_v14 }
 0x1a7   : > { %v1549_v33 = vadd.f32 %v1517_v17, %v1446_v36  ;;  %v1346_v20 = vadd.f32 %v1314_v44, %v1245_v9  ;;  %v1415_v37 = vmul.f32 %v3485_v52, %v3783_v32  ;;  %v1043_v5 = vadd.f32 %v1011_v12, %v942_v27 }
 0x1a8   : > { %v1788_v23 = vadd.f32 %v3581_v40, %v1750_v46  ;;  %2616 = vmatmul.mubr.msk.f32.gmra.mrb[18].mxu1 %vm285_vm1, %v1945_v3  ;;  %v1819_v39 = vmul.f32 0.5, %v1787_v55  ;;  %v1112_v34 = vmul.f32 %v3396_v8, %v3749_v62  ;;  %v1214_v51 = vmul.f32 %v3455_v24, %v3792_v54  ;;  %v3868_v3 = vld [vmem:[#allocation2 + $0x15a] sm:$0xff] }
 0x1a9   : > { %v2754_v42 = vpop.eup %2753  ;;  %v1650_v50 = vadd.f32 %v1618_v4, %v1549_v33  ;;  %v1447_v10 = vadd.f32 %v1415_v37, %v1346_v20  ;;  %v1518_v1 = vmul.f32 %v3498_v60, %v3819_v53  ;;  %v1619_v29 = vmul.f32 %v3531_v18, %v3824_v43  ;;  %v3870_v4 = vld [vmem:[#allocation2 + $0x168] sm:$0xff] }
 0x1aa   : > { %v1914_v22 = vadd.f32 1.0, %v2754_v42  ;;  %v1852_v49 = vmul.f32 0.70710677, %v1788_v23  ;;  %v1144_v13 = vadd.f32 %v1112_v34, %v1043_v5  ;;  %v943_v38 = vmul.f32 %v3373_v31, %v3764_v26  ;;  %v3876_v42 = vld [vmem:[#allocation2 + $0x169] sm:$0xff] }
 0x1ab   : > { %v1751_v28 = vadd.f32 %v1719_v6, %v1650_v50  ;;  %v1550_v55 = vadd.f32 %v1518_v1, %v1447_v10  ;;  %v1012_v61 = vmul.f32 %v3384_v63, %v3772_v16  ;;  %v1720_v48 = vmul.f32 %v3549_v30, %v3833_v56 }
 0x1ac   : > { %v1946_v62 = vmul.f32 %v1914_v22, %v1818_v19  ;;  %2757 = verf.f32 %v1852_v49  ;;  %v1246_v2 = vadd.f32 %v1214_v51, %v1144_v13  ;;  %v1315_v41 = vmul.f32 %v3472_v25, %v3805_v11 }
 0x1ad   : > { %v1789_v21 = vadd.f32 %v3581_v40, %v1751_v28  ;;  %v1651_v26 = vadd.f32 %v1619_v29, %v1550_v55  ;;  %v1044_v7 = vadd.f32 %v1012_v61, %v943_v38  ;;  %v1113_v15 = vmul.f32 %v3396_v8, %v3783_v32  ;;  %v3890_v38 = vld [vmem:[#allocation2 + $0x16a] sm:$0xff] }
 0x1ae   : > { %2618 = vmatprep.mubr.msk.f32.mxu1 %vm285_vm1, %v1946_v62  ;;  %v1215_v16 = vmul.f32 %v3455_v24, %v3819_v53  ;;  %v2756_v47 = vpop.eup %2755  ;;  %v1347_v19 = vadd.f32 %v1315_v41, %v1246_v2  ;;  %v1416_v0 = vmul.f32 %v3485_v52, %v3807_v14  ;;  %v1519_v17 = vmul.f32 %v3498_v60, %v3839_v35  ;;  %v3898_v2 = vld [vmem:[#allocation2 + $0x170] sm:$0xff] }
 0x1af   : > { %v1853_v58 = vmul.f32 0.70710677, %v1789_v21  ;;  %v1915_v45 = vadd.f32 1.0, %v2756_v47  ;;  %v1752_v59 = vadd.f32 %v1720_v48, %v1651_v26  ;;  %v1620_v36 = vmul.f32 %v3531_v18, %v3848_v57  ;;  %v3900_v41 = vld [vmem:[#allocation2 + $0x171] sm:$0xff] }
 0x1b0   : > { %v1145_v44 = vadd.f32 %v1113_v15, %v1044_v7  ;;  %v1448_v32 = vadd.f32 %v1416_v0, %v1347_v19  ;;  %v1316_v46 = vmul.f32 %v3472_v25, %v3824_v43  ;;  %v944_v9 = vmul.f32 %v3373_v31, %v3792_v54 }
 0x1b1   : > { %2759 = verf.f32 %v1853_v58  ;;  %v1947_v27 = vmul.f32 %v1915_v45, %v1819_v39  ;;  %v3866_v12 = vadd.f32 %v3581_v40, %v1752_v59  ;;  %v1013_v6 = vmul.f32 %v3384_v63, %v3805_v11 }
 0x1b2   : > { %v1247_v33 = vadd.f32 %v1215_v16, %v1145_v44  ;;  %v1820_v20 = vmul.f32 0.5, %v1788_v23  ;;  %v1551_v37 = vadd.f32 %v1519_v17, %v1448_v32  ;;  %v1417_v5 = vmul.f32 %v3485_v52, %v3833_v56  ;;  %v3918_v44 = vld [vmem:[#allocation2 + $0x172] sm:$0xff] }
 0x1b3   : > { %v1114_v54 = vmul.f32 %v3396_v8, %v3807_v14  ;;  %2619 = vmatmul.mubr.msk.f32.gmra.mrb[20].mxu1 %vm285_vm1, %v1947_v27  ;;  %v1854_v39 = vmul.f32 0.70710677, %v3866_v12  ;;  %v1045_v34 = vadd.f32 %v1013_v6, %v944_v9  ;;  %v1216_v51 = vmul.f32 %v3455_v24, %v3839_v35  ;;  %v2788_v27 = vld [vmem:[%s4112_s3 + $0x1] ss:$0 sm:$0xff] }
 0x1b4   : > { %v1348_v50 = vadd.f32 %v1316_v46, %v1247_v33  ;;  %v1821_v11 = vmul.f32 0.5, %v1789_v21  ;;  %v1652_v23 = vadd.f32 %v1620_v36, %v1551_v37  ;;  %v1721_v22 = vmul.f32 %v3549_v30, %v3868_v3  ;;  %v2787_v46 = vld [vmem:[%s4112_s3] ss:$0 sm:$0xff] }
 0x1b5   : > { %v1520_v49 = vmul.f32 %v3498_v60, %v3870_v4  ;;  %2761 = verf.f32 %v1854_v39  ;;  %v1621_v1 = vmul.f32 %v3531_v18, %v3876_v42  ;;  %v1146_v28 = vadd.f32 %v1114_v54, %v1045_v34  ;;  %v1484_v54 = vld [vmem:[#allocation2 + $0x180] sm:$0xff] }
 0x1b6   : > { %v2758_v10 = vpop.eup %2757  ;;  %v1449_v14 = vadd.f32 %v1417_v5, %v1348_v50  ;;  %v1753_v13 = vadd.f32 %v1721_v22, %v1652_v23  ;;  %v945_v62 = vmul.f32 %v3373_v31, %v3819_v53  ;;  %v1014_v55 = vmul.f32 %v3384_v63, %v3824_v43  ;;  %v1586_v50 = vld [vmem:[#allocation2 + $0x181] sm:$0xff] }
 0x1b7   : > { %v1916_v29 = vadd.f32 1.0, %v2758_v10  ;;  %v1248_v21 = vadd.f32 %v1216_v51, %v1146_v28  ;;  %v1317_v48 = vmul.f32 %v3472_v25, %v3848_v57  ;;  %v1115_v26 = vmul.f32 %v3396_v8, %v3833_v56 }
 0x1b8   : > { %v1552_v61 = vadd.f32 %v1520_v49, %v1449_v14  ;;  %v1791_v15 = vadd.f32 %v3581_v40, %v1753_v13  ;;  %v1046_v16 = vadd.f32 %v1014_v55, %v945_v62  ;;  %v1217_v31 = vmul.f32 %v3455_v24, %v3870_v4  ;;  %v1687_v62 = vld [vmem:[#allocation2 + $0x182] sm:$0xff] }
 0x1b9   : > { %v1948_v7 = vmul.f32 %v1916_v29, %v1820_v20  ;;  %v1722_v53 = vmul.f32 %v3549_v30, %v3890_v38  ;;  %v1349_v43 = vadd.f32 %v1317_v48, %v1248_v21  ;;  %v1418_v47 = vmul.f32 %v3485_v52, %v3868_v3 }
 0x1ba   : > { %v1653_v63 = vadd.f32 %v1621_v1, %v1552_v61  ;;  %v1855_v19 = vmul.f32 0.70710677, %v1791_v15  ;;  %v1521_v8 = vmul.f32 %v3498_v60, %v3898_v2  ;;  %v1622_v56 = vmul.f32 %v3531_v18, %v3900_v41 }
 0x1bb   : > { %v2760_v58 = vpop.eup %2759  ;;  %2621 = vmatprep.mubr.msk.f32.mxu1 %vm285_vm1, %v1948_v7  ;;  %v1147_v0 = vadd.f32 %v1115_v26, %v1046_v16  ;;  %v1450_v59 = vadd.f32 %v1418_v47, %v1349_v43  ;;  %v1318_v36 = vmul.f32 %v3472_v25, %v3876_v42  ;;  %v946_v9 = vmul.f32 %v2787_v46, %v3839_v35  ;;  %v2789_v35 = vld [vmem:[%s4112_s3 + $0x2] ss:$0 sm:$0xff]  ;;  %v1485_v16 = vld [vmem:[#allocation2 + $0x188] sm:$0xff] }
 0x1bc   : > { %v1917_v17 = vadd.f32 1.0, %v2760_v58  ;;  %v1754_v45 = vadd.f32 %v1722_v53, %v1653_v63  ;;  %2763 = verf.f32 %v1855_v19  ;;  %v1015_v33 = vmul.f32 %v2788_v27, %v3848_v57 }
 0x1bd   : > { %v1249_v32 = vadd.f32 %v1217_v31, %v1147_v0  ;;  %v1553_v37 = vadd.f32 %v1521_v8, %v1450_v59  ;;  %v1419_v5 = vmul.f32 %v3485_v52, %v3890_v38  ;;  %v1116_v51 = vmul.f32 %v2789_v35, %v3868_v3  ;;  %v1587_v31 = vld [vmem:[#allocation2 + $0x189] sm:$0xff] }
 0x1be   : > { %v1949_v6 = vmul.f32 %v1917_v17, %v1821_v11  ;;  %v3929_v20 = vadd.f32 %v3581_v40, %v1754_v45  ;;  %v1047_v34 = vadd.f32 %v1015_v33, %v946_v9  ;;  %v1218_v57 = vmul.f32 %v3455_v24, %v3898_v2 }
 0x1bf   : > { %v1350_v39 = vadd.f32 %v1318_v36, %v1249_v32  ;;  %v2762_v11 = vpop.eup %2761  ;;  %v1822_v23 = vmul.f32 0.5, %v3866_v12  ;;  %v1654_v49 = vadd.f32 %v1622_v56, %v1553_v37  ;;  %v1723_v10 = vmul.f32 %v3549_v30, %v3918_v44 }
 0x1c0   : > { %2622 = vmatmul.mubr.msk.f32.gmra.mrb[22].mxu1 %vm285_vm1, %v1949_v6  ;;  %v1856_v22 = vmul.f32 0.70710677, %v3929_v20  ;;  %v1918_v14 = vadd.f32 1.0, %v2762_v11  ;;  %v1522_v28 = vmul.f32 %v3498_v60, %v1484_v54  ;;  %v1148_v29 = vadd.f32 %v1116_v51, %v1047_v34  ;;  %v1588_v11 = vld [vmem:[#allocation2 + $0x199] sm:$0xff] }
 0x1c1   : > { %v1451_v1 = vadd.f32 %v1419_v5, %v1350_v39  ;;  %v1755_v3 = vadd.f32 %v1723_v10, %v1654_v49  ;;  %v1623_v13 = vmul.f32 %v3531_v18, %v1586_v50  ;;  %v1319_v55 = vmul.f32 %v3472_v25, %v3900_v41 }
 0x1c2   : > { %2765 = verf.f32 %v1856_v22  ;;  %v1950_v12 = vmul.f32 %v1918_v14, %v1822_v23  ;;  %v1250_v21 = vadd.f32 %v1218_v57, %v1148_v29  ;;  %v947_v48 = vmul.f32 %v2787_v46, %v3870_v4  ;;  %v1688_v4 = vld [vmem:[#allocation2 + $0x18a] sm:$0xff] }
 0x1c3   : > { %v1554_v61 = vadd.f32 %v1522_v28, %v1451_v1  ;;  %v1823_v26 = vmul.f32 0.5, %v1791_v15  ;;  %v3950_v7 = vadd.f32 %v3581_v40, %v1755_v3  ;;  %v1016_v63 = vmul.f32 %v2788_v27, %v3876_v42  ;;  %v1487_v28 = vld [vmem:[#allocation2 + $0x1a0] sm:$0xff] }
 0x1c4   : > { %2624 = vmatprep.mubr.msk.f32.mxu1 %vm285_vm1, %v1950_v12  ;;  %v1724_v43 = vmul.f32 %v3549_v30, %v1687_v62  ;;  %v1351_v47 = vadd.f32 %v1319_v55, %v1250_v21  ;;  %v1420_v58 = vmul.f32 %v3485_v52, %v3918_v44  ;;  %v1117_v8 = vmul.f32 %v2789_v35, %v3890_v38  ;;  %v1486_v38 = vld [vmem:[#allocation2 + $0x198] sm:$0xff]  ;;  %v1589_v55 = vld [vmem:[#allocation2 + $0x1a1] sm:$0xff] }
 0x1c5   : > { %v1655_v53 = vadd.f32 %v1623_v13, %v1554_v61  ;;  %v1857_v19 = vmul.f32 0.70710677, %v3950_v7  ;;  %v1048_v15 = vadd.f32 %v1016_v63, %v947_v48  ;;  %v1219_v56 = vmul.f32 %v3455_v24, %v1484_v54  ;;  %v2792_v21 = vld [vmem:[%s4112_s3 + $0x6] ss:$0 sm:$0xff] }
 0x1c6   : > { %v2764_v0 = vpop.eup %2763  ;;  %v1452_v42 = vadd.f32 %v1420_v58, %v1351_v47  ;;  %v1523_v45 = vmul.f32 %v3498_v60, %v1485_v16  ;;  %v1624_v59 = vmul.f32 %v3531_v18, %v1587_v31  ;;  %v948_v9 = vmul.f32 %v2787_v46, %v3898_v2  ;;  %v2790_v2 = vld [vmem:[%s4112_s3 + $0x4] ss:$0 sm:$0xff] }
 0x1c7   : > { %v1756_v17 = vadd.f32 %v1724_v43, %v1655_v53  ;;  %v1919_v36 = vadd.f32 1.0, %v2764_v0  ;;  %2767 = verf.f32 %v1857_v19  ;;  %v1149_v32 = vadd.f32 %v1117_v8, %v1048_v15  ;;  %v1690_v43 = vld [vmem:[#allocation2 + $0x1a2] sm:$0xff] }
 0x1c8   : > { %v1555_v6 = vadd.f32 %v1523_v45, %v1452_v42  ;;  %v1725_v37 = vmul.f32 %v3549_v30, %v1688_v4  ;;  %v1017_v24 = vmul.f32 %v2788_v27, %v3900_v41  ;;  %v1320_v39 = vmul.f32 %v3472_v25, %v1586_v50 }
 0x1c9   : > { %v1794_v33 = vadd.f32 %v3581_v40, %v1756_v17  ;;  %v1951_v5 = vmul.f32 %v1919_v36, %v1823_v26  ;;  %v1251_v54 = vadd.f32 %v1219_v56, %v1149_v32  ;;  %v1118_v34 = vmul.f32 %v2789_v35, %v3918_v44  ;;  %v1689_v35 = vld [vmem:[#allocation2 + $0x19a] sm:$0xff]  ;;  %v2793_v26 = vld [vmem:[%s4112_s3 + $0x8] ss:$0 sm:$0xff] }
 0x1ca   : > { %v1656_v57 = vadd.f32 %v1624_v59, %v1555_v6  ;;  %v1049_v23 = vadd.f32 %v1017_v24, %v948_v9  ;;  %v1220_v46 = vmul.f32 %v2790_v2, %v1485_v16  ;;  %v1824_v41 = vmul.f32 0.5, %v3929_v20  ;;  %v2791_v20 = vld [vmem:[%s4112_s3 + $0x5] ss:$0 sm:$0xff] }
 0x1cb   : > { %v1858_v51 = vmul.f32 0.70710677, %v1794_v33  ;;  %2625 = vmatmul.mubr.msk.f32.gmra.mrb[24].mxu1 %vm285_vm1, %v1951_v5  ;;  %v1352_v27 = vadd.f32 %v1320_v39, %v1251_v54  ;;  %v1421_v49 = vmul.f32 %v3485_v52, %v1687_v62  ;;  %v1524_v25 = vmul.f32 %v3498_v60, %v1486_v38 }
 0x1cc   : > { %v2766_v22 = vpop.eup %2765  ;;  %v1757_v50 = vadd.f32 %v1725_v37, %v1656_v57  ;;  %v1150_v10 = vadd.f32 %v1118_v34, %v1049_v23  ;;  %v1625_v1 = vmul.f32 %v3531_v18, %v1588_v11  ;;  %v1321_v52 = vmul.f32 %v2791_v20, %v1587_v31  ;;  %v4001_v57 = vld [vmem:[%s4115_s6] ss:$0 sm:$0xff] }
 0x1cd   : > { %v1920_v44 = vadd.f32 1.0, %v2766_v22  ;;  %2769 = verf.f32 %v1858_v51  ;;  %v1453_v14 = vadd.f32 %v1421_v49, %v1352_v27  ;;  %v1726_v60 = vmul.f32 %v3549_v30, %v1689_v35 }
 0x1ce   : > { %v1795_v3 = vadd.f32 %v3581_v40, %v1757_v50  ;;  %v1252_v13 = vadd.f32 %v1220_v46, %v1150_v10  ;;  %v1422_v48 = vmul.f32 %v2792_v21, %v1688_v4  ;;  %v1525_v16 = vmul.f32 %v2793_v26, %v1487_v28 }
 0x1cf   : > { %v1952_v29 = vmul.f32 %v1920_v44, %v1824_v41  ;;  %v1556_v62 = vadd.f32 %v1524_v25, %v1453_v14  ;;  %v1825_v31 = vmul.f32 0.5, %v3950_v7  ;;  %v1626_v19 = vmul.f32 %v3531_v18, %v1589_v55 }
 0x1d0   : > { %v1859_v12 = vmul.f32 0.70710677, %v1795_v3  ;;  %v1353_v61 = vadd.f32 %v1321_v52, %v1252_v13  ;;  %v1727_v4 = vmul.f32 %v3549_v30, %v1690_v43  ;;  %v1826_v45 = vmul.f32 0.5, %v1794_v33 }
 0x1d1   : > { %2627 = vmatprep.mubr.msk.f32.mxu1 %vm285_vm1, %v1952_v29  ;;  %v2768_v63 = vpop.eup %2767  ;;  %v1657_v53 = vadd.f32 %v1625_v1, %v1556_v62  ;;  %v1827_v37 = vmul.f32 0.5, %v1795_v3 }
 0x1d2   : > { %v1921_v47 = vadd.f32 1.0, %v2768_v63  ;;  %2771 = verf.f32 %v1859_v12  ;;  %v1454_v58 = vadd.f32 %v1422_v48, %v1353_v61 }
 0x1d3   : > { %v1758_v15 = vadd.f32 %v1726_v60, %v1657_v53 }
 0x1d4   : > { %v1953_v8 = vmul.f32 %v1921_v47, %v1825_v31  ;;  %v1557_v56 = vadd.f32 %v1525_v16, %v1454_v58 }
 0x1d5   : > { %v1796_v0 = vadd.f32 %v3581_v40, %v1758_v15 }
 0x1d6   : > { %2628 = vmatmul.mubr.msk.f32.gmra.mrb[26].mxu1 %vm285_vm1, %v1953_v8  ;;  %v1658_v42 = vadd.f32 %v1626_v19, %v1557_v56 }
 0x1d7   : > { %v2770_v17 = vpop.eup %2769  ;;  %v1860_v59 = vmul.f32 0.70710677, %v1796_v0  ;;  %v1828_v33 = vmul.f32 0.5, %v1796_v0 }
 0x1d8   : > { %v1922_v7 = vadd.f32 1.0, %v2770_v17  ;;  %v1759_v36 = vadd.f32 %v1727_v4, %v1658_v42 }
 0x1d9   : > { %2773 = verf.f32 %v1860_v59 }
 0x1da   : > { %v1954_v32 = vmul.f32 %v1922_v7, %v1826_v45  ;;  %v1797_v9 = vadd.f32 %v3581_v40, %v1759_v36 }
 0x1dc   : > { %2630 = vmatprep.mubr.msk.f32.mxu1 %vm285_vm1, %v1954_v32  ;;  %v2772_v18 = vpop.eup %2771  ;;  %v1861_v6 = vmul.f32 0.70710677, %v1797_v9  ;;  %v1829_v34 = vmul.f32 0.5, %v1797_v9 }
 0x1dd   : > { %v1923_v30 = vadd.f32 1.0, %v2772_v18 }
 0x1de   : > { %2775 = verf.f32 %v1861_v6 }
 0x1df   : > { %v1955_v38 = vmul.f32 %v1923_v30, %v1827_v37 }
 0x1e1   : > { %2631 = vmatmul.mubr.msk.f32.gmra.mrb[28].mxu1 %vm285_vm1, %v1955_v38 }
 0x1e3   : > { %v2774_v24 = vpop.eup %2773 }
 0x1e4   : > { %v1924_v5 = vadd.f32 1.0, %v2774_v24 }
 0x1e6   : > { %v1956_v54 = vmul.f32 %v1924_v5, %v1828_v33 }
 0x1e8   : > { %v2776_v39 = vpop.eup %2775  ;;  %2633 = vmatprep.mubr.msk.f32.mxu1 %vm285_vm1, %v1956_v54 }
 0x1e9   : > { %v1925_v40 = vadd.f32 1.0, %v2776_v39 }
 0x1eb   : > { %v1957_v51 = vmul.f32 %v1925_v40, %v1829_v34 }
 0x1ed   : > { %2634 = vmatmul.mubr.msk.f32.gmra.mrb[30].mxu1 %vm285_vm1, %v1957_v51 }
 0x207   : > { %v2590_v11 = vpop.f32.mrb[0].mxu1 }
 0x208   : > { %v2132_v23 = vadd.f32 %v2590_v11, %v4001_v57  ;;  %v2126_v2 = vpop.f32.mrb[1].mxu1 }
 0x209   : > { %v2127_v46 = vadd.f32 %v4001_v57, %v2126_v2 }
 0x20a   : > { %2286 = vst.msk [vmem:[%s4008_s13 + $0x8] sm:$0xff] %vm366_vm0, %v2132_v23 }
 0x20b   : > { %2285 = vst.msk [vmem:[%s4008_s13] sm:$0xff] %vm366_vm0, %v2127_v46 }
 0x221   : > { %v2593_v22 = vpop.f32.mrb[2].mxu1 }
 0x222   : > { %v2142_v41 = vadd.f32 %v2593_v22, %v4001_v57  ;;  %v2136_v27 = vpop.f32.mrb[3].mxu1 }
 0x223   : > { %v2137_v49 = vadd.f32 %v4001_v57, %v2136_v27 }
 0x224   : > { %2288 = vst.msk [vmem:[%s4008_s13 + $0x18] sm:$0xff] %vm366_vm0, %v2142_v41 }
 0x225   : > { %2287 = vst.msk [vmem:[%s4008_s13 + $0x10] sm:$0xff] %vm366_vm0, %v2137_v49 }
 0x22d   : > { %v2596_v25 = vpop.f32.mrb[4].mxu1 }
 0x22e   : > { %v2152_v44 = vadd.f32 %v2596_v25, %v4001_v57  ;;  %v2146_v50 = vpop.f32.mrb[5].mxu1 }
 0x22f   : > { %v2147_v35 = vadd.f32 %v4001_v57, %v2146_v50 }
 0x230   : > { %2290 = vst.msk [vmem:[%s4008_s13 + $0x28] sm:$0xff] %vm366_vm0, %v2152_v44 }
 0x231   : > { %2289 = vst.msk [vmem:[%s4008_s13 + $0x20] sm:$0xff] %vm366_vm0, %v2147_v35 }
 0x236   : > { %v2599_v10 = vpop.f32.mrb[6].mxu1 }
 0x237   : > { %v2162_v14 = vadd.f32 %v2599_v10, %v4001_v57  ;;  %v2156_v1 = vpop.f32.mrb[7].mxu1 }
 0x238   : > { %v2157_v28 = vadd.f32 %v4001_v57, %v2156_v1 }
 0x239   : > { %2292 = vst.msk [vmem:[%s4008_s13 + $0x38] sm:$0xff] %vm366_vm0, %v2162_v14 }
 0x23a   : > { %2291 = vst.msk [vmem:[%s4008_s13 + $0x30] sm:$0xff] %vm366_vm0, %v2157_v28 }
 0x241   : > { %v2602_v29 = vpop.f32.mrb[8].mxu1 }
 0x242   : > { %v2172_v3 = vadd.f32 %v2602_v29, %v4001_v57  ;;  %v2166_v13 = vpop.f32.mrb[9].mxu1 }
 0x243   : > { %v2167_v20 = vadd.f32 %v4001_v57, %v2166_v13 }
 0x244   : > { %2294 = vst.msk [vmem:[%s4008_s13 + $0x48] sm:$0xff] %vm366_vm0, %v2172_v3 }
 0x245   : > { %2293 = vst.msk [vmem:[%s4008_s13 + $0x40] sm:$0xff] %vm366_vm0, %v2167_v20 }
 0x24d   : > { %v2605_v52 = vpop.f32.mrb[10].mxu1 }
 0x24e   : > { %v2182_v62 = vadd.f32 %v2605_v52, %v4001_v57  ;;  %v2176_v60 = vpop.f32.mrb[11].mxu1 }
 0x24f   : > { %v2177_v55 = vadd.f32 %v4001_v57, %v2176_v60 }
 0x250   : > { %2296 = vst.msk [vmem:[%s4008_s13 + $0x58] sm:$0xff] %vm366_vm0, %v2182_v62 }
 0x251   : > { %2295 = vst.msk [vmem:[%s4008_s13 + $0x50] sm:$0xff] %vm366_vm0, %v2177_v55 }
 0x259   : > { %v2608_v12 = vpop.f32.mrb[12].mxu1 }
 0x25a   : > { %v2192_v61 = vadd.f32 %v2608_v12, %v4001_v57  ;;  %v2186_v21 = vpop.f32.mrb[13].mxu1 }
 0x25b   : > { %v2187_v48 = vadd.f32 %v4001_v57, %v2186_v21 }
 0x25c   : > { %2298 = vst.msk [vmem:[%s4008_s13 + $0x68] sm:$0xff] %vm366_vm0, %v2192_v61 }
 0x25d   : > { %2297 = vst.msk [vmem:[%s4008_s13 + $0x60] sm:$0xff] %vm366_vm0, %v2187_v48 }
 0x265   : > { %v2611_v26 = vpop.f32.mrb[14].mxu1 }
 0x266   : > { %v2202_v16 = vadd.f32 %v2611_v26, %v4001_v57  ;;  %v2196_v63 = vpop.f32.mrb[15].mxu1 }
 0x267   : > { %v2197_v31 = vadd.f32 %v4001_v57, %v2196_v63 }
 0x268   : > { %2300 = vst.msk [vmem:[%s4008_s13 + $0x78] sm:$0xff] %vm366_vm0, %v2202_v16 }
 0x269   : > { %2299 = vst.msk [vmem:[%s4008_s13 + $0x70] sm:$0xff] %vm366_vm0, %v2197_v31 }
 0x270   : > { %v2614_v53 = vpop.f32.mrb[16].mxu1 }
 0x271   : > { %v2212_v43 = vadd.f32 %v2614_v53, %v4001_v57  ;;  %v2206_v47 = vpop.f32.mrb[17].mxu1 }
 0x272   : > { %v2207_v58 = vadd.f32 %v4001_v57, %v2206_v47 }
 0x273   : > { %2302 = vst.msk [vmem:[%s4008_s13 + $0x88] sm:$0xff] %vm366_vm0, %v2212_v43 }
 0x274   : > { %2301 = vst.msk [vmem:[%s4008_s13 + $0x80] sm:$0xff] %vm366_vm0, %v2207_v58 }
 0x27b   : > { %v2617_v19 = vpop.f32.mrb[18].mxu1 }
 0x27c   : > { %v2222_v15 = vadd.f32 %v2617_v19, %v4001_v57  ;;  %v2216_v8 = vpop.f32.mrb[19].mxu1 }
 0x27d   : > { %v2217_v56 = vadd.f32 %v4001_v57, %v2216_v8 }
 0x27e   : > { %2304 = vst.msk [vmem:[%s4008_s13 + $0x98] sm:$0xff] %vm366_vm0, %v2222_v15 }
 0x27f   : > { %2303 = vst.msk [vmem:[%s4008_s13 + $0x90] sm:$0xff] %vm366_vm0, %v2217_v56 }
 0x286   : > { %v2620_v4 = vpop.f32.mrb[20].mxu1 }
 0x287   : > { %v2232_v0 = vadd.f32 %v2620_v4, %v4001_v57  ;;  %v2226_v17 = vpop.f32.mrb[21].mxu1 }
 0x288   : > { %v2227_v42 = vadd.f32 %v4001_v57, %v2226_v17 }
 0x289   : > { %2306 = vst.msk [vmem:[%s4008_s13 + $0xa8] sm:$0xff] %vm366_vm0, %v2232_v0 }
 0x28a   : > { %2305 = vst.msk [vmem:[%s4008_s13 + $0xa0] sm:$0xff] %vm366_vm0, %v2227_v42 }
 0x293   : > { %v2623_v45 = vpop.f32.mrb[22].mxu1 }
 0x294   : > { %v2242_v7 = vadd.f32 %v2623_v45, %v4001_v57  ;;  %v2236_v59 = vpop.f32.mrb[23].mxu1 }
 0x295   : > { %v2237_v36 = vadd.f32 %v4001_v57, %v2236_v59 }
 0x296   : > { %2308 = vst.msk [vmem:[%s4008_s13 + $0xb8] sm:$0xff] %vm366_vm0, %v2242_v7 }
 0x297   : > { %2307 = vst.msk [vmem:[%s4008_s13 + $0xb0] sm:$0xff] %vm366_vm0, %v2237_v36 }
 0x29e   : > { %v2626_v32 = vpop.f32.mrb[24].mxu1 }
 0x29f   : > { %v2252_v9 = vadd.f32 %v2626_v32, %v4001_v57  ;;  %v2246_v18 = vpop.f32.mrb[25].mxu1 }
 0x2a0   : > { %v2247_v6 = vadd.f32 %v4001_v57, %v2246_v18 }
 0x2a1   : > { %2310 = vst.msk [vmem:[%s4008_s13 + $0xc8] sm:$0xff] %vm366_vm0, %v2252_v9 }
 0x2a2   : > { %2309 = vst.msk [vmem:[%s4008_s13 + $0xc0] sm:$0xff] %vm366_vm0, %v2247_v6 }
 0x2a9   : > { %v2629_v37 = vpop.f32.mrb[26].mxu1 }
 0x2aa   : > { %v2262_v30 = vadd.f32 %v2629_v37, %v4001_v57  ;;  %v2256_v38 = vpop.f32.mrb[27].mxu1 }
 0x2ab   : > { %v2257_v24 = vadd.f32 %v4001_v57, %v2256_v38 }
 0x2ac   : > { %2312 = vst.msk [vmem:[%s4008_s13 + $0xd8] sm:$0xff] %vm366_vm0, %v2262_v30 }
 0x2ad   : > { %2311 = vst.msk [vmem:[%s4008_s13 + $0xd0] sm:$0xff] %vm366_vm0, %v2257_v24 }
 0x2b4   : > { %v2632_v33 = vpop.f32.mrb[28].mxu1 }
 0x2b5   : > { %v2272_v5 = vadd.f32 %v2632_v33, %v4001_v57  ;;  %v2266_v54 = vpop.f32.mrb[29].mxu1 }
 0x2b6   : > { %v2267_v39 = vadd.f32 %v4001_v57, %v2266_v54 }
 0x2b7   : > { %2314 = vst.msk [vmem:[%s4008_s13 + $0xe8] sm:$0xff] %vm366_vm0, %v2272_v5 }
 0x2b8   : > { %2313 = vst.msk [vmem:[%s4008_s13 + $0xe0] sm:$0xff] %vm366_vm0, %v2267_v39 }
 0x2c0   : > { %v2635_v34 = vpop.f32.mrb[30].mxu1 }
 0x2c1   : > { %v2282_v40 = vadd.f32 %v2635_v34, %v4001_v57  ;;  %v2276_v51 = vpop.f32.mrb[31].mxu1 }
 0x2c2   : > { %v2277_v11 = vadd.f32 %v4001_v57, %v2276_v51 }
 0x2c3   : > { %2316 = vst.msk [vmem:[%s4008_s13 + $0xf8] sm:$0xff] %vm366_vm0, %v2282_v40 }
 0x2c4   : > { %2315 = vst.msk [vmem:[%s4008_s13 + $0xf0] sm:$0xff] %vm366_vm0, %v2277_v11 }
 0x2c5 PF: > { %s17_s24 = sadd.s32 1, %s2800_s24  }
 0x2c6   : > { %p14_p4 = scmp.ge.s32.totalorder %s17_s24, 4  }
 0x2c8   :  { %16 = sbr.rel (!%p14_p4) target bundleno = 1 (0x1), region = 83 }

// kernel: tpu_custom_call.1
= control target key start
LH: loop header
LB: loop body
LE: loop exit
PB: predicated region body
PF: predicated region fallthrough
CT: control target
= control target key end

     0   :  { %s3097_s24 = smov 0   ;;  %s4765_s0 = inlined_call_operand.vmem [shape: f32[2,256,8], index: 0, kind: input, shape index: {}]   ;;  %s4766_s1 = inlined_call_operand.vmem [shape: f32[8,16], index: 1, kind: input, shape index: {}]   ;;  %s4767_s2 = inlined_call_operand.vmem [shape: f32[1,16], index: 2, kind: input, shape index: {}]   ;;  %s4768_s3 = inlined_call_operand.vmem [shape: f32[3,3,16], index: 3, kind: input, shape index: {}]   ;;  %s4769_s4 = inlined_call_operand.vmem [shape: f32[1,16], index: 4, kind: input, shape index: {}]   ;;  %s4770_s5 = inlined_call_operand.vmem [shape: f32[16,8], index: 5, kind: input, shape index: {}]   ;;  %s4771_s6 = inlined_call_operand.vmem [shape: f32[1,8], index: 6, kind: input, shape index: {}]   ;;  %s4772_s7 = inlined_call_operand.vmem [shape: f32[2,256,8], index: 7, kind: output, shape index: {}]  }
   0x1 LB: > { %s2628_s25 = sadd.s32 4294967295, %s3054_s24   ;;  %p2632_p0 = scmp.ge.s32.totalorder %s3054_s24, 1  ;;  %s3054_s24 = sphi %s3097_s24, %s17_s24  }
   0x2   : > { %p237_p1 = scmp.lt.s32.totalorder %s3054_s24, 3 }
   0x4   : > { %p238_p2 = pnand %p2632_p0, %p237_p1 }
   0x5   : > { %v279_v0 = vld [vmem:[%s4766_s1] sm:$0xff] (!%p238_p2)  ;;  %p269_p3 = scmp.lt.s32.totalorder (!%p238_p2), %s2628_s25, 1  ;;  %vm366_vm0 = vcmask (!%p238_p2), 64512   ;;  %vm285_vm1 = vcmask (!%p238_p2), 130048   ;;  %v3056_v33 = vmov (!%p238_p2), 0.0   ;;  %vm295_vm2 = vcmask (!%p238_p2), 122880  }
   0x6   : > { %241 = sbr.rel (%p238_p2) target bundleno = 775 (0x307), region = 48  ;;  %2790 = vmatprep.subr.mxu0 (!%p238_p2), %v279_v0  ;;  %286 = vst.msk [vmem:[#allocation2] sm:$0xff] (!%p238_p2), %vm285_vm1, %v3056_v33  ;;  %287 = vst.msk [vmem:[#allocation2 + $0x8] sm:$0xff] (!%p238_p2), %vm285_vm1, %v3056_v33  ;;  %vm288_vm3 = vcmask (!%p238_p2), 123904   ;;  %v282_v34 = vld [vmem:[%s4770_s5] sm:$0xff] (!%p238_p2)  ;;  %v283_v35 = vld [vmem:[%s4770_s5 + $0x8] sm:$0xff] (!%p238_p2) }
   0x7   : > { %2791 = vmatpush3.msra.mxu0 (!%p238_p2), %v279_v0  ;;  %291 = vst.msk [vmem:[#allocation2 + $0x198] sm:$0xff] (!%p238_p2), %vm285_vm1, %v3056_v33  ;;  %292 = vst.msk [vmem:[#allocation2 + $0x1a0] sm:$0xff] (!%p238_p2), %vm285_vm1, %v3056_v33  ;;  %v2892_v36 = vpack.c.bf16 (!%p238_p2), %v283_v35, %v282_v34  ;;  %v3227_v37 = vld [vmem:[%s4767_s2] ss:$0 sm:$0xff] (!%p238_p2)  ;;  %v3255_v53 = vld [vmem:[%s4768_s3 + $0x1] ss:$0 sm:$0xff] (!%p238_p2) }
   0x8   : > { %296 = vst.msk [vmem:[#allocation2 + $0x18] sm:$0x1] (!%p238_p2), %vm295_vm2, %v3056_v33  ;;  %297 = vst.msk [vmem:[#allocation2 + $0x30] sm:$0x1] (!%p238_p2), %vm295_vm2, %v3056_v33  ;;  %v3246_v49 = vld [vmem:[%s4768_s3] ss:$0 sm:$0xff] (!%p238_p2) }
   0x9   : > { %298 = vst.msk [vmem:[#allocation2 + $0x48] sm:$0x1] (!%p238_p2), %vm295_vm2, %v3056_v33  ;;  %299 = vst.msk [vmem:[#allocation2 + $0x60] sm:$0x1] (!%p238_p2), %vm295_vm2, %v3056_v33  ;;  %2893 = vmatprep.subr.bf16.mxu1 (!%p238_p2), %v2892_v36  ;;  %v3262_v57 = vld [vmem:[%s4768_s3 + $0x2] ss:$0 sm:$0xff] (!%p238_p2) }
   0xa   : > { %300 = vst.msk [vmem:[#allocation2 + $0x78] sm:$0x1] (!%p238_p2), %vm295_vm2, %v3056_v33  ;;  %301 = vst.msk [vmem:[#allocation2 + $0x90] sm:$0x1] (!%p238_p2), %vm295_vm2, %v3056_v33  ;;  %2895 = vmatpush3.bf16.msra.mxu1 (!%p238_p2), %v2892_v36 }
   0xb   : > { %302 = vst.msk [vmem:[#allocation2 + $0xa8] sm:$0x1] (!%p238_p2), %vm295_vm2, %v3056_v33  ;;  %303 = vst.msk [vmem:[#allocation2 + $0xc0] sm:$0x1] (!%p238_p2), %vm295_vm2, %v3056_v33 }
   0xc   : > { %304 = vst.msk [vmem:[#allocation2 + $0xd8] sm:$0x1] (!%p238_p2), %vm295_vm2, %v3056_v33  ;;  %305 = vst.msk [vmem:[#allocation2 + $0xf0] sm:$0x1] (!%p238_p2), %vm295_vm2, %v3056_v33 }
   0xd   : > { %s4774_s25 = smov (!%p269_p3, %s2628_s25), 1  ;;  %306 = vst.msk [vmem:[#allocation2 + $0x108] sm:$0x1] %vm295_vm2, %v3056_v33  ;;  %307 = vst.msk [vmem:[#allocation2 + $0x120] sm:$0x1] %vm295_vm2, %v3056_v33  ;;  %v1008_v48 = vld [vmem:[#allocation2] sm:$0xff] }
   0xe   : > { %s2721_s28 = sshll.u32 %s4774_s25, 8  ;;  %308 = vst.msk [vmem:[#allocation2 + $0x138] sm:$0x1] %vm295_vm2, %v3056_v33  ;;  %309 = vst.msk [vmem:[#allocation2 + $0x150] sm:$0x1] %vm295_vm2, %v3056_v33  ;;  %v1077_v52 = vld [vmem:[#allocation2 + $0x1] sm:$0xff]  ;;  %v1045_v61 = vmul.f32 %v3246_v49, %v1008_v48 }
   0xf   : > { %s3116_s8 = scalar_lea.vmem %s4765_s0, %s2721_s28  ;;  %310 = vst.msk [vmem:[#allocation2 + $0x168] sm:$0x1] %vm295_vm2, %v3056_v33  ;;  %311 = vst.msk [vmem:[#allocation2 + $0x180] sm:$0x1] %vm295_vm2, %v3056_v33  ;;  %v1178_v56 = vld [vmem:[#allocation2 + $0x2] sm:$0xff]  ;;  %s4664_s9 = scalar_lea.vmem %s4772_s7, %s2721_s28 }
  0x10   : > { %v328_v1 = vld [vmem:[%s3116_s8] sm:$0xff]  ;;  %v329_v2 = vld [vmem:[%s3116_s8 + $0x8] sm:$0xff]  ;;  %v330_v3 = vld [vmem:[%s3116_s8 + $0x10] sm:$0xff]  ;;  %312 = vst.msk [vmem:[#allocation2 + $0x29] sm:$0x1] %vm295_vm2, %v3056_v33 }
  0x11   : > { %2792 = vmatprep.mubr.msk.f32.mxu0 %vm366_vm0, %v328_v1  ;;  %v331_v4 = vld [vmem:[%s3116_s8 + $0x18] sm:$0xff]  ;;  %v332_v5 = vld [vmem:[%s3116_s8 + $0x20] sm:$0xff]  ;;  %v333_v6 = vld [vmem:[%s3116_s8 + $0x28] sm:$0xff]  ;;  %313 = vst.msk [vmem:[#allocation2 + $0x41] sm:$0x1] %vm295_vm2, %v3056_v33 }
  0x12   : > { %2793 = vmatmul.mubr.msk.f32.vlgmr.msra.gmra.mrb[0].mxu0 %vm366_vm0, %v329_v2  ;;  %v334_v7 = vld [vmem:[%s3116_s8 + $0x30] sm:$0xff]  ;;  %v335_v8 = vld [vmem:[%s3116_s8 + $0x38] sm:$0xff]  ;;  %v336_v9 = vld [vmem:[%s3116_s8 + $0x40] sm:$0xff]  ;;  %314 = vst.msk [vmem:[#allocation2 + $0x59] sm:$0x1] %vm295_vm2, %v3056_v33 }
  0x13   : > { %2795 = vmatprep.mubr.msk.f32.mxu0 %vm366_vm0, %v330_v3  ;;  %v337_v10 = vld [vmem:[%s3116_s8 + $0x48] sm:$0xff]  ;;  %v338_v11 = vld [vmem:[%s3116_s8 + $0x50] sm:$0xff]  ;;  %v339_v12 = vld [vmem:[%s3116_s8 + $0x58] sm:$0xff]  ;;  %315 = vst.msk [vmem:[#allocation2 + $0x71] sm:$0x1] %vm295_vm2, %v3056_v33  ;;  %v1114_v3 = vmul.f32 %v3255_v53, %v1077_v52 }
  0x14   : > { %v340_v13 = vld [vmem:[%s3116_s8 + $0x60] sm:$0xff]  ;;  %v341_v14 = vld [vmem:[%s3116_s8 + $0x68] sm:$0xff]  ;;  %v342_v15 = vld [vmem:[%s3116_s8 + $0x70] sm:$0xff]  ;;  %316 = vst.msk [vmem:[#allocation2 + $0x89] sm:$0x1] %vm295_vm2, %v3056_v33 }
  0x15   : > { %v343_v16 = vld [vmem:[%s3116_s8 + $0x78] sm:$0xff]  ;;  %v344_v17 = vld [vmem:[%s3116_s8 + $0x80] sm:$0xff]  ;;  %v345_v18 = vld [vmem:[%s3116_s8 + $0x88] sm:$0xff]  ;;  %317 = vst.msk [vmem:[#allocation2 + $0xa1] sm:$0x1] %vm295_vm2, %v3056_v33 }
  0x16   : > { %2796 = vmatmul.mubr.msk.f32.gmra.mrb[2].mxu0 %vm366_vm0, %v331_v4  ;;  %v346_v19 = vld [vmem:[%s3116_s8 + $0x90] sm:$0xff]  ;;  %v347_v20 = vld [vmem:[%s3116_s8 + $0x98] sm:$0xff]  ;;  %v348_v21 = vld [vmem:[%s3116_s8 + $0xa0] sm:$0xff]  ;;  %318 = vst.msk [vmem:[#allocation2 + $0xb9] sm:$0x1] %vm295_vm2, %v3056_v33 }
  0x17   : > { %2798 = vmatprep.mubr.msk.f32.mxu0 %vm366_vm0, %v332_v5  ;;  %v349_v22 = vld [vmem:[%s3116_s8 + $0xa8] sm:$0xff]  ;;  %v350_v23 = vld [vmem:[%s3116_s8 + $0xb0] sm:$0xff]  ;;  %v351_v24 = vld [vmem:[%s3116_s8 + $0xb8] sm:$0xff]  ;;  %319 = vst.msk [vmem:[#allocation2 + $0xd1] sm:$0x1] %vm295_vm2, %v3056_v33 }
  0x18   : > { %v352_v25 = vld [vmem:[%s3116_s8 + $0xc0] sm:$0xff]  ;;  %v353_v26 = vld [vmem:[%s3116_s8 + $0xc8] sm:$0xff]  ;;  %v354_v27 = vld [vmem:[%s3116_s8 + $0xd0] sm:$0xff]  ;;  %320 = vst.msk [vmem:[#allocation2 + $0xe9] sm:$0x1] %vm295_vm2, %v3056_v33 }
  0x19   : > { %v355_v28 = vld [vmem:[%s3116_s8 + $0xd8] sm:$0xff]  ;;  %v356_v29 = vld [vmem:[%s3116_s8 + $0xe0] sm:$0xff]  ;;  %v357_v30 = vld [vmem:[%s3116_s8 + $0xe8] sm:$0xff]  ;;  %321 = vst.msk [vmem:[#allocation2 + $0x101] sm:$0x1] %vm295_vm2, %v3056_v33 }
  0x1a   : > { %2799 = vmatmul.mubr.msk.f32.gmra.mrb[4].mxu0 %vm366_vm0, %v333_v6  ;;  %v358_v31 = vld [vmem:[%s3116_s8 + $0xf0] sm:$0xff]  ;;  %v359_v32 = vld [vmem:[%s3116_s8 + $0xf8] sm:$0xff]  ;;  %322 = vst.msk [vmem:[#allocation2 + $0x119] sm:$0x1] %vm295_vm2, %v3056_v33  ;;  %323 = vst.msk [vmem:[#allocation2 + $0x131] sm:$0x1] %vm295_vm2, %v3056_v33 }
  0x1b   : > { %2801 = vmatprep.mubr.msk.f32.mxu0 %vm366_vm0, %v334_v7  ;;  %324 = vst.msk [vmem:[#allocation2 + $0x149] sm:$0x1] %vm295_vm2, %v3056_v33  ;;  %325 = vst.msk [vmem:[#allocation2 + $0x161] sm:$0x1] %vm295_vm2, %v3056_v33  ;;  %v1009_v62 = vld [vmem:[#allocation2 + $0x8] sm:$0xff] }
  0x1c   : > { %326 = vst.msk [vmem:[#allocation2 + $0x179] sm:$0x1] %vm295_vm2, %v3056_v33  ;;  %327 = vst.msk [vmem:[#allocation2 + $0x191] sm:$0x1] %vm295_vm2, %v3056_v33 }
  0x1d   : > { %289 = vst.msk [vmem:[#allocation2 + $0x10] sm:$0x3] %vm288_vm3, %v3056_v33  ;;  %293 = vst.msk [vmem:[#allocation2 + $0x1a8] sm:$0x3] %vm288_vm3, %v3056_v33 }
  0x1e   : > { %2802 = vmatmul.mubr.msk.f32.gmra.mrb[6].mxu0 %vm366_vm0, %v335_v8  ;;  %v1215_v8 = vmul.f32 %v3262_v57, %v1178_v56 }
  0x1f   : > { %2804 = vmatprep.mubr.msk.f32.mxu0 %vm366_vm0, %v336_v9 }
  0x22   : > { %2805 = vmatmul.mubr.msk.f32.gmra.mrb[8].mxu0 %vm366_vm0, %v337_v10 }
  0x23   : > { %2807 = vmatprep.mubr.msk.f32.mxu0 %vm366_vm0, %v338_v11 }
  0x24   : > { %v1078_v4 = vld [vmem:[#allocation2 + $0x9] sm:$0xff] }
  0x25   : > { %v1179_v34 = vld [vmem:[#allocation2 + $0xa] sm:$0xff] }
  0x26   : > { %2808 = vmatmul.mubr.msk.f32.gmra.mrb[10].mxu0 %vm366_vm0, %v339_v12  ;;  %v1046_v12 = vmul.f32 %v3246_v49, %v1009_v62 }
  0x27   : > { %2810 = vmatprep.mubr.msk.f32.mxu0 %vm366_vm0, %v340_v13 }
  0x2a   : > { %2811 = vmatmul.mubr.msk.f32.gmra.mrb[12].mxu0 %vm366_vm0, %v341_v14 }
  0x2b   : > { %2813 = vmatprep.mubr.msk.f32.mxu0 %vm366_vm0, %v342_v15 }
  0x2e   : > { %2814 = vmatmul.mubr.msk.f32.gmra.mrb[14].mxu0 %vm366_vm0, %v343_v16 }
  0x2f   : > { %2816 = vmatprep.mubr.msk.f32.mxu0 %vm366_vm0, %v344_v17  ;;  %v1115_v17 = vmul.f32 %v3255_v53, %v1078_v4 }
  0x31   : > { %v1147_v33 = vadd.f32 %v1115_v17, %v1046_v12 }
  0x32   : > { %2817 = vmatmul.mubr.msk.f32.gmra.mrb[16].mxu0 %vm366_vm0, %v345_v18 }
  0x33   : > { %2819 = vmatprep.mubr.msk.f32.mxu0 %vm366_vm0, %v346_v19 }
  0x36   : > { %2820 = vmatmul.mubr.msk.f32.gmra.mrb[18].mxu0 %vm366_vm0, %v347_v20 }
  0x37   : > { %2822 = vmatprep.mubr.msk.f32.mxu0 %vm366_vm0, %v348_v21 }
  0x3a   : > { %2823 = vmatmul.mubr.msk.f32.gmra.mrb[20].mxu0 %vm366_vm0, %v349_v22 }
  0x3b   : > { %2825 = vmatprep.mubr.msk.f32.mxu0 %vm366_vm0, %v350_v23 }
  0x3e   : > { %2826 = vmatmul.mubr.msk.f32.gmra.mrb[22].mxu0 %vm366_vm0, %v351_v24 }
  0x3f   : > { %2828 = vmatprep.mubr.msk.f32.mxu0 %vm366_vm0, %v352_v25 }
  0x42   : > { %2829 = vmatmul.mubr.msk.f32.gmra.mrb[24].mxu0 %vm366_vm0, %v353_v26 }
  0x43   : > { %2831 = vmatprep.mubr.msk.f32.mxu0 %vm366_vm0, %v354_v27 }
  0x46   : > { %2832 = vmatmul.mubr.msk.f32.gmra.mrb[26].mxu0 %vm366_vm0, %v355_v28  ;;  %v1146_v28 = vadd.f32 %v1114_v3, %v1045_v61 }
  0x47   : > { %2834 = vmatprep.mubr.msk.f32.mxu0 %vm366_vm0, %v356_v29 }
  0x4a   : > { %2835 = vmatmul.mubr.msk.f32.gmra.mrb[28].mxu0 %vm366_vm0, %v357_v30 }
  0x4b   : > { %2837 = vmatprep.mubr.msk.f32.mxu0 %vm366_vm0, %v358_v31 }
  0x4e   : > { %2838 = vmatmul.mubr.msk.f32.gmra.mrb[30].mxu0 %vm366_vm0, %v359_v32 }
  0xe5   : > { %v2794_v38 = vpop.f32.mrb[0].mxu0 }
  0xe6   : > { %v3230_v39 = vadd.f32 %v2794_v38, %v3227_v37  ;;  %v529_v40 = vpop.f32.mrb[1].mxu0 }
  0xe7   : > { %v3233_v41 = vadd.f32 %v3227_v37, %v529_v40 }
  0xe8   : > { %v689_v42 = vmul.f32 %v3230_v39, %v3230_v39 }
  0xe9   : > { %v688_v43 = vmul.f32 %v3233_v41, %v3233_v41  ;;  %v2797_v44 = vpop.f32.mrb[2].mxu0 }
  0xea   : > { %v721_v45 = vmul.f32 %v689_v42, %v3230_v39  ;;  %v3241_v46 = vadd.f32 %v2797_v44, %v3227_v37  ;;  %v539_v47 = vpop.f32.mrb[3].mxu0 }
  0xeb   : > { %v720_v50 = vmul.f32 %v688_v43, %v3233_v41  ;;  %v3250_v51 = vadd.f32 %v3227_v37, %v539_v47 }
  0xec   : > { %v753_v54 = vmul.f32 0.044715, %v721_v45  ;;  %v691_v55 = vmul.f32 %v3241_v46, %v3241_v46 }
  0xed   : > { %v752_v58 = vmul.f32 0.044715, %v720_v50  ;;  %v690_v59 = vmul.f32 %v3250_v51, %v3250_v51  ;;  %v2800_v60 = vpop.f32.mrb[4].mxu0  ;;  %v1216_v50 = vmul.f32 %v3262_v57, %v1179_v34 }
  0xee   : > { %v785_v63 = vadd.f32 %v753_v54, %v3230_v39  ;;  %v723_v0 = vmul.f32 %v691_v55, %v3241_v46  ;;  %v3270_v1 = vadd.f32 %v2800_v60, %v3227_v37  ;;  %v549_v2 = vpop.f32.mrb[5].mxu0 }
  0xef   : > { %v784_v5 = vadd.f32 %v752_v58, %v3233_v41  ;;  %v722_v6 = vmul.f32 %v690_v59, %v3250_v51  ;;  %v3276_v7 = vadd.f32 %v3227_v37, %v549_v2  ;;  %v3314_v58 = vadd.f32 %v1215_v8, %v1146_v28 }
  0xf0   : > { %v817_v9 = vmul.f32 0.7978846, %v785_v63  ;;  %v755_v10 = vmul.f32 0.044715, %v723_v0  ;;  %v693_v11 = vmul.f32 %v3270_v1, %v3270_v1  ;;  %v3328_v8 = vadd.f32 %v1216_v50, %v1147_v33 }
  0xf1   : > { %v816_v13 = vmul.f32 0.7978846, %v784_v5  ;;  %v754_v14 = vmul.f32 0.044715, %v722_v6  ;;  %v692_v15 = vmul.f32 %v3276_v7, %v3276_v7  ;;  %v2803_v16 = vpop.f32.mrb[6].mxu0 }
  0xf2   : > { %2905 = vtanh.f32 %v817_v9  ;;  %v787_v18 = vadd.f32 %v755_v10, %v3241_v46  ;;  %v725_v19 = vmul.f32 %v693_v11, %v3270_v1  ;;  %v3288_v20 = vadd.f32 %v2803_v16, %v3227_v37  ;;  %v559_v21 = vpop.f32.mrb[7].mxu0 }
  0xf3   : > { %2907 = vtanh.f32 %v816_v13  ;;  %v786_v22 = vadd.f32 %v754_v14, %v3250_v51  ;;  %v724_v23 = vmul.f32 %v692_v15, %v3276_v7  ;;  %v3293_v24 = vadd.f32 %v3227_v37, %v559_v21 }
  0xf4   : > { %v819_v25 = vmul.f32 0.7978846, %v787_v18  ;;  %v757_v26 = vmul.f32 0.044715, %v725_v19  ;;  %v695_v27 = vmul.f32 %v3288_v20, %v3288_v20 }
  0xf5   : > { %v818_v29 = vmul.f32 0.7978846, %v786_v22  ;;  %v756_v30 = vmul.f32 0.044715, %v724_v23  ;;  %v694_v31 = vmul.f32 %v3293_v24, %v3293_v24  ;;  %v2806_v32 = vpop.f32.mrb[8].mxu0 }
  0xf6   : > { %2909 = vtanh.f32 %v819_v25  ;;  %v789_v35 = vadd.f32 %v757_v26, %v3270_v1  ;;  %v727_v36 = vmul.f32 %v695_v27, %v3288_v20  ;;  %v3302_v38 = vadd.f32 %v2806_v32, %v3227_v37  ;;  %v569_v40 = vpop.f32.mrb[9].mxu0 }
  0xf7   : > { %2911 = vtanh.f32 %v818_v29  ;;  %v788_v42 = vadd.f32 %v756_v30, %v3276_v7  ;;  %v726_v43 = vmul.f32 %v694_v31, %v3293_v24  ;;  %v3307_v44 = vadd.f32 %v3227_v37, %v569_v40 }
  0xf8   : > { %v821_v45 = vmul.f32 0.7978846, %v789_v35  ;;  %v759_v47 = vmul.f32 0.044715, %v727_v36  ;;  %v697_v48 = vmul.f32 %v3302_v38, %v3302_v38 }
  0xf9   : > { %v820_v52 = vmul.f32 0.7978846, %v788_v42  ;;  %v758_v54 = vmul.f32 0.044715, %v726_v43  ;;  %v696_v55 = vmul.f32 %v3307_v44, %v3307_v44  ;;  %v2809_v56 = vpop.f32.mrb[10].mxu0 }
  0xfa   : > { %2913 = vtanh.f32 %v821_v45  ;;  %v791_v59 = vadd.f32 %v759_v47, %v3288_v20  ;;  %v729_v60 = vmul.f32 %v697_v48, %v3302_v38  ;;  %v3319_v61 = vadd.f32 %v2809_v56, %v3227_v37  ;;  %v579_v62 = vpop.f32.mrb[11].mxu0 }
  0xfb   : > { %2915 = vtanh.f32 %v820_v52  ;;  %v790_v63 = vadd.f32 %v758_v54, %v3293_v24  ;;  %v728_v0 = vmul.f32 %v696_v55, %v3307_v44  ;;  %v3324_v2 = vadd.f32 %v3227_v37, %v579_v62 }
  0xfc   : > { %v2906_v3 = vpop.eup %2905  ;;  %v823_v4 = vmul.f32 0.7978846, %v791_v59  ;;  %v761_v5 = vmul.f32 0.044715, %v729_v60  ;;  %v699_v6 = vmul.f32 %v3319_v61, %v3319_v61 }
  0xfd   : > { %v2908_v9 = vpop.eup %2907  ;;  %v881_v10 = vadd.f32 1.0, %v2906_v3  ;;  %v822_v11 = vmul.f32 0.7978846, %v790_v63  ;;  %v760_v12 = vmul.f32 0.044715, %v728_v0  ;;  %v698_v13 = vmul.f32 %v3324_v2, %v3324_v2  ;;  %v2812_v14 = vpop.f32.mrb[12].mxu0 }
  0xfe   : > { %v880_v15 = vadd.f32 1.0, %v2908_v9  ;;  %2917 = vtanh.f32 %v823_v4  ;;  %v793_v16 = vadd.f32 %v761_v5, %v3302_v38  ;;  %v731_v17 = vmul.f32 %v699_v6, %v3319_v61  ;;  %v589_v18 = vpop.f32.mrb[13].mxu0 }
  0xff   : > { %v913_v19 = vmul.f32 0.5, %v881_v10  ;;  %2919 = vtanh.f32 %v822_v11  ;;  %v792_v21 = vadd.f32 %v760_v12, %v3307_v44  ;;  %v730_v22 = vmul.f32 %v698_v13, %v3324_v2 }
 0x100   : > { %v2910_v23 = vpop.eup %2909  ;;  %v912_v25 = vmul.f32 0.5, %v880_v15  ;;  %v825_v26 = vmul.f32 0.7978846, %v793_v16  ;;  %v763_v27 = vmul.f32 0.044715, %v731_v17  ;;  %v3337_v28 = vadd.f32 %v2812_v14, %v3227_v37 }
 0x101   : > { %v2912_v29 = vpop.eup %2911  ;;  %v945_v30 = vmul.f32 %v913_v19, %v3230_v39  ;;  %v883_v31 = vadd.f32 1.0, %v2910_v23  ;;  %v824_v32 = vmul.f32 0.7978846, %v792_v21  ;;  %v762_v33 = vmul.f32 0.044715, %v730_v22  ;;  %v2815_v34 = vpop.f32.mrb[14].mxu0 }
 0x102   : > { %v944_v35 = vmul.f32 %v912_v25, %v3233_v41  ;;  %v882_v36 = vadd.f32 1.0, %v2912_v29  ;;  %2921 = vtanh.f32 %v825_v26  ;;  %v795_v40 = vadd.f32 %v763_v27, %v3319_v61  ;;  %v599_v42 = vpop.f32.mrb[15].mxu0 }
 0x103   : > { %977 = vst.msk [vmem:[#allocation2 + $0x21] sm:$0xff] %vm285_vm1, %v945_v30  ;;  %v915_v43 = vmul.f32 0.5, %v883_v31  ;;  %2923 = vtanh.f32 %v824_v32  ;;  %v794_v45 = vadd.f32 %v762_v33, %v3324_v2  ;;  %v701_v39 = vmul.f32 %v3337_v28, %v3337_v28 }
 0x104   : > { %v2914_v47 = vpop.eup %2913  ;;  %976 = vst.msk [vmem:[#allocation2 + $0x19] sm:$0xff] %vm285_vm1, %v944_v35  ;;  %v914_v48 = vmul.f32 0.5, %v882_v36  ;;  %v827_v50 = vmul.f32 0.7978846, %v795_v40  ;;  %v3348_v41 = vadd.f32 %v3227_v37, %v589_v18  ;;  %v3351_v52 = vadd.f32 %v2815_v34, %v3227_v37 }
 0x105   : > { %v2916_v54 = vpop.eup %2915  ;;  %v947_v55 = vmul.f32 %v915_v43, %v3241_v46  ;;  %v885_v56 = vadd.f32 1.0, %v2914_v47  ;;  %v826_v59 = vmul.f32 0.7978846, %v794_v45  ;;  %v733_v60 = vmul.f32 %v701_v39, %v3337_v28  ;;  %v2818_v62 = vpop.f32.mrb[16].mxu0 }
 0x106   : > { %v946_v63 = vmul.f32 %v914_v48, %v3250_v51  ;;  %v884_v0 = vadd.f32 1.0, %v2916_v54  ;;  %2925 = vtanh.f32 %v827_v50  ;;  %v700_v3 = vmul.f32 %v3348_v41, %v3348_v41  ;;  %v609_v4 = vpop.f32.mrb[17].mxu0 }
 0x107   : > { %979 = vst.msk [vmem:[#allocation2 + $0x39] sm:$0xff] %vm285_vm1, %v947_v55  ;;  %v917_v5 = vmul.f32 0.5, %v885_v56  ;;  %2927 = vtanh.f32 %v826_v59  ;;  %v765_v6 = vmul.f32 0.044715, %v733_v60  ;;  %v703_v46 = vmul.f32 %v3351_v52, %v3351_v52 }
 0x108   : > { %v2918_v9 = vpop.eup %2917  ;;  %978 = vst.msk [vmem:[#allocation2 + $0x31] sm:$0xff] %vm285_vm1, %v946_v63  ;;  %v916_v10 = vmul.f32 0.5, %v884_v0  ;;  %v732_v51 = vmul.f32 %v700_v3, %v3348_v41  ;;  %v3364_v11 = vadd.f32 %v3227_v37, %v599_v42  ;;  %v3367_v12 = vadd.f32 %v2818_v62, %v3227_v37 }
 0x109   : > { %v2920_v13 = vpop.eup %2919  ;;  %v949_v14 = vmul.f32 %v917_v5, %v3270_v1  ;;  %v887_v15 = vadd.f32 1.0, %v2918_v9  ;;  %v797_v16 = vadd.f32 %v765_v6, %v3337_v28  ;;  %v735_v17 = vmul.f32 %v703_v46, %v3351_v52  ;;  %v2821_v18 = vpop.f32.mrb[18].mxu0 }
 0x10a   : > { %v948_v19 = vmul.f32 %v916_v10, %v3276_v7  ;;  %v886_v21 = vadd.f32 1.0, %v2920_v13  ;;  %v764_v22 = vmul.f32 0.044715, %v732_v51  ;;  %v702_v23 = vmul.f32 %v3364_v11, %v3364_v11  ;;  %v619_v25 = vpop.f32.mrb[19].mxu0 }
 0x10b   : > { %981 = vst.msk [vmem:[#allocation2 + $0x51] sm:$0xff] %vm285_vm1, %v949_v14  ;;  %v919_v26 = vmul.f32 0.5, %v887_v15  ;;  %v829_v27 = vmul.f32 0.7978846, %v797_v16  ;;  %v767_v29 = vmul.f32 0.044715, %v735_v17  ;;  %v705_v1 = vmul.f32 %v3367_v12, %v3367_v12 }
 0x10c   : > { %v2922_v30 = vpop.eup %2921  ;;  %980 = vst.msk [vmem:[#allocation2 + $0x49] sm:$0xff] %vm285_vm1, %v948_v19  ;;  %v918_v31 = vmul.f32 0.5, %v886_v21  ;;  %v796_v7 = vadd.f32 %v764_v22, %v3348_v41  ;;  %v734_v32 = vmul.f32 %v702_v23, %v3364_v11  ;;  %v3382_v33 = vadd.f32 %v3227_v37, %v609_v4 }
 0x10d   : > { %v2924_v34 = vpop.eup %2923  ;;  %v951_v35 = vmul.f32 %v919_v26, %v3288_v20  ;;  %v889_v36 = vadd.f32 1.0, %v2922_v30  ;;  %2929 = vtanh.f32 %v829_v27  ;;  %v799_v40 = vadd.f32 %v767_v29, %v3351_v52  ;;  %v2824_v42 = vpop.f32.mrb[20].mxu0 }
 0x10e   : > { %v950_v43 = vmul.f32 %v918_v31, %v3293_v24  ;;  %v888_v45 = vadd.f32 1.0, %v2924_v34  ;;  %v828_v39 = vmul.f32 0.7978846, %v796_v7  ;;  %v766_v47 = vmul.f32 0.044715, %v734_v32  ;;  %v629_v48 = vpop.f32.mrb[21].mxu0 }
 0x10f   : > { %983 = vst.msk [vmem:[#allocation2 + $0x69] sm:$0xff] %vm285_vm1, %v951_v35  ;;  %v921_v50 = vmul.f32 0.5, %v889_v36  ;;  %v831_v54 = vmul.f32 0.7978846, %v799_v40  ;;  %v737_v55 = vmul.f32 %v705_v1, %v3367_v12  ;;  %v704_v20 = vmul.f32 %v3382_v33, %v3382_v33 }
 0x110   : > { %v2926_v56 = vpop.eup %2925  ;;  %982 = vst.msk [vmem:[#allocation2 + $0x61] sm:$0xff] %vm285_vm1, %v950_v43  ;;  %v920_v59 = vmul.f32 0.5, %v888_v45  ;;  %2931 = vtanh.f32 %v828_v39  ;;  %v798_v24 = vadd.f32 %v766_v47, %v3364_v11  ;;  %v3394_v60 = vadd.f32 %v2821_v18, %v3227_v37 }
 0x111   : > { %v2928_v62 = vpop.eup %2927  ;;  %v953_v63 = vmul.f32 %v921_v50, %v3302_v38  ;;  %v891_v0 = vadd.f32 1.0, %v2926_v56  ;;  %2933 = vtanh.f32 %v831_v54  ;;  %v769_v3 = vmul.f32 0.044715, %v737_v55  ;;  %v2827_v4 = vpop.f32.mrb[22].mxu0 }
 0x112   : > { %v952_v5 = vmul.f32 %v920_v59, %v3307_v44  ;;  %v890_v6 = vadd.f32 1.0, %v2928_v62  ;;  %v830_v46 = vmul.f32 0.7978846, %v798_v24  ;;  %v736_v9 = vmul.f32 %v704_v20, %v3382_v33  ;;  %v639_v10 = vpop.f32.mrb[23].mxu0 }
 0x113   : > { %985 = vst.msk [vmem:[#allocation2 + $0x81] sm:$0xff] %vm285_vm1, %v953_v63  ;;  %v923_v51 = vmul.f32 0.5, %v891_v0  ;;  %v801_v13 = vadd.f32 %v769_v3, %v3367_v12  ;;  %v707_v14 = vmul.f32 %v3394_v60, %v3394_v60  ;;  %v3404_v38 = vadd.f32 %v3227_v37, %v619_v25 }
 0x114   : > { %984 = vst.msk [vmem:[#allocation2 + $0x79] sm:$0xff] %vm285_vm1, %v952_v5  ;;  %v922_v15 = vmul.f32 0.5, %v890_v6  ;;  %2935 = vtanh.f32 %v830_v46  ;;  %v768_v44 = vmul.f32 0.044715, %v736_v9  ;;  %v3408_v16 = vadd.f32 %v2824_v42, %v3227_v37 }
 0x115   : > { %v955_v17 = vmul.f32 %v923_v51, %v3319_v61  ;;  %v833_v18 = vmul.f32 0.7978846, %v801_v13  ;;  %v739_v19 = vmul.f32 %v707_v14, %v3394_v60  ;;  %v706_v21 = vmul.f32 %v3404_v38, %v3404_v38  ;;  %v2830_v22 = vpop.f32.mrb[24].mxu0 }
 0x116   : > { %v954_v23 = vmul.f32 %v922_v15, %v3324_v2  ;;  %v800_v25 = vadd.f32 %v768_v44, %v3382_v33  ;;  %v709_v26 = vmul.f32 %v3408_v16, %v3408_v16  ;;  %v3419_v27 = vadd.f32 %v3227_v37, %v629_v48  ;;  %v649_v29 = vpop.f32.mrb[25].mxu0 }
 0x117   : > { %v2930_v1 = vpop.eup %2929  ;;  %987 = vst.msk [vmem:[#allocation2 + $0x99] sm:$0xff] %vm285_vm1, %v955_v17  ;;  %2937 = vtanh.f32 %v833_v18  ;;  %v771_v61 = vmul.f32 0.044715, %v739_v19  ;;  %v738_v30 = vmul.f32 %v706_v21, %v3404_v38  ;;  %v3424_v31 = vadd.f32 %v2827_v4, %v3227_v37 }
 0x118   : > { %986 = vst.msk [vmem:[#allocation2 + $0x91] sm:$0xff] %vm285_vm1, %v954_v23  ;;  %v893_v2 = vadd.f32 1.0, %v2930_v1  ;;  %v832_v7 = vmul.f32 0.7978846, %v800_v25  ;;  %v741_v32 = vmul.f32 %v709_v26, %v3408_v16  ;;  %v708_v34 = vmul.f32 %v3419_v27, %v3419_v27 }
 0x119   : > { %v803_v35 = vadd.f32 %v771_v61, %v3394_v60  ;;  %v770_v36 = vmul.f32 0.044715, %v738_v30  ;;  %v711_v40 = vmul.f32 %v3424_v31, %v3424_v31  ;;  %v3434_v42 = vadd.f32 %v3227_v37, %v639_v10  ;;  %v2833_v43 = vpop.f32.mrb[26].mxu0 }
 0x11a   : > { %v2932_v45 = vpop.eup %2931  ;;  %v925_v39 = vmul.f32 0.5, %v893_v2  ;;  %2939 = vtanh.f32 %v832_v7  ;;  %v773_v47 = vmul.f32 0.044715, %v741_v32  ;;  %v740_v48 = vmul.f32 %v708_v34, %v3419_v27  ;;  %v659_v50 = vpop.f32.mrb[27].mxu0 }
 0x11b   : > { %v2934_v54 = vpop.eup %2933  ;;  %v892_v55 = vadd.f32 1.0, %v2932_v45  ;;  %v835_v20 = vmul.f32 0.7978846, %v803_v35  ;;  %v802_v56 = vadd.f32 %v770_v36, %v3404_v38  ;;  %v743_v59 = vmul.f32 %v711_v40, %v3424_v31 }
 0x11c   : > { %v957_v24 = vmul.f32 %v925_v39, %v3337_v28  ;;  %v895_v62 = vadd.f32 1.0, %v2934_v54  ;;  %v805_v63 = vadd.f32 %v773_v47, %v3408_v16  ;;  %v772_v0 = vmul.f32 0.044715, %v740_v48 }
 0x11d   : > { %v924_v3 = vmul.f32 0.5, %v892_v55  ;;  %2941 = vtanh.f32 %v835_v20  ;;  %v834_v4 = vmul.f32 0.7978846, %v802_v56  ;;  %v775_v5 = vmul.f32 0.044715, %v743_v59  ;;  %v2836_v6 = vpop.f32.mrb[28].mxu0 }
 0x11e   : > { %v2936_v46 = vpop.eup %2935  ;;  %989 = vst.msk [vmem:[#allocation2 + $0xb1] sm:$0xff] %vm285_vm1, %v957_v24  ;;  %v927_v9 = vmul.f32 0.5, %v895_v62  ;;  %v837_v10 = vmul.f32 0.7978846, %v805_v63  ;;  %v804_v51 = vadd.f32 %v772_v0, %v3419_v27  ;;  %v710_v13 = vmul.f32 %v3434_v42, %v3434_v42  ;;  %v3445_v28 = vpop.f32.mrb[29].mxu0 }
 0x11f   : > { %v956_v14 = vmul.f32 %v924_v3, %v3348_v41  ;;  %v894_v15 = vadd.f32 1.0, %v2936_v46  ;;  %2943 = vtanh.f32 %v834_v4  ;;  %v807_v44 = vadd.f32 %v775_v5, %v3424_v31 }
 0x120   : > { %v959_v17 = vmul.f32 %v927_v9, %v3351_v52  ;;  %2945 = vtanh.f32 %v837_v10  ;;  %v836_v18 = vmul.f32 0.7978846, %v804_v51  ;;  %v742_v19 = vmul.f32 %v710_v13, %v3434_v42 }
 0x121   : > { %v2938_v21 = vpop.eup %2937  ;;  %988 = vst.msk [vmem:[#allocation2 + $0xa9] sm:$0xff] %vm285_vm1, %v956_v14  ;;  %v926_v23 = vmul.f32 0.5, %v894_v15  ;;  %v839_v25 = vmul.f32 0.7978846, %v807_v44  ;;  %v3453_v26 = vadd.f32 %v2830_v22, %v3227_v37  ;;  %v3456_v41 = vadd.f32 %v3227_v37, %v649_v29  ;;  %v3458_v1 = vpop.f32.mrb[30].mxu0 }
 0x122   : > { %991 = vst.msk [vmem:[#allocation2 + $0xc9] sm:$0xff] %vm285_vm1, %v959_v17  ;;  %v897_v52 = vadd.f32 1.0, %v2938_v21  ;;  %2947 = vtanh.f32 %v836_v18  ;;  %v774_v61 = vmul.f32 0.044715, %v742_v19  ;;  %v3462_v30 = vadd.f32 %v2833_v43, %v3227_v37  ;;  %v3464_v2 = vpop.f32.mrb[31].mxu0 }
 0x123   : > { %v958_v7 = vmul.f32 %v926_v23, %v3364_v11  ;;  %2949 = vtanh.f32 %v839_v25  ;;  %v713_v22 = vmul.f32 %v3453_v26, %v3453_v26  ;;  %v712_v29 = vmul.f32 %v3456_v41, %v3456_v41 }
 0x124   : > { %v2940_v32 = vpop.eup %2939  ;;  %v929_v34 = vmul.f32 0.5, %v897_v52  ;;  %v806_v35 = vadd.f32 %v774_v61, %v3434_v42  ;;  %v715_v36 = vmul.f32 %v3462_v30, %v3462_v30  ;;  %v3475_v40 = vadd.f32 %v3227_v37, %v659_v50 }
 0x125   : > { %990 = vst.msk [vmem:[#allocation2 + $0xc1] sm:$0xff] %vm285_vm1, %v958_v7  ;;  %v896_v11 = vadd.f32 1.0, %v2940_v32  ;;  %v745_v43 = vmul.f32 %v713_v22, %v3453_v26  ;;  %v744_v45 = vmul.f32 %v712_v29, %v3456_v41  ;;  %v3481_v39 = vadd.f32 %v2836_v6, %v3227_v37  ;;  %v3505_v32 = vld [vmem:[#allocation2 + $0x18] sm:$0xff] }
 0x126   : > { %v961_v47 = vmul.f32 %v929_v34, %v3367_v12  ;;  %v838_v48 = vmul.f32 0.7978846, %v806_v35  ;;  %v747_v54 = vmul.f32 %v715_v36, %v3462_v30  ;;  %v714_v55 = vmul.f32 %v3475_v40, %v3475_v40 }
 0x127   : > { %v2942_v50 = vpop.eup %2941  ;;  %v928_v20 = vmul.f32 0.5, %v896_v11  ;;  %v777_v56 = vmul.f32 0.044715, %v745_v43  ;;  %v776_v59 = vmul.f32 0.044715, %v744_v45  ;;  %v717_v24 = vmul.f32 %v3481_v39, %v3481_v39  ;;  %v3514_v11 = vld [vmem:[#allocation2 + $0x19] sm:$0xff] }
 0x128   : > { %993 = vst.msk [vmem:[#allocation2 + $0xe1] sm:$0xff] %vm285_vm1, %v961_v47  ;;  %v899_v62 = vadd.f32 1.0, %v2942_v50  ;;  %2951 = vtanh.f32 %v838_v48  ;;  %v779_v63 = vmul.f32 0.044715, %v747_v54  ;;  %v746_v12 = vmul.f32 %v714_v55, %v3475_v40  ;;  %v3531_v47 = vld [vmem:[%s4768_s3 + $0x6] ss:$0 sm:$0xff] }
 0x129   : > { %v2944_v0 = vpop.eup %2943  ;;  %v960_v3 = vmul.f32 %v928_v20, %v3382_v33  ;;  %v809_v4 = vadd.f32 %v777_v56, %v3453_v26  ;;  %v808_v5 = vadd.f32 %v776_v59, %v3456_v41  ;;  %v749_v6 = vmul.f32 %v717_v24, %v3481_v39  ;;  %v3541_v20 = vld [vmem:[#allocation2 + $0x1a] sm:$0xff]  ;;  %v3548_v56 = vld [vmem:[%s4768_s3 + $0x8] ss:$0 sm:$0xff] }
 0x12a   : > { %v2946_v46 = vpop.eup %2945  ;;  %v931_v9 = vmul.f32 0.5, %v899_v62  ;;  %v898_v10 = vadd.f32 1.0, %v2944_v0  ;;  %v811_v51 = vadd.f32 %v779_v63, %v3462_v30  ;;  %v778_v13 = vmul.f32 0.044715, %v746_v12  ;;  %v3556_v62 = vld [vmem:[#allocation2 + $0x31] sm:$0xff] }
 0x12b   : > { %992 = vst.msk [vmem:[#allocation2 + $0xd9] sm:$0xff] %vm285_vm1, %v960_v3  ;;  %v901_v14 = vadd.f32 1.0, %v2946_v46  ;;  %v841_v15 = vmul.f32 0.7978846, %v809_v4  ;;  %v840_v44 = vmul.f32 0.7978846, %v808_v5  ;;  %v3499_v33 = vadd.f32 %v3227_v37, %v3445_v28 }
 0x12c   : > { %v2948_v17 = vpop.eup %2947  ;;  %v963_v18 = vmul.f32 %v931_v9, %v3394_v60  ;;  %v930_v19 = vmul.f32 0.5, %v898_v10  ;;  %v843_v21 = vmul.f32 0.7978846, %v811_v51  ;;  %v810_v23 = vadd.f32 %v778_v13, %v3475_v40  ;;  %v3510_v60 = vld [vmem:[%s4768_s3 + $0x4] ss:$0 sm:$0xff]  ;;  %v3567_v3 = vld [vmem:[#allocation2 + $0x32] sm:$0xff] }
 0x12d   : > { %v2950_v25 = vpop.eup %2949  ;;  %v933_v52 = vmul.f32 0.5, %v901_v14  ;;  %v900_v61 = vadd.f32 1.0, %v2948_v17  ;;  %2953 = vtanh.f32 %v841_v15  ;;  %v781_v7 = vmul.f32 0.044715, %v749_v6  ;;  %v3561_v63 = vld [vmem:[%s4768_s3 + $0x9] ss:$0 sm:$0xff] }
 0x12e   : > { %995 = vst.msk [vmem:[#allocation2 + $0xf9] sm:$0xff] %vm285_vm1, %v963_v18  ;;  %v962_v22 = vmul.f32 %v930_v19, %v3404_v38  ;;  %v903_v29 = vadd.f32 1.0, %v2950_v25  ;;  %2955 = vtanh.f32 %v840_v44  ;;  %v842_v28 = vmul.f32 0.7978846, %v810_v23  ;;  %v3519_v38 = vld [vmem:[%s4768_s3 + $0x5] ss:$0 sm:$0xff] }
 0x12f   : > { %v965_v34 = vmul.f32 %v933_v52, %v3408_v16  ;;  %v932_v35 = vmul.f32 0.5, %v900_v61  ;;  %2957 = vtanh.f32 %v843_v21  ;;  %v813_v36 = vadd.f32 %v781_v7, %v3481_v39  ;;  %v3572_v4 = vld [vmem:[%s4768_s3 + $0xa] ss:$0 sm:$0xff]  ;;  %v3574_v5 = vld [vmem:[#allocation2 + $0x20] sm:$0xff] }
 0x130   : > { %994 = vst.msk [vmem:[#allocation2 + $0xf1] sm:$0xff] %vm285_vm1, %v962_v22  ;;  %v935_v43 = vmul.f32 0.5, %v903_v29  ;;  %2959 = vtanh.f32 %v842_v28  ;;  %v716_v45 = vmul.f32 %v3499_v33, %v3499_v33  ;;  %v3526_v16 = vadd.f32 %v3458_v1, %v3227_v37  ;;  %v3543_v1 = vld [vmem:[#allocation2 + $0x30] sm:$0xff]  ;;  %v3582_v10 = vld [vmem:[#allocation2 + $0x21] sm:$0xff] }
 0x131   : > { %997 = vst.msk [vmem:[#allocation2 + $0x111] sm:$0xff] %vm285_vm1, %v965_v34  ;;  %v964_v48 = vmul.f32 %v932_v35, %v3419_v27  ;;  %v845_v54 = vmul.f32 0.7978846, %v813_v36  ;;  %v3537_v55 = vadd.f32 %v3227_v37, %v3464_v2  ;;  %v1317_v50 = vmul.f32 %v3510_v60, %v3505_v32  ;;  %v3592_v21 = vld [vmem:[#allocation2 + $0x22] sm:$0xff] }
 0x132   : > { %v2952_v59 = vpop.eup %2951  ;;  %v967_v27 = vmul.f32 %v935_v43, %v3424_v31  ;;  %v748_v24 = vmul.f32 %v716_v45, %v3499_v33  ;;  %v719_v37 = vmul.f32 %v3526_v16, %v3526_v16  ;;  %v1418_v2 = vmul.f32 %v3519_v38, %v3514_v11 }
 0x133   : > { %996 = vst.msk [vmem:[#allocation2 + $0x109] sm:$0xff] %vm285_vm1, %v964_v48  ;;  %v902_v12 = vadd.f32 1.0, %v2952_v59  ;;  %2961 = vtanh.f32 %v845_v54  ;;  %v718_v31 = vmul.f32 %v3537_v55, %v3537_v55  ;;  %v1349_v0 = vadd.f32 %v1317_v50, %v3314_v58 }
 0x134   : > { %999 = vst.msk [vmem:[#allocation2 + $0x129] sm:$0xff] %vm285_vm1, %v967_v27  ;;  %v780_v6 = vmul.f32 0.044715, %v748_v24  ;;  %v751_v46 = vmul.f32 %v719_v37, %v3526_v16  ;;  %v1519_v9 = vmul.f32 %v3531_v47, %v3541_v20  ;;  %v1622_v58 = vmul.f32 %v3548_v56, %v3543_v1 }
 0x135   : > { %v934_v51 = vmul.f32 0.5, %v902_v12  ;;  %v750_v13 = vmul.f32 %v718_v31, %v3537_v55  ;;  %v1450_v14 = vadd.f32 %v1418_v2, %v1349_v0  ;;  %v1723_v15 = vmul.f32 %v3561_v63, %v3556_v62 }
 0x136   : > { %v812_v44 = vadd.f32 %v780_v6, %v3499_v33  ;;  %v783_v17 = vmul.f32 0.044715, %v751_v46  ;;  %v1824_v18 = vmul.f32 %v3572_v4, %v3567_v3  ;;  %v1318_v19 = vmul.f32 %v3510_v60, %v3574_v5  ;;  %v3609_v6 = vld [vmem:[%s4769_s4] ss:$0 sm:$0xff] }
 0x137   : > { %v2954_v23 = vpop.eup %2953  ;;  %v966_v25 = vmul.f32 %v934_v51, %v3434_v42  ;;  %v782_v52 = vmul.f32 0.044715, %v750_v13  ;;  %v1551_v61 = vadd.f32 %v1519_v9, %v1450_v14  ;;  %v1419_v7 = vmul.f32 %v3519_v38, %v3582_v10  ;;  %v3611_v9 = vld [vmem:[#allocation2 + $0x39] sm:$0xff] }
 0x138   : > { %v2956_v22 = vpop.eup %2955  ;;  %v905_v29 = vadd.f32 1.0, %v2954_v23  ;;  %v844_v28 = vmul.f32 0.7978846, %v812_v44  ;;  %v815_v34 = vadd.f32 %v783_v17, %v3526_v16  ;;  %v1350_v35 = vadd.f32 %v1318_v19, %v3328_v8  ;;  %v3603_v8 = vld [vmem:[#allocation2 + $0x38] sm:$0xff] }
 0x139   : > { %v2958_v36 = vpop.eup %2957  ;;  %998 = vst.msk [vmem:[#allocation2 + $0x121] sm:$0xff] %vm285_vm1, %v966_v25  ;;  %v904_v43 = vadd.f32 1.0, %v2956_v22  ;;  %v814_v45 = vadd.f32 %v782_v52, %v3537_v55  ;;  %v1654_v48 = vadd.f32 %v1622_v58, %v1551_v61  ;;  %v1520_v42 = vmul.f32 %v3531_v47, %v3592_v21  ;;  %v3618_v19 = vld [vmem:[#allocation2 + $0x3a] sm:$0xff] }
 0x13a   : > { %v2960_v54 = vpop.eup %2959  ;;  %v937_v50 = vmul.f32 0.5, %v905_v29  ;;  %v907_v59 = vadd.f32 1.0, %v2958_v36  ;;  %2963 = vtanh.f32 %v844_v28  ;;  %v847_v27 = vmul.f32 0.7978846, %v815_v34 }
 0x13b   : > { %v936_v24 = vmul.f32 0.5, %v904_v43  ;;  %v906_v37 = vadd.f32 1.0, %v2960_v54  ;;  %v846_v2 = vmul.f32 0.7978846, %v814_v45  ;;  %v1755_v12 = vadd.f32 %v1723_v15, %v1654_v48  ;;  %v3654_v54 = vld [vmem:[#allocation2 + $0x4a] sm:$0xff] }
 0x13c   : > { %v969_v31 = vmul.f32 %v937_v50, %v3453_v26  ;;  %v939_v0 = vmul.f32 0.5, %v907_v59  ;;  %2965 = vtanh.f32 %v847_v27  ;;  %v1451_v46 = vadd.f32 %v1419_v7, %v1350_v35  ;;  %v3632_v7 = vld [vmem:[#allocation2 + $0x48] sm:$0xff] }
 0x13d   : > { %v2962_v58 = vpop.eup %2961  ;;  %v968_v51 = vmul.f32 %v936_v24, %v3456_v41  ;;  %v938_v13 = vmul.f32 0.5, %v906_v37  ;;  %2967 = vtanh.f32 %v846_v2  ;;  %v1856_v14 = vadd.f32 %v1824_v18, %v1755_v12  ;;  %v3644_v35 = vld [vmem:[#allocation2 + $0x49] sm:$0xff] }
 0x13e   : > { %1001 = vst.msk [vmem:[#allocation2 + $0x141] sm:$0xff] %vm285_vm1, %v969_v31  ;;  %v971_v26 = vmul.f32 %v939_v0, %v3462_v30  ;;  %v909_v15 = vadd.f32 1.0, %v2962_v58  ;;  %v1552_v44 = vadd.f32 %v1520_v42, %v1451_v46  ;;  %v1623_v17 = vmul.f32 %v3548_v56, %v3603_v8 }
 0x13f   : > { %1000 = vst.msk [vmem:[#allocation2 + $0x139] sm:$0xff] %vm285_vm1, %v968_v51  ;;  %v970_v23 = vmul.f32 %v938_v13, %v3475_v40  ;;  %v3623_v41 = vadd.f32 %v3609_v6, %v1856_v14  ;;  %v1724_v18 = vmul.f32 %v3561_v63, %v3611_v9  ;;  %v1047_v52 = vmul.f32 %v3246_v49, %v3505_v32 }
 0x140   : > { %1003 = vst.msk [vmem:[#allocation2 + $0x159] sm:$0xff] %vm285_vm1, %v971_v26  ;;  %v941_v30 = vmul.f32 0.5, %v909_v15  ;;  %v1655_v25 = vadd.f32 %v1623_v17, %v1552_v44  ;;  %v1116_v61 = vmul.f32 %v3255_v53, %v3514_v11  ;;  %v1825_v22 = vmul.f32 %v3572_v4, %v3618_v19  ;;  %v3674_v17 = vld [vmem:[#allocation2 + $0x50] sm:$0xff] }
 0x141   : > { %1002 = vst.msk [vmem:[#allocation2 + $0x151] sm:$0xff] %vm285_vm1, %v970_v23  ;;  %v1926_v40 = vmul.f32 %v3623_v41, %v3623_v41  ;;  %v1217_v29 = vmul.f32 %v3262_v57, %v3541_v20  ;;  %v1319_v11 = vmul.f32 %v3510_v60, %v3543_v1  ;;  %v1420_v43 = vmul.f32 %v3519_v38, %v3556_v62 }
 0x142   : > { %v973_v28 = vmul.f32 %v941_v30, %v3481_v39  ;;  %v1756_v34 = vadd.f32 %v1724_v18, %v1655_v25  ;;  %v1148_v32 = vadd.f32 %v1116_v61, %v1047_v52  ;;  %v1521_v45 = vmul.f32 %v3531_v47, %v3567_v3 }
 0x143   : > { %v1958_v36 = vmul.f32 %v1926_v40, %v3623_v41  ;;  %v1624_v20 = vmul.f32 %v3548_v56, %v3632_v7  ;;  %v1048_v50 = vmul.f32 %v3246_v49, %v3574_v5  ;;  %v1117_v59 = vmul.f32 %v3255_v53, %v3582_v10 }
 0x144   : > { %v2964_v48 = vpop.eup %2963  ;;  %1005 = vst.msk [vmem:[#allocation2 + $0x171] sm:$0xff] %vm285_vm1, %v973_v28  ;;  %v1857_v39 = vadd.f32 %v1825_v22, %v1756_v34  ;;  %v1249_v42 = vadd.f32 %v1217_v29, %v1148_v32  ;;  %v1725_v37 = vmul.f32 %v3561_v63, %v3644_v35  ;;  %v1218_v2 = vmul.f32 %v3262_v57, %v3592_v21  ;;  %v3680_v29 = vld [vmem:[#allocation2 + $0x51] sm:$0xff] }
 0x145   : > { %v908_v27 = vadd.f32 1.0, %v2964_v48  ;;  %v1990_v24 = vmul.f32 0.044715, %v1958_v36  ;;  %v1149_v46 = vadd.f32 %v1117_v59, %v1048_v50  ;;  %v1320_v5 = vmul.f32 %v3510_v60, %v3603_v8  ;;  %v3682_v28 = vld [vmem:[#allocation2 + $0x52] sm:$0xff]  ;;  %v3700_v50 = vld [vmem:[#allocation2 + $0x60] sm:$0xff] }
 0x146   : > { %v2966_v12 = vpop.eup %2965  ;;  %v3665_v31 = vadd.f32 %v3609_v6, %v1857_v39  ;;  %v1351_v0 = vadd.f32 %v1319_v11, %v1249_v42  ;;  %v1826_v14 = vmul.f32 %v3572_v4, %v3654_v54  ;;  %v1421_v25 = vmul.f32 %v3519_v38, %v3611_v9 }
 0x147   : > { %v2968_v58 = vpop.eup %2967  ;;  %v940_v51 = vmul.f32 0.5, %v908_v27  ;;  %v911_v10 = vadd.f32 1.0, %v2966_v12  ;;  %v2022_v13 = vadd.f32 %v1990_v24, %v3623_v41  ;;  %v1250_v44 = vadd.f32 %v1218_v2, %v1149_v46  ;;  %v3706_v24 = vld [vmem:[#allocation2 + $0x61] sm:$0xff] }
 0x148   : > { %v910_v26 = vadd.f32 1.0, %v2968_v58  ;;  %v1927_v21 = vmul.f32 %v3665_v31, %v3665_v31  ;;  %v1452_v15 = vadd.f32 %v1420_v43, %v1351_v0  ;;  %v1625_v32 = vmul.f32 %v3548_v56, %v3674_v17 }
 0x149   : > { %v972_v23 = vmul.f32 %v940_v51, %v3499_v33  ;;  %v943_v18 = vmul.f32 0.5, %v911_v10  ;;  %v2054_v30 = vmul.f32 0.7978846, %v2022_v13  ;;  %v1352_v22 = vadd.f32 %v1320_v5, %v1250_v44  ;;  %v3723_v5 = vld [vmem:[%s4768_s3] ss:$0 sm:$0xff] }
 0x14a   : > { %v942_v52 = vmul.f32 0.5, %v910_v26  ;;  %v1959_v61 = vmul.f32 %v1927_v21, %v3665_v31  ;;  %v1553_v40 = vadd.f32 %v1521_v45, %v1452_v15  ;;  %v1522_v33 = vmul.f32 %v3531_v47, %v3618_v19  ;;  %v3730_v51 = vld [vmem:[%s4768_s3 + $0x1] ss:$0 sm:$0xff]  ;;  %v3739_v21 = vld [vmem:[#allocation2 + $0x68] sm:$0xff]  ;;  %v3744_v44 = vld [vmem:[%s4768_s3 + $0x2] ss:$0 sm:$0xff] }
 0x14b   : > { %1004 = vst.msk [vmem:[#allocation2 + $0x169] sm:$0xff] %vm285_vm1, %v972_v23  ;;  %v975_v34 = vmul.f32 %v943_v18, %v3526_v16  ;;  %2969 = vtanh.f32 %v2054_v30  ;;  %v1453_v45 = vadd.f32 %v1421_v25, %v1352_v22  ;;  %v1726_v48 = vmul.f32 %v3561_v63, %v3680_v29 }
 0x14c   : > { %v974_v11 = vmul.f32 %v942_v52, %v3537_v55  ;;  %v1991_v36 = vmul.f32 0.044715, %v1959_v61  ;;  %v1656_v43 = vadd.f32 %v1624_v20, %v1553_v40  ;;  %v1827_v16 = vmul.f32 %v3572_v4, %v3682_v28 }
 0x14d   : > { %1007 = vst.msk [vmem:[#allocation2 + $0x189] sm:$0xff] %vm285_vm1, %v975_v34  ;;  %v1049_v39 = vmul.f32 %v3246_v49, %v3543_v1  ;;  %v1118_v42 = vmul.f32 %v3255_v53, %v3556_v62  ;;  %v1554_v59 = vadd.f32 %v1522_v33, %v1453_v45  ;;  %v1219_v27 = vmul.f32 %v3262_v57, %v3567_v3  ;;  %v3714_v62 = vld [vmem:[#allocation2 + $0x62] sm:$0xff] }
 0x14e   : > { %1006 = vst.msk [vmem:[#allocation2 + $0x181] sm:$0xff] %vm285_vm1, %v974_v11  ;;  %v2023_v55 = vadd.f32 %v1991_v36, %v3665_v31  ;;  %v1757_v20 = vadd.f32 %v1725_v37, %v1656_v43  ;;  %v1321_v49 = vmul.f32 %v3510_v60, %v3632_v7  ;;  %v1422_v53 = vmul.f32 %v3519_v38, %v3644_v35  ;;  %v3764_v36 = vld [vmem:[#allocation2 + $0x69] sm:$0xff] }
 0x14f   : > { %v1150_v2 = vadd.f32 %v1118_v42, %v1049_v39  ;;  %v1523_v1 = vmul.f32 %v3531_v47, %v3654_v54  ;;  %v1657_v0 = vadd.f32 %v1625_v32, %v1554_v59  ;;  %v1626_v57 = vmul.f32 %v3548_v56, %v3700_v50  ;;  %v3766_v43 = vld [vmem:[#allocation2 + $0x6a] sm:$0xff] }
 0x150   : > { %v2055_v12 = vmul.f32 0.7978846, %v2023_v55  ;;  %v1858_v37 = vadd.f32 %v1826_v14, %v1757_v20  ;;  %v1727_v46 = vmul.f32 %v3561_v63, %v3706_v24  ;;  %v1050_v58 = vmul.f32 %v3723_v5, %v3603_v8 }
 0x151   : > { %v1251_v3 = vadd.f32 %v1219_v27, %v1150_v2  ;;  %v1119_v10 = vmul.f32 %v3730_v51, %v3611_v9  ;;  %v1758_v14 = vadd.f32 %v1726_v48, %v1657_v0  ;;  %v1828_v26 = vmul.f32 %v3572_v4, %v3714_v62 }
 0x152   : > { %2971 = vtanh.f32 %v2055_v12  ;;  %v3735_v13 = vadd.f32 %v3609_v6, %v1858_v37  ;;  %v1220_v9 = vmul.f32 %v3744_v44, %v3618_v19  ;;  %v1322_v23 = vmul.f32 %v3510_v60, %v3674_v17 }
 0x153   : > { %v1353_v15 = vadd.f32 %v1321_v49, %v1251_v3  ;;  %v1151_v8 = vadd.f32 %v1119_v10, %v1050_v58  ;;  %v1859_v30 = vadd.f32 %v1827_v16, %v1758_v14  ;;  %v1423_v25 = vmul.f32 %v3519_v38, %v3680_v29 }
 0x154   : > { %v1928_v18 = vmul.f32 %v3735_v13, %v3735_v13  ;;  %v1524_v52 = vmul.f32 %v3531_v47, %v3682_v28  ;;  %v1627_v34 = vmul.f32 %v3548_v56, %v3739_v21  ;;  %v1051_v19 = vmul.f32 %v3723_v5, %v3632_v7 }
 0x155   : > { %v2970_v61 = vpop.eup %2969  ;;  %v1454_v40 = vadd.f32 %v1422_v53, %v1353_v15  ;;  %v1252_v22 = vadd.f32 %v1220_v9, %v1151_v8  ;;  %v3762_v11 = vadd.f32 %v3609_v6, %v1859_v30  ;;  %v1120_v45 = vmul.f32 %v3730_v51, %v3644_v35  ;;  %v3780_v53 = vld [vmem:[#allocation2 + $0x78] sm:$0xff] }
 0x156   : > { %v2118_v33 = vadd.f32 1.0, %v2970_v61  ;;  %v1960_v32 = vmul.f32 %v1928_v18, %v3735_v13  ;;  %v1221_v39 = vmul.f32 %v3744_v44, %v3654_v54  ;;  %v1323_v7 = vmul.f32 %v3510_v60, %v3700_v50 }
 0x157   : > { %v1555_v48 = vadd.f32 %v1523_v1, %v1454_v40  ;;  %v1354_v16 = vadd.f32 %v1322_v23, %v1252_v22  ;;  %v1929_v20 = vmul.f32 %v3762_v11, %v3762_v11  ;;  %v1152_v59 = vadd.f32 %v1120_v45, %v1051_v19 }
 0x158   : > { %v2150_v42 = vmul.f32 0.5, %v2118_v33  ;;  %v1992_v55 = vmul.f32 0.044715, %v1960_v32  ;;  %v1728_v49 = vmul.f32 %v3561_v63, %v3764_v36  ;;  %v1829_v35 = vmul.f32 %v3572_v4, %v3766_v43  ;;  %v3802_v33 = vld [vmem:[#allocation2 + $0x7a] sm:$0xff] }
 0x159   : > { %v1658_v27 = vadd.f32 %v1626_v57, %v1555_v48  ;;  %v1455_v2 = vadd.f32 %v1423_v25, %v1354_v16  ;;  %v1961_v12 = vmul.f32 %v1929_v20, %v3762_v11  ;;  %v1253_v37 = vadd.f32 %v1221_v39, %v1152_v59  ;;  %v3817_v20 = vld [vmem:[#allocation2 + $0x81] sm:$0xff] }
 0x15a   : > { %v2182_v54 = vmul.f32 %v2150_v42, %v3623_v41  ;;  %v2024_v1 = vadd.f32 %v1992_v55, %v3735_v13  ;;  %v1424_v57 = vmul.f32 %v3519_v38, %v3706_v24  ;;  %v1525_v58 = vmul.f32 %v3531_v47, %v3714_v62 }
 0x15b   : > { %v1759_v0 = vadd.f32 %v1727_v46, %v1658_v27  ;;  %v1556_v3 = vadd.f32 %v1524_v52, %v1455_v2  ;;  %v1993_v15 = vmul.f32 0.044715, %v1961_v12  ;;  %v1355_v8 = vadd.f32 %v1323_v7, %v1253_v37  ;;  %v3795_v52 = vld [vmem:[#allocation2 + $0x79] sm:$0xff] }
 0x15c   : > { %v2972_v10 = vpop.eup %2971  ;;  %2844 = vmatprep.mubr.msk.f32.mxu1 %vm285_vm1, %v2182_v54  ;;  %v2056_v14 = vmul.f32 0.7978846, %v2024_v1  ;;  %v1628_v41 = vmul.f32 %v3548_v56, %v3780_v53  ;;  %v1052_v46 = vmul.f32 %v3723_v5, %v3674_v17  ;;  %v1121_v61 = vmul.f32 %v3730_v51, %v3680_v29  ;;  %v3813_v7 = vld [vmem:[#allocation2 + $0x80] sm:$0xff] }
 0x15d   : > { %v2119_v9 = vadd.f32 1.0, %v2972_v10  ;;  %v1860_v23 = vadd.f32 %v1828_v26, %v1759_v0  ;;  %v1659_v18 = vadd.f32 %v1627_v34, %v1556_v3  ;;  %v2025_v30 = vadd.f32 %v1993_v15, %v3762_v11 }
 0x15e   : > { %2973 = vtanh.f32 %v2056_v14  ;;  %v1456_v25 = vadd.f32 %v1424_v57, %v1355_v8  ;;  %v1222_v26 = vmul.f32 %v3744_v44, %v3682_v28  ;;  %v1153_v32 = vadd.f32 %v1121_v61, %v1052_v46 }
 0x15f   : > { %v2151_v40 = vmul.f32 0.5, %v2119_v9  ;;  %v3800_v22 = vadd.f32 %v3609_v6, %v1860_v23  ;;  %v1760_v19 = vadd.f32 %v1728_v49, %v1659_v18  ;;  %v2057_v17 = vmul.f32 0.7978846, %v2025_v30  ;;  %v3828_v49 = vld [vmem:[#allocation2 + $0x82] sm:$0xff]  ;;  %v3848_v23 = vld [vmem:[#allocation2 + $0x90] sm:$0xff] }
 0x160   : > { %v1557_v34 = vadd.f32 %v1525_v58, %v1456_v25  ;;  %v1324_v45 = vmul.f32 %v3510_v60, %v3739_v21  ;;  %v1729_v39 = vmul.f32 %v3561_v63, %v3795_v52  ;;  %v1830_v28 = vmul.f32 %v3572_v4, %v3802_v33 }
 0x161   : > { %v2183_v48 = vmul.f32 %v2151_v40, %v3665_v31  ;;  %v1930_v29 = vmul.f32 %v3800_v22, %v3800_v22  ;;  %v1861_v16 = vadd.f32 %v1829_v35, %v1760_v19  ;;  %2975 = vtanh.f32 %v2057_v17 }
 0x162   : > { %v1660_v42 = vadd.f32 %v1628_v41, %v1557_v34  ;;  %v1254_v55 = vadd.f32 %v1222_v26, %v1153_v32  ;;  %v1425_v27 = vmul.f32 %v3519_v38, %v3764_v36  ;;  %v1526_v2 = vmul.f32 %v3531_v47, %v3766_v43 }
 0x163   : > { %2845 = vmatmul.mubr.msk.f32.vlgmr.msra.gmra.mrb[0].mxu1 %vm285_vm1, %v2183_v48  ;;  %v1962_v31 = vmul.f32 %v1930_v29, %v3800_v22  ;;  %v3822_v59 = vadd.f32 %v3609_v6, %v1861_v16  ;;  %v1629_v1 = vmul.f32 %v3548_v56, %v3813_v7  ;;  %v1053_v12 = vmul.f32 %v3723_v5, %v3700_v50 }
 0x164   : > { %v1761_v35 = vadd.f32 %v1729_v39, %v1660_v42  ;;  %v1356_v54 = vadd.f32 %v1324_v45, %v1254_v55  ;;  %v1730_v3 = vmul.f32 %v3561_v63, %v3817_v20  ;;  %v1122_v57 = vmul.f32 %v3730_v51, %v3706_v24 }
 0x165   : > { %v1994_v37 = vmul.f32 0.044715, %v1962_v31  ;;  %v1931_v0 = vmul.f32 %v3822_v59, %v3822_v59  ;;  %v1831_v14 = vmul.f32 %v3572_v4, %v3828_v49  ;;  %v1223_v15 = vmul.f32 %v3744_v44, %v3714_v62 }
 0x166   : > { %v1862_v58 = vadd.f32 %v1830_v28, %v1761_v35  ;;  %v1457_v10 = vadd.f32 %v1425_v27, %v1356_v54  ;;  %v1154_v41 = vadd.f32 %v1122_v57, %v1053_v12  ;;  %v1325_v9 = vmul.f32 %v3510_v60, %v3780_v53  ;;  %v3865_v28 = vld [vmem:[#allocation2 + $0x91] sm:$0xff] }
 0x167   : > { %v2026_v50 = vadd.f32 %v1994_v37, %v3800_v22  ;;  %v1963_v8 = vmul.f32 %v1931_v0, %v3822_v59  ;;  %v1426_v30 = vmul.f32 %v3519_v38, %v3795_v52  ;;  %v1527_v62 = vmul.f32 %v3531_v47, %v3802_v33  ;;  %v3872_v54 = vld [vmem:[#allocation2 + $0x92] sm:$0xff] }
 0x168   : > { %v2974_v18 = vpop.eup %2973  ;;  %v3851_v24 = vadd.f32 %v3609_v6, %v1862_v58  ;;  %v1558_v46 = vadd.f32 %v1526_v2, %v1457_v10  ;;  %v1255_v19 = vadd.f32 %v1223_v15, %v1154_v41  ;;  %v1630_v34 = vmul.f32 %v3548_v56, %v3848_v23  ;;  %v3887_v15 = vld [vmem:[#allocation2 + $0x99] sm:$0xff] }
 0x169   : > { %v2120_v25 = vadd.f32 1.0, %v2974_v18  ;;  %v2058_v61 = vmul.f32 0.7978846, %v2026_v50  ;;  %v1995_v40 = vmul.f32 0.044715, %v1963_v8  ;;  %v1054_v32 = vmul.f32 %v3723_v5, %v3739_v21  ;;  %v3894_v18 = vld [vmem:[#allocation2 + $0x9a] sm:$0xff] }
 0x16a   : > { %v1932_v26 = vmul.f32 %v3851_v24, %v3851_v24  ;;  %v1661_v17 = vadd.f32 %v1629_v1, %v1558_v46  ;;  %v1357_v29 = vadd.f32 %v1325_v9, %v1255_v19  ;;  %v1123_v55 = vmul.f32 %v3730_v51, %v3764_v36 }
 0x16b   : > { %v2152_v45 = vmul.f32 0.5, %v2120_v25  ;;  %2977 = vtanh.f32 %v2058_v61  ;;  %v2027_v48 = vadd.f32 %v1995_v40, %v3822_v59  ;;  %v2976_v16 = vpop.eup %2975  ;;  %v1224_v31 = vmul.f32 %v3744_v44, %v3766_v43 }
 0x16c   : > { %v1964_v39 = vmul.f32 %v1932_v26, %v3851_v24  ;;  %v1762_v42 = vadd.f32 %v1730_v3, %v1661_v17  ;;  %v2121_v21 = vadd.f32 1.0, %v2976_v16  ;;  %v1458_v35 = vadd.f32 %v1426_v30, %v1357_v29 }
 0x16d   : > { %v2184_v27 = vmul.f32 %v2152_v45, %v3735_v13  ;;  %v2059_v2 = vmul.f32 0.7978846, %v2027_v48  ;;  %v1155_v37 = vadd.f32 %v1123_v55, %v1054_v32  ;;  %v1326_v0 = vmul.f32 %v3510_v60, %v3813_v7  ;;  %v3879_v13 = vld [vmem:[#allocation2 + $0x98] sm:$0xff]  ;;  %v3910_v32 = vld [vmem:[#allocation2 + $0xa8] sm:$0xff] }
 0x16e   : > { %v1996_v1 = vmul.f32 0.044715, %v1964_v39  ;;  %v1863_v12 = vadd.f32 %v1831_v14, %v1762_v42  ;;  %v2153_v3 = vmul.f32 0.5, %v2121_v21  ;;  %v1559_v36 = vadd.f32 %v1527_v62, %v1458_v35 }
 0x16f   : > { %2847 = vmatprep.mubr.msk.f32.mxu1 %vm285_vm1, %v2184_v27  ;;  %2979 = vtanh.f32 %v2059_v2  ;;  %v1731_v43 = vmul.f32 %v3561_v63, %v3865_v28  ;;  %v1832_v10 = vmul.f32 %v3572_v4, %v3872_v54  ;;  %v1256_v14 = vadd.f32 %v1224_v31, %v1155_v37 }
 0x170   : > { %v2028_v57 = vadd.f32 %v1996_v1, %v3851_v24  ;;  %v3883_v58 = vadd.f32 %v3609_v6, %v1863_v12  ;;  %v2185_v50 = vmul.f32 %v2153_v3, %v3762_v11  ;;  %v1662_v8 = vadd.f32 %v1630_v34, %v1559_v36  ;;  %v3930_v36 = vld [vmem:[#allocation2 + $0xa9] sm:$0xff] }
 0x171   : > { %v1427_v41 = vmul.f32 %v3519_v38, %v3817_v20  ;;  %v1528_v9 = vmul.f32 %v3531_v47, %v3828_v49  ;;  %v1358_v62 = vadd.f32 %v1326_v0, %v1256_v14  ;;  %v1631_v25 = vmul.f32 %v3548_v56, %v3879_v13 }
 0x172   : > { %v2060_v46 = vmul.f32 0.7978846, %v2028_v57  ;;  %v1933_v30 = vmul.f32 %v3883_v58, %v3883_v58  ;;  %2848 = vmatmul.mubr.msk.f32.gmra.mrb[2].mxu1 %vm285_vm1, %v2185_v50  ;;  %v1763_v11 = vadd.f32 %v1731_v43, %v1662_v8  ;;  %v1732_v61 = vmul.f32 %v3561_v63, %v3887_v15 }
 0x173   : > { %v1055_v40 = vmul.f32 %v3723_v5, %v3780_v53  ;;  %v1124_v19 = vmul.f32 %v3730_v51, %v3795_v52  ;;  %v1459_v17 = vadd.f32 %v1427_v41, %v1358_v62  ;;  %v1833_v34 = vmul.f32 %v3572_v4, %v3894_v18  ;;  %v3937_v41 = vld [vmem:[#allocation2 + $0xaa] sm:$0xff] }
 0x174   : > { %2981 = vtanh.f32 %v2060_v46  ;;  %v1965_v26 = vmul.f32 %v1933_v30, %v3883_v58  ;;  %v1864_v48 = vadd.f32 %v1832_v10, %v1763_v11  ;;  %v1225_v16 = vmul.f32 %v3744_v44, %v3802_v33 }
 0x175   : > { %v2978_v45 = vpop.eup %2977  ;;  %v1156_v29 = vadd.f32 %v1124_v19, %v1055_v40  ;;  %v1327_v53 = vmul.f32 %v3510_v60, %v3848_v23  ;;  %v1560_v42 = vadd.f32 %v1528_v9, %v1459_v17  ;;  %v1428_v55 = vmul.f32 %v3519_v38, %v3865_v28  ;;  %v3947_v40 = vld [vmem:[#allocation2 + $0xb0] sm:$0xff] }
 0x176   : > { %v2122_v39 = vadd.f32 1.0, %v2978_v45  ;;  %v1997_v52 = vmul.f32 0.044715, %v1965_v26  ;;  %v3919_v31 = vadd.f32 %v3609_v6, %v1864_v48  ;;  %v1529_v21 = vmul.f32 %v3531_v47, %v3872_v54 }
 0x177   : > { %v1257_v27 = vadd.f32 %v1225_v16, %v1156_v29  ;;  %v1632_v2 = vmul.f32 %v3548_v56, %v3910_v32  ;;  %v1663_v1 = vadd.f32 %v1631_v25, %v1560_v42  ;;  %v1056_v12 = vmul.f32 %v3723_v5, %v3813_v7 }
 0x178   : > { %v2154_v33 = vmul.f32 0.5, %v2122_v39  ;;  %v2029_v35 = vadd.f32 %v1997_v52, %v3883_v58  ;;  %v1934_v0 = vmul.f32 %v3919_v31, %v3919_v31  ;;  %v1125_v43 = vmul.f32 %v3730_v51, %v3817_v20 }
 0x179   : > { %v2980_v37 = vpop.eup %2979  ;;  %v1359_v3 = vadd.f32 %v1327_v53, %v1257_v27  ;;  %v1226_v57 = vmul.f32 %v3744_v44, %v3828_v49  ;;  %v1764_v8 = vadd.f32 %v1732_v61, %v1663_v1  ;;  %v1328_v30 = vmul.f32 %v3510_v60, %v3879_v13 }
 0x17a   : > { %v2186_v10 = vmul.f32 %v2154_v33, %v3800_v22  ;;  %v2123_v14 = vadd.f32 1.0, %v2980_v37  ;;  %v2061_v50 = vmul.f32 0.7978846, %v2029_v35  ;;  %v1966_v7 = vmul.f32 %v1934_v0, %v3919_v31  ;;  %v3969_v35 = vld [vmem:[#allocation2 + $0xb2] sm:$0xff] }
 0x17b   : > { %v1460_v9 = vadd.f32 %v1428_v55, %v1359_v3  ;;  %v1157_v46 = vadd.f32 %v1125_v43, %v1056_v12  ;;  %v1865_v62 = vadd.f32 %v1833_v34, %v1764_v8  ;;  %v1733_v22 = vmul.f32 %v3561_v63, %v3930_v36  ;;  %v3977_v43 = vld [vmem:[#allocation2 + $0xc0] sm:$0xff] }
 0x17c   : > { %2850 = vmatprep.mubr.msk.f32.mxu1 %vm285_vm1, %v2186_v10  ;;  %v2155_v20 = vmul.f32 0.5, %v2123_v14  ;;  %2983 = vtanh.f32 %v2061_v50  ;;  %v1998_v49 = vmul.f32 0.044715, %v1966_v7  ;;  %v1834_v11 = vmul.f32 %v3572_v4, %v3937_v41 }
 0x17d   : > { %v1561_v25 = vadd.f32 %v1529_v21, %v1460_v9  ;;  %v1258_v61 = vadd.f32 %v1226_v57, %v1157_v46  ;;  %v3951_v17 = vadd.f32 %v3609_v6, %v1865_v62  ;;  %v1429_v34 = vmul.f32 %v3519_v38, %v3887_v15 }
 0x17e   : > { %v2982_v19 = vpop.eup %2981  ;;  %v2187_v26 = vmul.f32 %v2155_v20, %v3822_v59  ;;  %v1530_v45 = vmul.f32 %v3531_v47, %v3894_v18  ;;  %v2030_v29 = vadd.f32 %v1998_v49, %v3919_v31  ;;  %v1633_v59 = vmul.f32 %v3548_v56, %v3947_v40 }
 0x17f   : > { %v2124_v48 = vadd.f32 1.0, %v2982_v19  ;;  %v1664_v16 = vadd.f32 %v1632_v2, %v1561_v25  ;;  %v1360_v53 = vadd.f32 %v1328_v30, %v1258_v61  ;;  %v1935_v39 = vmul.f32 %v3951_v17, %v3951_v17  ;;  %v3967_v2 = vld [vmem:[#allocation2 + $0xb1] sm:$0xff]  ;;  %v4000_v61 = vld [vmem:[#allocation2 + $0xc2] sm:$0xff] }
 0x180   : > { %2851 = vmatmul.mubr.msk.f32.gmra.mrb[4].mxu1 %vm285_vm1, %v2187_v26  ;;  %v1057_v52 = vmul.f32 %v3723_v5, %v3848_v23  ;;  %v1126_v42 = vmul.f32 %v3730_v51, %v3865_v28  ;;  %v2062_v27 = vmul.f32 0.7978846, %v2030_v29  ;;  %v1227_v37 = vmul.f32 %v3744_v44, %v3872_v54 }
 0x181   : > { %v2156_v55 = vmul.f32 0.5, %v2124_v48  ;;  %v1765_v21 = vadd.f32 %v1733_v22, %v1664_v16  ;;  %v1461_v33 = vadd.f32 %v1429_v34, %v1360_v53  ;;  %v1967_v1 = vmul.f32 %v1935_v39, %v3951_v17  ;;  %v4009_v39 = vld [vmem:[#allocation2 + $0xc8] sm:$0xff] }
 0x182   : > { %v1158_v12 = vadd.f32 %v1126_v42, %v1057_v52  ;;  %v1329_v23 = vmul.f32 %v3510_v60, %v3910_v32  ;;  %2985 = vtanh.f32 %v2062_v27  ;;  %v1734_v10 = vmul.f32 %v3561_v63, %v3967_v2 }
 0x183   : > { %v2188_v0 = vmul.f32 %v2156_v55, %v3851_v24  ;;  %v1866_v28 = vadd.f32 %v1834_v11, %v1765_v21  ;;  %v1562_v3 = vadd.f32 %v1530_v45, %v1461_v33  ;;  %v1999_v57 = vmul.f32 0.044715, %v1967_v1  ;;  %v3998_v11 = vld [vmem:[#allocation2 + $0xc1] sm:$0xff]  ;;  %v4019_v21 = vld [vmem:[#allocation2 + $0xc9] sm:$0xff] }
 0x184   : > { %v1835_v14 = vmul.f32 %v3572_v4, %v3969_v35  ;;  %v1259_v50 = vadd.f32 %v1227_v37, %v1158_v12  ;;  %v1430_v24 = vmul.f32 %v3519_v38, %v3930_v36  ;;  %v1531_v7 = vmul.f32 %v3531_v47, %v3937_v41 }
 0x185   : > { %2853 = vmatprep.mubr.msk.f32.mxu1 %vm285_vm1, %v2188_v0  ;;  %v3985_v54 = vadd.f32 %v3609_v6, %v1866_v28  ;;  %v1665_v8 = vadd.f32 %v1633_v59, %v1562_v3  ;;  %v2031_v46 = vadd.f32 %v1999_v57, %v3951_v17  ;;  %v1634_v20 = vmul.f32 %v3548_v56, %v3977_v43 }
 0x186   : > { %v2984_v9 = vpop.eup %2983  ;;  %v1361_v30 = vadd.f32 %v1329_v23, %v1259_v50  ;;  %v1058_v62 = vmul.f32 %v3723_v5, %v3879_v13  ;;  %v1127_v19 = vmul.f32 %v3730_v51, %v3887_v15  ;;  %v1228_v45 = vmul.f32 %v3744_v44, %v3894_v18  ;;  %v4035_v50 = vld [vmem:[#allocation2 + $0xca] sm:$0xff] }
 0x187   : > { %v2125_v22 = vadd.f32 1.0, %v2984_v9  ;;  %v1936_v49 = vmul.f32 %v3985_v54, %v3985_v54  ;;  %v1766_v25 = vadd.f32 %v1734_v10, %v1665_v8  ;;  %v2063_v26 = vmul.f32 0.7978846, %v2031_v46 }
 0x188   : > { %v1462_v34 = vadd.f32 %v1430_v24, %v1361_v30  ;;  %v1330_v13 = vmul.f32 %v3510_v60, %v3947_v40  ;;  %v1159_v53 = vadd.f32 %v1127_v19, %v1058_v62  ;;  %v1735_v15 = vmul.f32 %v3561_v63, %v3998_v11 }
 0x189   : > { %v2157_v48 = vmul.f32 0.5, %v2125_v22  ;;  %v1968_v29 = vmul.f32 %v1936_v49, %v3985_v54  ;;  %v1867_v16 = vadd.f32 %v1835_v14, %v1766_v25  ;;  %2987 = vtanh.f32 %v2063_v26  ;;  %v4044_v22 = vld [vmem:[#allocation2 + $0xd8] sm:$0xff] }
 0x18a   : > { %v1563_v59 = vadd.f32 %v1531_v7, %v1462_v34  ;;  %v1836_v52 = vmul.f32 %v3572_v4, %v4000_v61  ;;  %v1260_v27 = vadd.f32 %v1228_v45, %v1159_v53  ;;  %v1431_v1 = vmul.f32 %v3519_v38, %v3967_v2 }
 0x18b   : > { %v2189_v18 = vmul.f32 %v2157_v48, %v3883_v58  ;;  %v2000_v42 = vmul.f32 0.044715, %v1968_v29  ;;  %v4017_v55 = vadd.f32 %v3609_v6, %v1867_v16  ;;  %v1532_v12 = vmul.f32 %v3531_v47, %v3969_v35 }
 0x18c   : > { %v1666_v33 = vadd.f32 %v1634_v20, %v1563_v59  ;;  %v1635_v37 = vmul.f32 %v3548_v56, %v4009_v39  ;;  %v2986_v23 = vpop.eup %2985  ;;  %v1362_v28 = vadd.f32 %v1330_v13, %v1260_v27  ;;  %v1059_v3 = vmul.f32 %v3723_v5, %v3910_v32  ;;  %v4062_v59 = vld [vmem:[#allocation2 + $0xd9] sm:$0xff] }
 0x18d   : > { %2854 = vmatmul.mubr.msk.f32.gmra.mrb[6].mxu1 %vm285_vm1, %v2189_v18  ;;  %v2032_v58 = vadd.f32 %v2000_v42, %v3985_v54  ;;  %v1937_v0 = vmul.f32 %v4017_v55, %v4017_v55  ;;  %v2126_v57 = vadd.f32 1.0, %v2986_v23  ;;  %v1736_v14 = vmul.f32 %v3561_v63, %v4019_v21  ;;  %v4068_v42 = vld [vmem:[#allocation2 + $0xda] sm:$0xff] }
 0x18e   : > { %v1767_v10 = vadd.f32 %v1735_v15, %v1666_v33  ;;  %v1128_v8 = vmul.f32 %v3730_v51, %v3930_v36  ;;  %v1463_v9 = vadd.f32 %v1431_v1, %v1362_v28  ;;  %v1229_v46 = vmul.f32 %v3744_v44, %v3937_v41 }
 0x18f   : > { %v2064_v24 = vmul.f32 0.7978846, %v2032_v58  ;;  %v1969_v7 = vmul.f32 %v1937_v0, %v4017_v55  ;;  %v2158_v30 = vmul.f32 0.5, %v2126_v57  ;;  %v1331_v62 = vmul.f32 %v3510_v60, %v3977_v43  ;;  %v4077_v58 = vld [vmem:[#allocation2 + $0xe0] sm:$0xff] }
 0x190   : > { %v1868_v20 = vadd.f32 %v1836_v52, %v1767_v10  ;;  %v1160_v32 = vadd.f32 %v1128_v8, %v1059_v3  ;;  %v1564_v25 = vadd.f32 %v1532_v12, %v1463_v9  ;;  %v1837_v36 = vmul.f32 %v3572_v4, %v4035_v50  ;;  %v4081_v57 = vld [vmem:[#allocation2 + $0xe1] sm:$0xff] }
 0x191   : > { %2989 = vtanh.f32 %v2064_v24  ;;  %v2001_v49 = vmul.f32 0.044715, %v1969_v7  ;;  %v2190_v19 = vmul.f32 %v2158_v30, %v3919_v31  ;;  %v1432_v34 = vmul.f32 %v3519_v38, %v3998_v11 }
 0x192   : > { %v4050_v26 = vadd.f32 %v3609_v6, %v1868_v20  ;;  %v1261_v41 = vadd.f32 %v1229_v46, %v1160_v32  ;;  %v1667_v13 = vadd.f32 %v1635_v37, %v1564_v25  ;;  %v1533_v48 = vmul.f32 %v3531_v47, %v4000_v61 }
 0x193   : > { %v2033_v45 = vadd.f32 %v2001_v49, %v4017_v55  ;;  %v1636_v29 = vmul.f32 %v3548_v56, %v4044_v22  ;;  %v2988_v16 = vpop.eup %2987  ;;  %2856 = vmatprep.mubr.msk.f32.mxu1 %vm285_vm1, %v2190_v19  ;;  %v1060_v38 = vmul.f32 %v3723_v5, %v3947_v40  ;;  %v1129_v15 = vmul.f32 %v3730_v51, %v3967_v2 }
 0x194   : > { %v1938_v31 = vmul.f32 %v4050_v26, %v4050_v26  ;;  %v1363_v53 = vadd.f32 %v1331_v62, %v1261_v41  ;;  %v2127_v52 = vadd.f32 1.0, %v2988_v16  ;;  %v1768_v18 = vadd.f32 %v1736_v14, %v1667_v13  ;;  %v4090_v14 = vld [vmem:[%s4768_s3 + $0x5] ss:$0 sm:$0xff]  ;;  %v4125_v16 = vld [vmem:[#allocation2 + $0xf0] sm:$0xff] }
 0x195   : > { %v2065_v47 = vmul.f32 0.7978846, %v2033_v45  ;;  %v1230_v27 = vmul.f32 %v3744_v44, %v3969_v35  ;;  %v1161_v12 = vadd.f32 %v1129_v15, %v1060_v38  ;;  %v1332_v37 = vmul.f32 %v3510_v60, %v4009_v39 }
 0x196   : > { %v1970_v33 = vmul.f32 %v1938_v31, %v4050_v26  ;;  %v1464_v1 = vadd.f32 %v1432_v34, %v1363_v53  ;;  %v2159_v23 = vmul.f32 0.5, %v2127_v52  ;;  %v1869_v40 = vadd.f32 %v1837_v36, %v1768_v18  ;;  %v4130_v53 = vld [vmem:[%s4768_s3 + $0xa] ss:$0 sm:$0xff] }
 0x197   : > { %2991 = vtanh.f32 %v2065_v47  ;;  %v1737_v2 = vmul.f32 %v3561_v63, %v4062_v59  ;;  %v1838_v35 = vmul.f32 %v3572_v4, %v4068_v42  ;;  %v1262_v3 = vadd.f32 %v1230_v27, %v1161_v12  ;;  %v4097_v4 = vld [vmem:[%s4768_s3 + $0x6] ss:$0 sm:$0xff] }
 0x198   : > { %v2002_v0 = vmul.f32 0.044715, %v1970_v33  ;;  %v1565_v28 = vadd.f32 %v1533_v48, %v1464_v1  ;;  %v2191_v10 = vmul.f32 %v2159_v23, %v3951_v17  ;;  %v4085_v60 = vadd.f32 %v3609_v6, %v1869_v40 }
 0x199   : > { %v1433_v8 = vmul.f32 %v4090_v14, %v4019_v21  ;;  %v1534_v24 = vmul.f32 %v4097_v4, %v4035_v50  ;;  %v1364_v9 = vadd.f32 %v1332_v37, %v1262_v3  ;;  %v1637_v46 = vmul.f32 %v3548_v56, %v4077_v58  ;;  %v4113_v56 = vld [vmem:[#allocation2 + $0xe2] sm:$0xff] }
 0x19a   : > { %v2034_v17 = vadd.f32 %v2002_v0, %v4050_v26  ;;  %v1668_v7 = vadd.f32 %v1636_v29, %v1565_v28  ;;  %2857 = vmatmul.mubr.msk.f32.gmra.mrb[8].mxu1 %vm285_vm1, %v2191_v10  ;;  %v1939_v20 = vmul.f32 %v4085_v60, %v4085_v60  ;;  %v1738_v32 = vmul.f32 %v3561_v63, %v4081_v57  ;;  %v4121_v63 = vld [vmem:[%s4768_s3 + $0x4] ss:$0 sm:$0xff]  ;;  %v4146_v37 = vld [vmem:[%s4768_s3 + $0x8] ss:$0 sm:$0xff]  ;;  %v4155_v28 = vld [vmem:[#allocation2 + $0xf1] sm:$0xff] }
 0x19b   : > { %v2990_v30 = vpop.eup %2989  ;;  %v1061_v62 = vmul.f32 %v3723_v5, %v3977_v43  ;;  %v1130_v49 = vmul.f32 %v3730_v51, %v3998_v11  ;;  %v1465_v41 = vadd.f32 %v1433_v8, %v1364_v9  ;;  %v1231_v13 = vmul.f32 %v3744_v44, %v4000_v61 }
 0x19c   : > { %v2128_v25 = vadd.f32 1.0, %v2990_v30  ;;  %v2066_v36 = vmul.f32 0.7978846, %v2034_v17  ;;  %v1769_v19 = vadd.f32 %v1737_v2, %v1668_v7  ;;  %v1971_v34 = vmul.f32 %v1939_v20, %v4085_v60  ;;  %v4166_v30 = vld [vmem:[#allocation2 + $0xf8] sm:$0xff] }
 0x19d   : > { %v1162_v45 = vadd.f32 %v1130_v49, %v1061_v62  ;;  %v1333_v43 = vmul.f32 %v4121_v63, %v4044_v22  ;;  %v1566_v29 = vadd.f32 %v1534_v24, %v1465_v41  ;;  %v1839_v61 = vmul.f32 %v4130_v53, %v4113_v56 }
 0x19e   : > { %v2160_v11 = vmul.f32 0.5, %v2128_v25  ;;  %2993 = vtanh.f32 %v2066_v36  ;;  %v1870_v48 = vadd.f32 %v1838_v35, %v1769_v19  ;;  %v2003_v31 = vmul.f32 0.044715, %v1971_v34  ;;  %v4157_v35 = vld [vmem:[#allocation2 + $0xf2] sm:$0xff] }
 0x19f   : > { %v1263_v38 = vadd.f32 %v1231_v13, %v1162_v45  ;;  %v1434_v15 = vmul.f32 %v4090_v14, %v4062_v59  ;;  %v1669_v18 = vadd.f32 %v1637_v46, %v1566_v29  ;;  %v1535_v27 = vmul.f32 %v4097_v4, %v4068_v42  ;;  %v4181_v19 = vld [vmem:[#allocation2 + $0xf9] sm:$0xff] }
 0x1a0   : > { %v2192_v52 = vmul.f32 %v2160_v11, %v3985_v54  ;;  %v4138_v47 = vadd.f32 %v3609_v6, %v1870_v48  ;;  %v2035_v1 = vadd.f32 %v2003_v31, %v4085_v60  ;;  %v1638_v23 = vmul.f32 %v4146_v37, %v4125_v16 }
 0x1a1   : > { %v2992_v33 = vpop.eup %2991  ;;  %v1365_v12 = vadd.f32 %v1333_v43, %v1263_v38  ;;  %v1062_v54 = vmul.f32 %v3723_v5, %v4009_v39  ;;  %v1770_v0 = vadd.f32 %v1738_v32, %v1669_v18  ;;  %v1131_v3 = vmul.f32 %v3730_v51, %v4019_v21  ;;  %v4171_v21 = vld [vmem:[%s4768_s3 + $0x9] ss:$0 sm:$0xff]  ;;  %v4197_v38 = vld [vmem:[#allocation2 + $0xfa] sm:$0xff] }
 0x1a2   : > { %2859 = vmatprep.mubr.msk.f32.mxu1 %vm285_vm1, %v2192_v52  ;;  %v2129_v40 = vadd.f32 1.0, %v2992_v33  ;;  %v1940_v2 = vmul.f32 %v4138_v47, %v4138_v47  ;;  %v2067_v10 = vmul.f32 0.7978846, %v2035_v1  ;;  %v1232_v24 = vmul.f32 %v3744_v44, %v4035_v50 }
 0x1a3   : > { %v1466_v8 = vadd.f32 %v1434_v15, %v1365_v12  ;;  %v1334_v39 = vmul.f32 %v4121_v63, %v4077_v58  ;;  %v1871_v9 = vadd.f32 %v1839_v61, %v1770_v0  ;;  %v1163_v46 = vadd.f32 %v1131_v3, %v1062_v54  ;;  %v4206_v54 = vld [vmem:[#allocation2 + $0x108] sm:$0xff] }
 0x1a4   : > { %v2161_v17 = vmul.f32 0.5, %v2129_v40  ;;  %v1972_v7 = vmul.f32 %v1940_v2, %v4138_v47  ;;  %2995 = vtanh.f32 %v2067_v10  ;;  %v1739_v50 = vmul.f32 %v4171_v21, %v4155_v28 }
 0x1a5   : > { %v1567_v20 = vadd.f32 %v1535_v27, %v1466_v8  ;;  %v1840_v32 = vmul.f32 %v4130_v53, %v4157_v35  ;;  %v4179_v25 = vadd.f32 %v3609_v6, %v1871_v9  ;;  %v1264_v36 = vadd.f32 %v1232_v24, %v1163_v46 }
 0x1a6   : > { %v2193_v62 = vmul.f32 %v2161_v17, %v4017_v55  ;;  %v2004_v49 = vmul.f32 0.044715, %v1972_v7  ;;  %v1435_v34 = vmul.f32 %v4090_v14, %v4081_v57  ;;  %v1536_v45 = vmul.f32 %v4097_v4, %v4113_v56 }
 0x1a7   : > { %v1670_v41 = vadd.f32 %v1638_v23, %v1567_v20  ;;  %v1639_v13 = vmul.f32 %v4146_v37, %v4166_v30  ;;  %v1941_v6 = vmul.f32 %v4179_v25, %v4179_v25  ;;  %v1366_v11 = vadd.f32 %v1334_v39, %v1264_v36  ;;  %v4229_v20 = vld [vmem:[#allocation2 + $0x109] sm:$0xff] }
 0x1a8   : > { %v2994_v43 = vpop.eup %2993  ;;  %2860 = vmatmul.mubr.msk.f32.gmra.mrb[10].mxu1 %vm285_vm1, %v2193_v62  ;;  %v2036_v55 = vadd.f32 %v2004_v49, %v4138_v47  ;;  %v1063_v48 = vmul.f32 %v3723_v5, %v4044_v22  ;;  %v1740_v61 = vmul.f32 %v4171_v21, %v4181_v19  ;;  %v1132_v15 = vmul.f32 %v3730_v51, %v4062_v59 }
 0x1a9   : > { %v2130_v29 = vadd.f32 1.0, %v2994_v43  ;;  %v1771_v31 = vadd.f32 %v1739_v50, %v1670_v41  ;;  %v1973_v18 = vmul.f32 %v1941_v6, %v4179_v25  ;;  %v1467_v27 = vadd.f32 %v1435_v34, %v1366_v11  ;;  %v4235_v41 = vld [vmem:[#allocation2 + $0x10a] sm:$0xff] }
 0x1aa   : > { %v2068_v52 = vmul.f32 0.7978846, %v2036_v55  ;;  %v1233_v33 = vmul.f32 %v3744_v44, %v4068_v42  ;;  %v1164_v22 = vadd.f32 %v1132_v15, %v1063_v48  ;;  %v1335_v23 = vmul.f32 %v4121_v63, %v4125_v16  ;;  %v4214_v42 = vld [vmem:[%s4769_s4] ss:$0 sm:$0xff]  ;;  %v4244_v11 = vld [vmem:[#allocation2 + $0x110] sm:$0xff] }
 0x1ab   : > { %v2162_v1 = vmul.f32 0.5, %v2130_v29  ;;  %v1872_v12 = vadd.f32 %v1840_v32, %v1771_v31  ;;  %v2005_v40 = vmul.f32 0.044715, %v1973_v18  ;;  %v1568_v2 = vadd.f32 %v1536_v45, %v1467_v27 }
 0x1ac   : > { %2997 = vtanh.f32 %v2068_v52  ;;  %v1841_v59 = vmul.f32 %v4130_v53, %v4197_v38  ;;  %v1265_v10 = vadd.f32 %v1233_v33, %v1164_v22  ;;  %v1436_v8 = vmul.f32 %v4090_v14, %v4155_v28 }
 0x1ad   : > { %v2194_v0 = vmul.f32 %v2162_v1, %v4050_v26  ;;  %v4217_v3 = vadd.f32 %v4214_v42, %v1872_v12  ;;  %v2037_v24 = vadd.f32 %v2005_v40, %v4179_v25  ;;  %v1671_v39 = vadd.f32 %v1639_v13, %v1568_v2 }
 0x1ae   : > { %v1537_v17 = vmul.f32 %v4097_v4, %v4157_v35  ;;  %v1640_v26 = vmul.f32 %v4146_v37, %v4206_v54  ;;  %v2996_v7 = vpop.eup %2995  ;;  %v1367_v46 = vadd.f32 %v1335_v23, %v1265_v10  ;;  %v1064_v50 = vmul.f32 %v3723_v5, %v4077_v58 }
 0x1af   : > { %2862 = vmatprep.mubr.msk.f32.mxu1 %vm285_vm1, %v2194_v0  ;;  %v1942_v9 = vmul.f32 %v4217_v3, %v4217_v3  ;;  %v1133_v32 = vmul.f32 %v3730_v51, %v4081_v57  ;;  %v2131_v62 = vadd.f32 1.0, %v2996_v7  ;;  %v2069_v49 = vmul.f32 0.7978846, %v2037_v24 }
 0x1b0   : > { %v1772_v36 = vadd.f32 %v1740_v61, %v1671_v39  ;;  %v1234_v34 = vmul.f32 %v3744_v44, %v4113_v56  ;;  %v1468_v13 = vadd.f32 %v1436_v8, %v1367_v46  ;;  %v1336_v55 = vmul.f32 %v4121_v63, %v4166_v30  ;;  %v4248_v61 = vld [vmem:[#allocation2 + $0x111] sm:$0xff] }
 0x1b1   : > { %v1974_v45 = vmul.f32 %v1942_v9, %v4217_v3  ;;  %v1165_v43 = vadd.f32 %v1133_v32, %v1064_v50  ;;  %v2163_v6 = vmul.f32 0.5, %v2131_v62  ;;  %2999 = vtanh.f32 %v2069_v49  ;;  %v4270_v39 = vld [vmem:[#allocation2 + $0x112] sm:$0xff] }
 0x1b2   : > { %v1873_v58 = vadd.f32 %v1841_v59, %v1772_v36  ;;  %v1741_v57 = vmul.f32 %v4171_v21, %v4229_v20  ;;  %v1569_v29 = vadd.f32 %v1537_v17, %v1468_v13  ;;  %v1842_v56 = vmul.f32 %v4130_v53, %v4235_v41 }
 0x1b3   : > { %v2006_v48 = vmul.f32 0.044715, %v1974_v45  ;;  %v1266_v31 = vadd.f32 %v1234_v34, %v1165_v43  ;;  %v2195_v15 = vmul.f32 %v2163_v6, %v4085_v60  ;;  %v1437_v18 = vmul.f32 %v4090_v14, %v4181_v19 }
 0x1b4   : > { %v4252_v52 = vadd.f32 %v4214_v42, %v1873_v58  ;;  %v1538_v27 = vmul.f32 %v4097_v4, %v4197_v38  ;;  %v1672_v1 = vadd.f32 %v1640_v26, %v1569_v29  ;;  %v1641_v22 = vmul.f32 %v4146_v37, %v4244_v11 }
 0x1b5   : > { %v2038_v33 = vadd.f32 %v2006_v48, %v4217_v3  ;;  %v1368_v12 = vadd.f32 %v1336_v55, %v1266_v31  ;;  %2863 = vmatmul.mubr.msk.f32.gmra.mrb[12].mxu1 %vm285_vm1, %v2195_v15  ;;  %v1742_v40 = vmul.f32 %v4171_v21, %v4248_v61  ;;  %v1065_v2 = vmul.f32 %v3723_v5, %v4125_v16  ;;  %v4299_v31 = vld [vmem:[#allocation2 + $0x122] sm:$0xff] }
 0x1b6   : > { %v2998_v23 = vpop.eup %2997  ;;  %v1943_v60 = vmul.f32 %v4252_v52, %v4252_v52  ;;  %v1134_v59 = vmul.f32 %v3730_v51, %v4155_v28  ;;  %v1773_v8 = vadd.f32 %v1741_v57, %v1672_v1  ;;  %v1235_v7 = vmul.f32 %v3744_v44, %v4157_v35  ;;  %v4277_v28 = vld [vmem:[#allocation2 + $0x120] sm:$0xff] }
 0x1b7   : > { %v2132_v0 = vadd.f32 1.0, %v2998_v23  ;;  %v2070_v10 = vmul.f32 0.7978846, %v2038_v33  ;;  %v1469_v24 = vadd.f32 %v1437_v18, %v1368_v12  ;;  %v1337_v9 = vmul.f32 %v4121_v63, %v4206_v54  ;;  %v4308_v23 = vld [vmem:[#allocation2 + $0x128] sm:$0xff] }
 0x1b8   : > { %v1975_v17 = vmul.f32 %v1943_v60, %v4252_v52  ;;  %v1166_v26 = vadd.f32 %v1134_v59, %v1065_v2  ;;  %v1874_v16 = vadd.f32 %v1842_v56, %v1773_v8  ;;  %v1843_v62 = vmul.f32 %v4130_v53, %v4270_v39  ;;  %v4297_v56 = vld [vmem:[#allocation2 + $0x121] sm:$0xff]  ;;  %v4318_v59 = vld [vmem:[#allocation2 + $0x129] sm:$0xff] }
 0x1b9   : > { %v2164_v46 = vmul.f32 0.5, %v2132_v0  ;;  %3001 = vtanh.f32 %v2070_v10  ;;  %v1570_v50 = vadd.f32 %v1538_v27, %v1469_v24  ;;  %v1438_v36 = vmul.f32 %v4090_v14, %v4229_v20 }
 0x1ba   : > { %v2007_v32 = vmul.f32 0.044715, %v1975_v17  ;;  %v1267_v49 = vadd.f32 %v1235_v7, %v1166_v26  ;;  %v4285_v35 = vadd.f32 %v4214_v42, %v1874_v16  ;;  %v1539_v13 = vmul.f32 %v4097_v4, %v4235_v41 }
 0x1bb   : > { %v2196_v34 = vmul.f32 %v2164_v46, %v4138_v47  ;;  %v1673_v45 = vadd.f32 %v1641_v22, %v1570_v50  ;;  %v3000_v43 = vpop.eup %2999  ;;  %v1642_v58 = vmul.f32 %v4146_v37, %v4277_v28  ;;  %v1066_v57 = vmul.f32 %v3723_v5, %v4166_v30 }
 0x1bc   : > { %v2039_v55 = vadd.f32 %v2007_v32, %v4252_v52  ;;  %v1369_v6 = vadd.f32 %v1337_v9, %v1267_v49  ;;  %v2133_v47 = vadd.f32 1.0, %v3000_v43  ;;  %v1944_v48 = vmul.f32 %v4285_v35, %v4285_v35  ;;  %v4333_v9 = vld [vmem:[%s4768_s3] ss:$0 sm:$0xff]  ;;  %v4344_v49 = vld [vmem:[%s4768_s3 + $0x1] ss:$0 sm:$0xff] }
 0x1bd   : > { %2865 = vmatprep.mubr.msk.f32.mxu1 %vm285_vm1, %v2196_v34  ;;  %v1774_v29 = vadd.f32 %v1742_v40, %v1673_v45  ;;  %v1135_v15 = vmul.f32 %v3730_v51, %v4181_v19  ;;  %v1236_v33 = vmul.f32 %v3744_v44, %v4197_v38  ;;  %v1338_v5 = vmul.f32 %v4121_v63, %v4244_v11 }
 0x1be   : > { %v2071_v18 = vmul.f32 0.7978846, %v2039_v55  ;;  %v1470_v27 = vadd.f32 %v1438_v36, %v1369_v6  ;;  %v2165_v30 = vmul.f32 0.5, %v2133_v47  ;;  %v1976_v1 = vmul.f32 %v1944_v48, %v4285_v35  ;;  %v4358_v47 = vld [vmem:[#allocation2 + $0x138] sm:$0xff] }
 0x1bf   : > { %v1875_v12 = vadd.f32 %v1843_v62, %v1774_v29  ;;  %v1167_v22 = vadd.f32 %v1135_v15, %v1066_v57  ;;  %v1743_v51 = vmul.f32 %v4171_v21, %v4297_v56  ;;  %v1844_v19 = vmul.f32 %v4130_v53, %v4299_v31  ;;  %v4339_v62 = vld [vmem:[#allocation2 + $0x12a] sm:$0xff] }
 0x1c0   : > { %3003 = vtanh.f32 %v2071_v18  ;;  %v1571_v60 = vadd.f32 %v1539_v13, %v1470_v27  ;;  %v2197_v44 = vmul.f32 %v2165_v30, %v4179_v25  ;;  %v2008_v38 = vmul.f32 0.044715, %v1976_v1 }
 0x1c1   : > { %v4316_v40 = vadd.f32 %v4214_v42, %v1875_v12  ;;  %v1268_v2 = vadd.f32 %v1236_v33, %v1167_v22  ;;  %v1439_v10 = vmul.f32 %v4090_v14, %v4248_v61  ;;  %v1540_v8 = vmul.f32 %v4097_v4, %v4270_v39 }
 0x1c2   : > { %v1674_v0 = vadd.f32 %v1642_v58, %v1571_v60  ;;  %v1643_v24 = vmul.f32 %v4146_v37, %v4308_v23  ;;  %2866 = vmatmul.mubr.msk.f32.gmra.mrb[14].mxu1 %vm285_vm1, %v2197_v44  ;;  %v2040_v25 = vadd.f32 %v2008_v38, %v4285_v35  ;;  %v1067_v46 = vmul.f32 %v4333_v9, %v4206_v54  ;;  %v4352_v54 = vld [vmem:[%s4768_s3 + $0x2] ss:$0 sm:$0xff]  ;;  %v4376_v60 = vld [vmem:[#allocation2 + $0x139] sm:$0xff] }
 0x1c3   : > { %v3002_v17 = vpop.eup %3001  ;;  %v1945_v26 = vmul.f32 %v4316_v40, %v4316_v40  ;;  %v1370_v7 = vadd.f32 %v1338_v5, %v1268_v2  ;;  %v1744_v32 = vmul.f32 %v4171_v21, %v4318_v59  ;;  %v1136_v36 = vmul.f32 %v4344_v49, %v4229_v20 }
 0x1c4   : > { %v2134_v16 = vadd.f32 1.0, %v3002_v17  ;;  %v1775_v50 = vadd.f32 %v1743_v51, %v1674_v0  ;;  %v2072_v34 = vmul.f32 0.7978846, %v2040_v25  ;;  %v1237_v43 = vmul.f32 %v4352_v54, %v4235_v41  ;;  %v4382_v0 = vld [vmem:[#allocation2 + $0x13a] sm:$0xff] }
 0x1c5   : > { %v1977_v45 = vmul.f32 %v1945_v26, %v4316_v40  ;;  %v1471_v13 = vadd.f32 %v1439_v10, %v1370_v7  ;;  %v1168_v58 = vadd.f32 %v1136_v36, %v1067_v46  ;;  %v1339_v57 = vmul.f32 %v4121_v63, %v4277_v28  ;;  %v4391_v7 = vld [vmem:[#allocation2 + $0x140] sm:$0xff] }
 0x1c6   : > { %v2166_v55 = vmul.f32 0.5, %v2134_v16  ;;  %v1876_v6 = vadd.f32 %v1844_v19, %v1775_v50  ;;  %3005 = vtanh.f32 %v2072_v34  ;;  %v1845_v29 = vmul.f32 %v4130_v53, %v4339_v62 }
 0x1c7   : > { %v2009_v20 = vmul.f32 0.044715, %v1977_v45  ;;  %v1572_v48 = vadd.f32 %v1540_v8, %v1471_v13  ;;  %v1269_v41 = vadd.f32 %v1237_v43, %v1168_v58  ;;  %v1440_v27 = vmul.f32 %v4090_v14, %v4297_v56 }
 0x1c8   : > { %v2198_v15 = vmul.f32 %v2166_v55, %v4217_v3  ;;  %v4364_v18 = vadd.f32 %v4214_v42, %v1876_v6  ;;  %v1541_v30 = vmul.f32 %v4097_v4, %v4299_v31  ;;  %v1644_v1 = vmul.f32 %v4146_v37, %v4358_v47 }
 0x1c9   : > { %v2041_v33 = vadd.f32 %v2009_v20, %v4316_v40  ;;  %v1675_v5 = vadd.f32 %v1643_v24, %v1572_v48  ;;  %v1371_v22 = vadd.f32 %v1339_v57, %v1269_v41  ;;  %v1068_v51 = vmul.f32 %v4333_v9, %v4244_v11 }
 0x1ca   : > { %v3004_v12 = vpop.eup %3003  ;;  %2868 = vmatprep.mubr.msk.f32.mxu1 %vm285_vm1, %v2198_v15  ;;  %v1946_v3 = vmul.f32 %v4364_v18, %v4364_v18  ;;  %v1137_v19 = vmul.f32 %v4344_v49, %v4248_v61  ;;  %v1238_v10 = vmul.f32 %v4352_v54, %v4270_v39  ;;  %v1340_v25 = vmul.f32 %v4121_v63, %v4308_v23 }
 0x1cb   : > { %v2135_v44 = vadd.f32 1.0, %v3004_v12  ;;  %v2073_v38 = vmul.f32 0.7978846, %v2041_v33  ;;  %v1776_v2 = vadd.f32 %v1744_v32, %v1675_v5  ;;  %v1472_v24 = vadd.f32 %v1440_v27, %v1371_v22  ;;  %v4395_v32 = vld [vmem:[#allocation2 + $0x141] sm:$0xff] }
 0x1cc   : > { %v1978_v8 = vmul.f32 %v1946_v3, %v4364_v18  ;;  %v1169_v17 = vadd.f32 %v1137_v19, %v1068_v51  ;;  %v1745_v61 = vmul.f32 %v4171_v21, %v4376_v60  ;;  %v1846_v39 = vmul.f32 %v4130_v53, %v4382_v0  ;;  %v4417_v5 = vld [vmem:[#allocation2 + $0x142] sm:$0xff] }
 0x1cd   : > { %v2167_v26 = vmul.f32 0.5, %v2135_v44  ;;  %3007 = vtanh.f32 %v2073_v38  ;;  %v1877_v11 = vadd.f32 %v1845_v29, %v1776_v2  ;;  %v1573_v16 = vadd.f32 %v1541_v30, %v1472_v24 }
 0x1ce   : > { %v2010_v46 = vmul.f32 0.044715, %v1978_v8  ;;  %v1270_v50 = vadd.f32 %v1238_v10, %v1169_v17  ;;  %v1441_v45 = vmul.f32 %v4090_v14, %v4318_v59  ;;  %v1542_v13 = vmul.f32 %v4097_v4, %v4339_v62 }
 0x1cf   : > { %v2199_v36 = vmul.f32 %v2167_v26, %v4252_v52  ;;  %v4399_v34 = vadd.f32 %v4214_v42, %v1877_v11  ;;  %v1676_v55 = vadd.f32 %v1644_v1, %v1573_v16  ;;  %v1645_v58 = vmul.f32 %v4146_v37, %v4391_v7 }
 0x1d0   : > { %v2042_v43 = vadd.f32 %v2010_v46, %v4364_v18  ;;  %v1372_v6 = vadd.f32 %v1340_v25, %v1270_v50  ;;  %v3006_v57 = vpop.eup %3005  ;;  %v1746_v20 = vmul.f32 %v4171_v21, %v4395_v32  ;;  %v1069_v48 = vmul.f32 %v4333_v9, %v4277_v28  ;;  %v4446_v50 = vld [vmem:[#allocation2 + $0x152] sm:$0xff] }
 0x1d1   : > { %2869 = vmatmul.mubr.msk.f32.gmra.mrb[16].mxu1 %vm285_vm1, %v2199_v36  ;;  %v1947_v52 = vmul.f32 %v4399_v34, %v4399_v34  ;;  %v1138_v29 = vmul.f32 %v4344_v49, %v4297_v56  ;;  %v2136_v15 = vadd.f32 1.0, %v3006_v57  ;;  %v1777_v27 = vadd.f32 %v1745_v61, %v1676_v55  ;;  %v4424_v56 = vld [vmem:[#allocation2 + $0x150] sm:$0xff] }
 0x1d2   : > { %v2074_v41 = vmul.f32 0.7978846, %v2042_v43  ;;  %v1473_v33 = vadd.f32 %v1441_v45, %v1372_v6  ;;  %v1239_v12 = vmul.f32 %v4352_v54, %v4299_v31  ;;  %v1341_v3 = vmul.f32 %v4121_v63, %v4358_v47 }
 0x1d3   : > { %v1979_v30 = vmul.f32 %v1947_v52, %v4399_v34  ;;  %v1170_v1 = vadd.f32 %v1138_v29, %v1069_v48  ;;  %v2168_v22 = vmul.f32 0.5, %v2136_v15  ;;  %v1878_v28 = vadd.f32 %v1846_v39, %v1777_v27  ;;  %v4444_v39 = vld [vmem:[#allocation2 + $0x151] sm:$0xff]  ;;  %v4465_v27 = vld [vmem:[#allocation2 + $0x159] sm:$0xff] }
 0x1d4   : > { %3009 = vtanh.f32 %v2074_v41  ;;  %v1574_v51 = vadd.f32 %v1542_v13, %v1473_v33  ;;  %v1847_v44 = vmul.f32 %v4130_v53, %v4417_v5  ;;  %v1442_v2 = vmul.f32 %v4090_v14, %v4376_v60  ;;  %v4455_v52 = vld [vmem:[#allocation2 + $0x158] sm:$0xff] }
 0x1d5   : > { %v2011_v19 = vmul.f32 0.044715, %v1979_v30  ;;  %v1271_v38 = vadd.f32 %v1239_v12, %v1170_v1  ;;  %v2200_v10 = vmul.f32 %v2168_v22, %v4285_v35  ;;  %v4432_v31 = vadd.f32 %v4214_v42, %v1878_v28 }
 0x1d6   : > { %v1677_v8 = vadd.f32 %v1645_v58, %v1574_v51  ;;  %v1543_v24 = vmul.f32 %v4097_v4, %v4382_v0  ;;  %v1646_v11 = vmul.f32 %v4146_v37, %v4424_v56  ;;  %v1070_v61 = vmul.f32 %v4333_v9, %v4308_v23 }
 0x1d7   : > { %v3008_v17 = vpop.eup %3007  ;;  %v2043_v25 = vadd.f32 %v2011_v19, %v4399_v34  ;;  %v1373_v26 = vadd.f32 %v1341_v3, %v1271_v38  ;;  %2871 = vmatprep.mubr.msk.f32.mxu1 %vm285_vm1, %v2200_v10  ;;  %v1948_v46 = vmul.f32 %v4432_v31, %v4432_v31  ;;  %v1139_v36 = vmul.f32 %v4344_v49, %v4318_v59 }
 0x1d8   : > { %v2137_v35 = vadd.f32 1.0, %v3008_v17  ;;  %v1778_v16 = vadd.f32 %v1746_v20, %v1677_v8  ;;  %v1240_v43 = vmul.f32 %v4352_v54, %v4339_v62  ;;  %v1342_v23 = vmul.f32 %v4121_v63, %v4391_v7 }
 0x1d9   : > { %v2075_v45 = vmul.f32 0.7978846, %v2043_v25  ;;  %v1474_v13 = vadd.f32 %v1442_v2, %v1373_v26  ;;  %v1980_v6 = vmul.f32 %v1948_v46, %v4432_v31  ;;  %v1171_v57 = vadd.f32 %v1139_v36, %v1070_v61  ;;  %v4481_v2 = vld [vmem:[#allocation2 + $0x15a] sm:$0xff] }
 0x1da   : > { %v2169_v55 = vmul.f32 0.5, %v2137_v35  ;;  %v1879_v58 = vadd.f32 %v1847_v44, %v1778_v16  ;;  %v1747_v59 = vmul.f32 %v4171_v21, %v4444_v39  ;;  %v1848_v48 = vmul.f32 %v4130_v53, %v4446_v50  ;;  %v4490_v35 = vld [vmem:[#allocation2 + $0x168] sm:$0xff] }
 0x1db   : > { %3011 = vtanh.f32 %v2075_v45  ;;  %v1575_v20 = vadd.f32 %v1543_v24, %v1474_v13  ;;  %v2012_v29 = vmul.f32 0.044715, %v1980_v6  ;;  %v1272_v41 = vadd.f32 %v1240_v43, %v1171_v57 }
 0x1dc   : > { %v2201_v62 = vmul.f32 %v2169_v55, %v4316_v40  ;;  %v4463_v15 = vadd.f32 %v4214_v42, %v1879_v58  ;;  %v1443_v30 = vmul.f32 %v4090_v14, %v4395_v32  ;;  %v1544_v1 = vmul.f32 %v4097_v4, %v4417_v5 }
 0x1dd   : > { %v1678_v33 = vadd.f32 %v1646_v11, %v1575_v20  ;;  %v1647_v12 = vmul.f32 %v4146_v37, %v4455_v52  ;;  %v2044_v40 = vadd.f32 %v2012_v29, %v4432_v31  ;;  %v1374_v28 = vadd.f32 %v1342_v23, %v1272_v41  ;;  %v4508_v20 = vld [vmem:[#allocation2 + $0x169] sm:$0xff] }
 0x1de   : > { %v3010_v3 = vpop.eup %3009  ;;  %2872 = vmatmul.mubr.msk.f32.gmra.mrb[18].mxu1 %vm285_vm1, %v2201_v62  ;;  %v1949_v22 = vmul.f32 %v4463_v15, %v4463_v15  ;;  %v1071_v51 = vmul.f32 %v4333_v9, %v4358_v47  ;;  %v1748_v38 = vmul.f32 %v4171_v21, %v4465_v27  ;;  %v1140_v10 = vmul.f32 %v4344_v49, %v4376_v60 }
 0x1df   : > { %v2138_v19 = vadd.f32 1.0, %v3010_v3  ;;  %v1779_v44 = vadd.f32 %v1747_v59, %v1678_v33  ;;  %v2076_v8 = vmul.f32 0.7978846, %v2044_v40  ;;  %v1475_v17 = vadd.f32 %v1443_v30, %v1374_v28  ;;  %v4514_v33 = vld [vmem:[#allocation2 + $0x16a] sm:$0xff] }
 0x1e0   : > { %v1981_v24 = vmul.f32 %v1949_v22, %v4463_v15  ;;  %v1241_v25 = vmul.f32 %v4352_v54, %v4382_v0  ;;  %v1172_v47 = vadd.f32 %v1140_v10, %v1071_v51  ;;  %v1343_v61 = vmul.f32 %v4121_v63, %v4424_v56  ;;  %v4523_v28 = vld [vmem:[#allocation2 + $0x170] sm:$0xff] }
 0x1e1   : > { %v2170_v26 = vmul.f32 0.5, %v2138_v19  ;;  %v1880_v11 = vadd.f32 %v1848_v48, %v1779_v44  ;;  %3013 = vtanh.f32 %v2076_v8  ;;  %v1576_v16 = vadd.f32 %v1544_v1, %v1475_v17 }
 0x1e2   : > { %v2013_v46 = vmul.f32 0.044715, %v1981_v24  ;;  %v1849_v60 = vmul.f32 %v4130_v53, %v4481_v2  ;;  %v1273_v0 = vadd.f32 %v1241_v25, %v1172_v47  ;;  %v1444_v13 = vmul.f32 %v4090_v14, %v4444_v39 }
 0x1e3   : > { %v2202_v36 = vmul.f32 %v2170_v26, %v4364_v18  ;;  %v4496_v45 = vadd.f32 %v4214_v42, %v1880_v11  ;;  %v1679_v23 = vadd.f32 %v1647_v12, %v1576_v16  ;;  %v1545_v55 = vmul.f32 %v4097_v4, %v4446_v50 }
 0x1e4   : > { %v2045_v43 = vadd.f32 %v2013_v46, %v4463_v15  ;;  %v1648_v6 = vmul.f32 %v4146_v37, %v4490_v35  ;;  %v1375_v57 = vadd.f32 %v1343_v61, %v1273_v0  ;;  %v1072_v59 = vmul.f32 %v4333_v9, %v4391_v7 }
 0x1e5   : > { %v3012_v58 = vpop.eup %3011  ;;  %2874 = vmatprep.mubr.msk.f32.mxu1 %vm285_vm1, %v2202_v36  ;;  %v1950_v18 = vmul.f32 %v4496_v45, %v4496_v45  ;;  %v1141_v48 = vmul.f32 %v4344_v49, %v4395_v32  ;;  %v1780_v41 = vadd.f32 %v1748_v38, %v1679_v23  ;;  %v1242_v30 = vmul.f32 %v4352_v54, %v4417_v5  ;;  %v4527_v38 = vld [vmem:[#allocation2 + $0x171] sm:$0xff] }
 0x1e6   : > { %v2139_v62 = vadd.f32 1.0, %v3012_v58  ;;  %v2077_v29 = vmul.f32 0.7978846, %v2045_v43  ;;  %v1476_v12 = vadd.f32 %v1444_v13, %v1375_v57  ;;  %v1344_v40 = vmul.f32 %v4121_v63, %v4455_v52  ;;  %v4549_v23 = vld [vmem:[#allocation2 + $0x172] sm:$0xff] }
 0x1e7   : > { %v1982_v1 = vmul.f32 %v1950_v18, %v4496_v45  ;;  %v1173_v3 = vadd.f32 %v1141_v48, %v1072_v59  ;;  %v1881_v7 = vadd.f32 %v1849_v60, %v1780_v41  ;;  %v1749_v32 = vmul.f32 %v4171_v21, %v4508_v20 }
 0x1e8   : > { %v2171_v22 = vmul.f32 0.5, %v2139_v62  ;;  %3015 = vtanh.f32 %v2077_v29  ;;  %v1577_v19 = vadd.f32 %v1545_v55, %v1476_v12  ;;  %v1850_v5 = vmul.f32 %v4130_v53, %v4514_v33 }
 0x1e9   : > { %v2014_v51 = vmul.f32 0.044715, %v1982_v1  ;;  %v1274_v44 = vadd.f32 %v1242_v30, %v1173_v3  ;;  %v4531_v8 = vadd.f32 %v4214_v42, %v1881_v7  ;;  %v1445_v24 = vmul.f32 %v4090_v14, %v4465_v27 }
 0x1ea   : > { %v2203_v10 = vmul.f32 %v2171_v22, %v4399_v34  ;;  %v1546_v17 = vmul.f32 %v4097_v4, %v4481_v2  ;;  %v1680_v26 = vadd.f32 %v1648_v6, %v1577_v19  ;;  %v1649_v47 = vmul.f32 %v4146_v37, %v4523_v28 }
 0x1eb   : > { %v2046_v25 = vadd.f32 %v2014_v51, %v4496_v45  ;;  %v1376_v11 = vadd.f32 %v1344_v40, %v1274_v44  ;;  %v3014_v61 = vpop.eup %3013  ;;  %v1951_v34 = vmul.f32 %v4531_v8, %v4531_v8  ;;  %v1750_v46 = vmul.f32 %v4171_v21, %v4527_v38  ;;  %v1815_v44 = vld [vmem:[#allocation2 + $0x182] sm:$0xff] }
 0x1ec   : > { %2875 = vmatmul.mubr.msk.f32.gmra.mrb[20].mxu1 %vm285_vm1, %v2203_v10  ;;  %v1073_v16 = vmul.f32 %v4333_v9, %v4424_v56  ;;  %v1142_v60 = vmul.f32 %v4344_v49, %v4444_v39  ;;  %v2140_v36 = vadd.f32 1.0, %v3014_v61  ;;  %v1781_v13 = vadd.f32 %v1749_v32, %v1680_v26  ;;  %v1612_v39 = vld [vmem:[#allocation2 + $0x180] sm:$0xff] }
 0x1ed   : > { %v2078_v0 = vmul.f32 0.7978846, %v2046_v25  ;;  %v1477_v43 = vadd.f32 %v1445_v24, %v1376_v11  ;;  %v1983_v55 = vmul.f32 %v1951_v34, %v4531_v8  ;;  %v1243_v58 = vmul.f32 %v4352_v54, %v4446_v50  ;;  %v1613_v34 = vld [vmem:[#allocation2 + $0x188] sm:$0xff] }
 0x1ee   : > { %v1174_v6 = vadd.f32 %v1142_v60, %v1073_v16  ;;  %v1345_v18 = vmul.f32 %v4121_v63, %v4490_v35  ;;  %v2172_v57 = vmul.f32 0.5, %v2140_v36  ;;  %v1882_v56 = vadd.f32 %v1850_v5, %v1781_v13  ;;  %v1714_v5 = vld [vmem:[#allocation2 + $0x181] sm:$0xff]  ;;  %v4586_v13 = vld [vmem:[#allocation2 + $0x189] sm:$0xff] }
 0x1ef   : > { %3017 = vtanh.f32 %v2078_v0  ;;  %v1578_v59 = vadd.f32 %v1546_v17, %v1477_v43  ;;  %v2015_v48 = vmul.f32 0.044715, %v1983_v55  ;;  %v1851_v62 = vmul.f32 %v4130_v53, %v4549_v23 }
 0x1f0   : > { %v1275_v29 = vadd.f32 %v1243_v58, %v1174_v6  ;;  %v1446_v41 = vmul.f32 %v4090_v14, %v4508_v20  ;;  %v2204_v30 = vmul.f32 %v2172_v57, %v4432_v31  ;;  %v4562_v50 = vadd.f32 %v4214_v42, %v1882_v56 }
 0x1f1   : > { %v1681_v1 = vadd.f32 %v1649_v47, %v1578_v59  ;;  %v1547_v12 = vmul.f32 %v4097_v4, %v4514_v33  ;;  %v2047_v40 = vadd.f32 %v2015_v48, %v4531_v8  ;;  %v1650_v7 = vmul.f32 %v4146_v37, %v1612_v39 }
 0x1f2   : > { %v3016_v3 = vpop.eup %3015  ;;  %v1377_v22 = vadd.f32 %v1345_v18, %v1275_v29  ;;  %v1074_v32 = vmul.f32 %v4333_v9, %v4455_v52  ;;  %2877 = vmatprep.mubr.msk.f32.mxu1 %vm285_vm1, %v2204_v30  ;;  %v1952_v31 = vmul.f32 %v4562_v50, %v4562_v50  ;;  %v1143_v10 = vmul.f32 %v4344_v49, %v4465_v27 }
 0x1f3   : > { %v2141_v51 = vadd.f32 1.0, %v3016_v3  ;;  %v1782_v19 = vadd.f32 %v1750_v46, %v1681_v1  ;;  %v2079_v24 = vmul.f32 0.7978846, %v2047_v40  ;;  %v1244_v25 = vmul.f32 %v4352_v54, %v4481_v2 }
 0x1f4   : > { %v1478_v17 = vadd.f32 %v1446_v41, %v1377_v22  ;;  %v1346_v52 = vmul.f32 %v4121_v63, %v4523_v28  ;;  %v1984_v11 = vmul.f32 %v1952_v31, %v4562_v50  ;;  %v1175_v61 = vadd.f32 %v1143_v10, %v1074_v32  ;;  %v1816_v41 = vld [vmem:[#allocation2 + $0x18a] sm:$0xff] }
 0x1f5   : > { %v2173_v26 = vmul.f32 0.5, %v2141_v51  ;;  %v1883_v47 = vadd.f32 %v1851_v62, %v1782_v19  ;;  %3019 = vtanh.f32 %v2079_v24  ;;  %v1751_v16 = vmul.f32 %v4171_v21, %v1714_v5  ;;  %v1614_v51 = vld [vmem:[#allocation2 + $0x198] sm:$0xff] }
 0x1f6   : > { %v1579_v46 = vadd.f32 %v1547_v12, %v1478_v17  ;;  %v1852_v27 = vmul.f32 %v4130_v53, %v1815_v44  ;;  %v2016_v36 = vmul.f32 0.044715, %v1984_v11  ;;  %v1276_v0 = vadd.f32 %v1244_v25, %v1175_v61 }
 0x1f7   : > { %v2205_v60 = vmul.f32 %v2173_v26, %v4463_v15  ;;  %v4584_v2 = vadd.f32 %v4214_v42, %v1883_v47  ;;  %v1447_v55 = vmul.f32 %v4090_v14, %v4527_v38  ;;  %v1548_v6 = vmul.f32 %v4097_v4, %v4549_v23 }
 0x1f8   : > { %v1682_v43 = vadd.f32 %v1650_v7, %v1579_v46  ;;  %v1651_v58 = vmul.f32 %v4146_v37, %v1613_v34  ;;  %v2048_v15 = vadd.f32 %v2016_v36, %v4562_v50  ;;  %v1378_v56 = vadd.f32 %v1346_v52, %v1276_v0  ;;  %v1817_v36 = vld [vmem:[#allocation2 + $0x19a] sm:$0xff] }
 0x1f9   : > { %v3018_v18 = vpop.eup %3017  ;;  %2878 = vmatmul.mubr.msk.f32.gmra.mrb[22].mxu1 %vm285_vm1, %v2205_v60  ;;  %v1953_v57 = vmul.f32 %v4584_v2, %v4584_v2  ;;  %v1075_v59 = vmul.f32 %v4333_v9, %v4490_v35  ;;  %v1752_v29 = vmul.f32 %v4171_v21, %v4586_v13  ;;  %v1144_v30 = vmul.f32 %v4344_v49, %v4508_v20 }
 0x1fa   : > { %v2142_v48 = vadd.f32 1.0, %v3018_v18  ;;  %v1783_v62 = vadd.f32 %v1751_v16, %v1682_v43  ;;  %v2080_v1 = vmul.f32 0.7978846, %v2048_v15  ;;  %v1479_v3 = vadd.f32 %v1447_v55, %v1378_v56 }
 0x1fb   : > { %v1985_v12 = vmul.f32 %v1953_v57, %v4584_v2  ;;  %v1245_v40 = vmul.f32 %v4352_v54, %v4514_v33  ;;  %v1176_v32 = vadd.f32 %v1144_v30, %v1075_v59  ;;  %v1347_v35 = vmul.f32 %v4121_v63, %v1612_v39  ;;  %v1717_v59 = vld [vmem:[#allocation2 + $0x1a1] sm:$0xff] }
 0x1fc   : > { %v2174_v22 = vmul.f32 0.5, %v2142_v48  ;;  %v1884_v7 = vadd.f32 %v1852_v27, %v1783_v62  ;;  %3021 = vtanh.f32 %v2080_v1  ;;  %v1580_v19 = vadd.f32 %v1548_v6, %v1479_v3  ;;  %v1716_v27 = vld [vmem:[#allocation2 + $0x199] sm:$0xff] }
 0x1fd   : > { %v2017_v31 = vmul.f32 0.044715, %v1985_v12  ;;  %v1853_v10 = vmul.f32 %v4130_v53, %v1816_v41  ;;  %v1277_v17 = vadd.f32 %v1245_v40, %v1176_v32  ;;  %v1448_v25 = vmul.f32 %v4090_v14, %v1714_v5 }
 0x1fe   : > { %v2206_v20 = vmul.f32 %v2174_v22, %v4496_v45  ;;  %v4610_v24 = vadd.f32 %v4214_v42, %v1884_v7  ;;  %v1683_v52 = vadd.f32 %v1651_v58, %v1580_v19  ;;  %v1549_v26 = vmul.f32 %v4097_v4, %v1815_v44  ;;  %v1615_v58 = vld [vmem:[#allocation2 + $0x1a0] sm:$0xff] }
 0x1ff   : > { %v2049_v33 = vadd.f32 %v2017_v31, %v4584_v2  ;;  %v1652_v39 = vmul.f32 %v4146_v37, %v1614_v51  ;;  %v3020_v11 = vpop.eup %3019  ;;  %v1379_v45 = vadd.f32 %v1347_v35, %v1277_v17  ;;  %v1076_v61 = vmul.f32 %v4333_v9, %v4523_v28 }
 0x200   : > { %2880 = vmatprep.mubr.msk.f32.mxu1 %vm285_vm1, %v2206_v20  ;;  %v1954_v47 = vmul.f32 %v4610_v24, %v4610_v24  ;;  %v1145_v14 = vmul.f32 %v4344_v49, %v4527_v38  ;;  %v2143_v5 = vadd.f32 1.0, %v3020_v11  ;;  %v1784_v16 = vadd.f32 %v1752_v29, %v1683_v52 }
 0x201   : > { %v2081_v46 = vmul.f32 0.7978846, %v2049_v33  ;;  %v1246_v4 = vmul.f32 %v4352_v54, %v4549_v23  ;;  %v1480_v60 = vadd.f32 %v1448_v25, %v1379_v45  ;;  %v1348_v43 = vmul.f32 %v4121_v63, %v1613_v34  ;;  %v3046_v63 = vld [vmem:[%s4768_s3 + $0x5] ss:$0 sm:$0xff] }
 0x202   : > { %v1986_v44 = vmul.f32 %v1954_v47, %v4610_v24  ;;  %v1177_v0 = vadd.f32 %v1145_v14, %v1076_v61  ;;  %v2175_v55 = vmul.f32 0.5, %v2143_v5  ;;  %v1885_v9 = vadd.f32 %v1853_v10, %v1784_v16 }
 0x203   : > { %3023 = vtanh.f32 %v2081_v46  ;;  %v1581_v6 = vadd.f32 %v1549_v26, %v1480_v60  ;;  %v1753_v49 = vmul.f32 %v4171_v21, %v1716_v27  ;;  %v1854_v23 = vmul.f32 %v4130_v53, %v1817_v36 }
 0x204   : > { %v2018_v28 = vmul.f32 0.044715, %v1986_v44  ;;  %v1278_v38 = vadd.f32 %v1246_v4, %v1177_v0  ;;  %v2207_v18 = vmul.f32 %v2175_v55, %v4531_v8  ;;  %v1923_v54 = vadd.f32 %v4214_v42, %v1885_v9  ;;  %v3047_v8 = vld [vmem:[%s4768_s3 + $0x6] ss:$0 sm:$0xff] }
 0x205   : > { %v1684_v57 = vadd.f32 %v1652_v39, %v1581_v6  ;;  %v1449_v34 = vmul.f32 %v3046_v63, %v4586_v13  ;;  %v1550_v29 = vmul.f32 %v3047_v8, %v1816_v41  ;;  %v1653_v30 = vmul.f32 %v4146_v37, %v1615_v58  ;;  %v1818_v13 = vld [vmem:[#allocation2 + $0x1a2] sm:$0xff] }
 0x206   : > { %v2050_v15 = vadd.f32 %v2018_v28, %v4610_v24  ;;  %v1380_v56 = vadd.f32 %v1348_v43, %v1278_v38  ;;  %v3022_v48 = vpop.eup %3021  ;;  %2881 = vmatmul.mubr.msk.f32.gmra.mrb[24].mxu1 %vm285_vm1, %v2207_v18  ;;  %v1955_v62 = vmul.f32 %v1923_v54, %v1923_v54  ;;  %v1754_v7 = vmul.f32 %v4171_v21, %v1717_v59  ;;  %v4657_v18 = vld [vmem:[%s4771_s6] ss:$0 sm:$0xff] }
 0x207   : > { %v2144_v1 = vadd.f32 1.0, %v3022_v48  ;;  %v1785_v3 = vadd.f32 %v1753_v49, %v1684_v57  ;;  %v1855_v37 = vmul.f32 %v4130_v53, %v1818_v13 }
 0x208   : > { %v2082_v12 = vmul.f32 0.7978846, %v2050_v15  ;;  %v1481_v40 = vadd.f32 %v1449_v34, %v1380_v56  ;;  %v1987_v22 = vmul.f32 %v1955_v62, %v1923_v54 }
 0x209   : > { %v2176_v32 = vmul.f32 0.5, %v2144_v1  ;;  %v1886_v35 = vadd.f32 %v1854_v23, %v1785_v3 }
 0x20a   : > { %3025 = vtanh.f32 %v2082_v12  ;;  %v1582_v51 = vadd.f32 %v1550_v29, %v1481_v40  ;;  %v2019_v31 = vmul.f32 0.044715, %v1987_v22 }
 0x20b   : > { %v2208_v19 = vmul.f32 %v2176_v32, %v4562_v50  ;;  %v1924_v10 = vadd.f32 %v4214_v42, %v1886_v35 }
 0x20c   : > { %v1685_v41 = vadd.f32 %v1653_v30, %v1582_v51  ;;  %v2051_v17 = vadd.f32 %v2019_v31, %v1923_v54 }
 0x20d   : > { %v3024_v20 = vpop.eup %3023  ;;  %2883 = vmatprep.mubr.msk.f32.mxu1 %vm285_vm1, %v2208_v19  ;;  %v1956_v33 = vmul.f32 %v1924_v10, %v1924_v10 }
 0x20e   : > { %v2145_v25 = vadd.f32 1.0, %v3024_v20  ;;  %v1786_v21 = vadd.f32 %v1754_v7, %v1685_v41  ;;  %v2083_v52 = vmul.f32 0.7978846, %v2051_v17 }
 0x20f   : > { %v1988_v39 = vmul.f32 %v1956_v33, %v1924_v10 }
 0x210   : > { %v2177_v26 = vmul.f32 0.5, %v2145_v25  ;;  %v1887_v11 = vadd.f32 %v1855_v37, %v1786_v21  ;;  %3027 = vtanh.f32 %v2083_v52 }
 0x211   : > { %v2020_v50 = vmul.f32 0.044715, %v1988_v39 }
 0x212   : > { %v2209_v47 = vmul.f32 %v2177_v26, %v4584_v2  ;;  %v1925_v45 = vadd.f32 %v4214_v42, %v1887_v11 }
 0x213   : > { %v2052_v53 = vadd.f32 %v2020_v50, %v1924_v10 }
 0x214   : > { %v3026_v61 = vpop.eup %3025  ;;  %2884 = vmatmul.mubr.msk.f32.gmra.mrb[26].mxu1 %vm285_vm1, %v2209_v47  ;;  %v1957_v14 = vmul.f32 %v1925_v45, %v1925_v45 }
 0x215   : > { %v2146_v5 = vadd.f32 1.0, %v3026_v61  ;;  %v2084_v46 = vmul.f32 0.7978846, %v2052_v53 }
 0x216   : > { %v1989_v16 = vmul.f32 %v1957_v14, %v1925_v45 }
 0x217   : > { %v2178_v27 = vmul.f32 0.5, %v2146_v5  ;;  %3029 = vtanh.f32 %v2084_v46 }
 0x218   : > { %v2021_v4 = vmul.f32 0.044715, %v1989_v16 }
 0x219   : > { %v2210_v44 = vmul.f32 %v2178_v27, %v4610_v24 }
 0x21a   : > { %v2053_v60 = vadd.f32 %v2021_v4, %v1925_v45  ;;  %v3028_v36 = vpop.eup %3027 }
 0x21b   : > { %2886 = vmatprep.mubr.msk.f32.mxu1 %vm285_vm1, %v2210_v44  ;;  %v2147_v2 = vadd.f32 1.0, %v3028_v36 }
 0x21c   : > { %v2085_v0 = vmul.f32 0.7978846, %v2053_v60 }
 0x21d   : > { %v2179_v42 = vmul.f32 0.5, %v2147_v2 }
 0x21e   : > { %3031 = vtanh.f32 %v2085_v0 }
 0x21f   : > { %v2211_v43 = vmul.f32 %v2179_v42, %v1923_v54 }
 0x221   : > { %v3030_v55 = vpop.eup %3029  ;;  %2887 = vmatmul.mubr.msk.f32.gmra.mrb[28].mxu1 %vm285_vm1, %v2211_v43 }
 0x222   : > { %v2148_v9 = vadd.f32 1.0, %v3030_v55 }
 0x224   : > { %v2180_v28 = vmul.f32 0.5, %v2148_v9 }
 0x226   : > { %v2212_v6 = vmul.f32 %v2180_v28, %v1924_v10 }
 0x228   : > { %v3032_v49 = vpop.eup %3031  ;;  %2889 = vmatprep.mubr.msk.f32.mxu1 %vm285_vm1, %v2212_v6 }
 0x229   : > { %v2149_v24 = vadd.f32 1.0, %v3032_v49 }
 0x22b   : > { %v2181_v38 = vmul.f32 0.5, %v2149_v24 }
 0x22d   : > { %v2213_v58 = vmul.f32 %v2181_v38, %v1925_v45 }
 0x22f   : > { %2890 = vmatmul.mubr.msk.f32.gmra.mrb[30].mxu1 %vm285_vm1, %v2213_v58 }
 0x236   : > { %v2846_v54 = vpop.f32.mrb[0].mxu1 }
 0x237   : > { %v2388_v23 = vadd.f32 %v2846_v54, %v4657_v18  ;;  %v2382_v15 = vpop.f32.mrb[1].mxu1 }
 0x238   : > { %v2383_v57 = vadd.f32 %v4657_v18, %v2382_v15 }
 0x239   : > { %2542 = vst.msk [vmem:[%s4664_s9 + $0x8] sm:$0xff] %vm366_vm0, %v2388_v23 }
 0x23a   : > { %2541 = vst.msk [vmem:[%s4664_s9] sm:$0xff] %vm366_vm0, %v2383_v57 }
 0x245   : > { %v2849_v56 = vpop.f32.mrb[2].mxu1 }
 0x246   : > { %v2398_v63 = vadd.f32 %v2849_v56, %v4657_v18  ;;  %v2392_v34 = vpop.f32.mrb[3].mxu1 }
 0x247   : > { %v2393_v59 = vadd.f32 %v4657_v18, %v2392_v34 }
 0x248   : > { %2544 = vst.msk [vmem:[%s4664_s9 + $0x18] sm:$0xff] %vm366_vm0, %v2398_v63 }
 0x249   : > { %2543 = vst.msk [vmem:[%s4664_s9 + $0x10] sm:$0xff] %vm366_vm0, %v2393_v59 }
 0x253   : > { %v2852_v48 = vpop.f32.mrb[4].mxu1 }
 0x254   : > { %v2408_v62 = vadd.f32 %v2852_v48, %v4657_v18  ;;  %v2402_v8 = vpop.f32.mrb[5].mxu1 }
 0x255   : > { %v2403_v29 = vadd.f32 %v4657_v18, %v2402_v8 }
 0x256   : > { %2546 = vst.msk [vmem:[%s4664_s9 + $0x28] sm:$0xff] %vm366_vm0, %v2408_v62 }
 0x257   : > { %2545 = vst.msk [vmem:[%s4664_s9 + $0x20] sm:$0xff] %vm366_vm0, %v2403_v29 }
 0x260   : > { %v2855_v30 = vpop.f32.mrb[6].mxu1 }
 0x261   : > { %v2418_v1 = vadd.f32 %v2855_v30, %v4657_v18  ;;  %v2412_v12 = vpop.f32.mrb[7].mxu1 }
 0x262   : > { %v2413_v3 = vadd.f32 %v4657_v18, %v2412_v12 }
 0x263   : > { %2548 = vst.msk [vmem:[%s4664_s9 + $0x38] sm:$0xff] %vm366_vm0, %v2418_v1 }
 0x264   : > { %2547 = vst.msk [vmem:[%s4664_s9 + $0x30] sm:$0xff] %vm366_vm0, %v2413_v3 }
 0x26d   : > { %v2858_v40 = vpop.f32.mrb[8].mxu1 }
 0x26e   : > { %v2428_v22 = vadd.f32 %v2858_v40, %v4657_v18  ;;  %v2422_v7 = vpop.f32.mrb[9].mxu1 }
 0x26f   : > { %v2423_v13 = vadd.f32 %v4657_v18, %v2422_v7 }
 0x270   : > { %2550 = vst.msk [vmem:[%s4664_s9 + $0x48] sm:$0xff] %vm366_vm0, %v2428_v22 }
 0x271   : > { %2549 = vst.msk [vmem:[%s4664_s9 + $0x40] sm:$0xff] %vm366_vm0, %v2423_v13 }
 0x27b   : > { %v2861_v32 = vpop.f32.mrb[10].mxu1 }
 0x27c   : > { %v2438_v35 = vadd.f32 %v2861_v32, %v4657_v18  ;;  %v2432_v51 = vpop.f32.mrb[11].mxu1 }
 0x27d   : > { %v2433_v31 = vadd.f32 %v4657_v18, %v2432_v51 }
 0x27e   : > { %2552 = vst.msk [vmem:[%s4664_s9 + $0x58] sm:$0xff] %vm366_vm0, %v2438_v35 }
 0x27f   : > { %2551 = vst.msk [vmem:[%s4664_s9 + $0x50] sm:$0xff] %vm366_vm0, %v2433_v31 }
 0x288   : > { %v2864_v19 = vpop.f32.mrb[12].mxu1 }
 0x289   : > { %v2448_v10 = vadd.f32 %v2864_v19, %v4657_v18  ;;  %v2442_v41 = vpop.f32.mrb[13].mxu1 }
 0x28a   : > { %v2443_v37 = vadd.f32 %v4657_v18, %v2442_v41 }
 0x28b   : > { %2554 = vst.msk [vmem:[%s4664_s9 + $0x68] sm:$0xff] %vm366_vm0, %v2448_v10 }
 0x28c   : > { %2553 = vst.msk [vmem:[%s4664_s9 + $0x60] sm:$0xff] %vm366_vm0, %v2443_v37 }
 0x295   : > { %v2867_v20 = vpop.f32.mrb[14].mxu1 }
 0x296   : > { %v2458_v17 = vadd.f32 %v2867_v20, %v4657_v18  ;;  %v2452_v25 = vpop.f32.mrb[15].mxu1 }
 0x297   : > { %v2453_v33 = vadd.f32 %v4657_v18, %v2452_v25 }
 0x298   : > { %2556 = vst.msk [vmem:[%s4664_s9 + $0x78] sm:$0xff] %vm366_vm0, %v2458_v17 }
 0x299   : > { %2555 = vst.msk [vmem:[%s4664_s9 + $0x70] sm:$0xff] %vm366_vm0, %v2453_v33 }
 0x2a4   : > { %v2870_v21 = vpop.f32.mrb[16].mxu1 }
 0x2a5   : > { %v2468_v52 = vadd.f32 %v2870_v21, %v4657_v18  ;;  %v2462_v26 = vpop.f32.mrb[17].mxu1 }
 0x2a6   : > { %v2463_v39 = vadd.f32 %v4657_v18, %v2462_v26 }
 0x2a7   : > { %2558 = vst.msk [vmem:[%s4664_s9 + $0x88] sm:$0xff] %vm366_vm0, %v2468_v52 }
 0x2a8   : > { %2557 = vst.msk [vmem:[%s4664_s9 + $0x80] sm:$0xff] %vm366_vm0, %v2463_v39 }
 0x2b1   : > { %v2873_v11 = vpop.f32.mrb[18].mxu1 }
 0x2b2   : > { %v2478_v47 = vadd.f32 %v2873_v11, %v4657_v18  ;;  %v2472_v50 = vpop.f32.mrb[19].mxu1 }
 0x2b3   : > { %v2473_v45 = vadd.f32 %v4657_v18, %v2472_v50 }
 0x2b4   : > { %2560 = vst.msk [vmem:[%s4664_s9 + $0x98] sm:$0xff] %vm366_vm0, %v2478_v47 }
 0x2b5   : > { %2559 = vst.msk [vmem:[%s4664_s9 + $0x90] sm:$0xff] %vm366_vm0, %v2473_v45 }
 0x2bf   : > { %v2876_v61 = vpop.f32.mrb[20].mxu1 }
 0x2c0   : > { %v2488_v53 = vadd.f32 %v2876_v61, %v4657_v18  ;;  %v2482_v14 = vpop.f32.mrb[21].mxu1 }
 0x2c1   : > { %v2483_v5 = vadd.f32 %v4657_v18, %v2482_v14 }
 0x2c2   : > { %2562 = vst.msk [vmem:[%s4664_s9 + $0xa8] sm:$0xff] %vm366_vm0, %v2488_v53 }
 0x2c3   : > { %2561 = vst.msk [vmem:[%s4664_s9 + $0xa0] sm:$0xff] %vm366_vm0, %v2483_v5 }
 0x2cc   : > { %v2879_v46 = vpop.f32.mrb[22].mxu1 }
 0x2cd   : > { %v2498_v16 = vadd.f32 %v2879_v46, %v4657_v18  ;;  %v2492_v27 = vpop.f32.mrb[23].mxu1 }
 0x2ce   : > { %v2493_v4 = vadd.f32 %v4657_v18, %v2492_v27 }
 0x2cf   : > { %2564 = vst.msk [vmem:[%s4664_s9 + $0xb8] sm:$0xff] %vm366_vm0, %v2498_v16 }
 0x2d0   : > { %2563 = vst.msk [vmem:[%s4664_s9 + $0xb0] sm:$0xff] %vm366_vm0, %v2493_v4 }
 0x2d9   : > { %v2882_v44 = vpop.f32.mrb[24].mxu1 }
 0x2da   : > { %v2508_v60 = vadd.f32 %v2882_v44, %v4657_v18  ;;  %v2502_v36 = vpop.f32.mrb[25].mxu1 }
 0x2db   : > { %v2503_v2 = vadd.f32 %v4657_v18, %v2502_v36 }
 0x2dc   : > { %2566 = vst.msk [vmem:[%s4664_s9 + $0xc8] sm:$0xff] %vm366_vm0, %v2508_v60 }
 0x2dd   : > { %2565 = vst.msk [vmem:[%s4664_s9 + $0xc0] sm:$0xff] %vm366_vm0, %v2503_v2 }
 0x2e7   : > { %v2885_v0 = vpop.f32.mrb[26].mxu1 }
 0x2e8   : > { %v2518_v42 = vadd.f32 %v2885_v0, %v4657_v18  ;;  %v2512_v43 = vpop.f32.mrb[27].mxu1 }
 0x2e9   : > { %v2513_v55 = vadd.f32 %v4657_v18, %v2512_v43 }
 0x2ea   : > { %2568 = vst.msk [vmem:[%s4664_s9 + $0xd8] sm:$0xff] %vm366_vm0, %v2518_v42 }
 0x2eb   : > { %2567 = vst.msk [vmem:[%s4664_s9 + $0xd0] sm:$0xff] %vm366_vm0, %v2513_v55 }
 0x2f4   : > { %v2888_v9 = vpop.f32.mrb[28].mxu1 }
 0x2f5   : > { %v2528_v28 = vadd.f32 %v2888_v9, %v4657_v18  ;;  %v2522_v6 = vpop.f32.mrb[29].mxu1 }
 0x2f6   : > { %v2523_v49 = vadd.f32 %v4657_v18, %v2522_v6 }
 0x2f7   : > { %2570 = vst.msk [vmem:[%s4664_s9 + $0xe8] sm:$0xff] %vm366_vm0, %v2528_v28 }
 0x2f8   : > { %2569 = vst.msk [vmem:[%s4664_s9 + $0xe0] sm:$0xff] %vm366_vm0, %v2523_v49 }
 0x302   : > { %v2891_v24 = vpop.f32.mrb[30].mxu1 }
 0x303   : > { %v2538_v38 = vadd.f32 %v2891_v24, %v4657_v18  ;;  %v2532_v58 = vpop.f32.mrb[31].mxu1 }
 0x304   : > { %v2533_v54 = vadd.f32 %v4657_v18, %v2532_v58 }
 0x305   : > { %2572 = vst.msk [vmem:[%s4664_s9 + $0xf8] sm:$0xff] %vm366_vm0, %v2538_v38 }
 0x306   : > { %2571 = vst.msk [vmem:[%s4664_s9 + $0xf0] sm:$0xff] %vm366_vm0, %v2533_v54 }
 0x307 PF: > { %s17_s24 = sadd.s32 1, %s3054_s24  }
 0x308   : > { %p14_p4 = scmp.ge.s32.totalorder %s17_s24, 4  }
 0x30a   :  { %16 = sbr.rel (!%p14_p4) target bundleno = 1 (0x1), region = 83 }

</bundles_post_ra>
